<compile_context>
chip_gen: v6e
topology: v6e:2x2x1
jax: 0.10.0
libtpu: 0.0.40
codegen_flags: <defaults>
</compile_context>

<pallas_src>
import functools

import jax
import jax.numpy as jnp
from jax.experimental import pallas as pl
from jax.experimental.pallas import tpu as pltpu


TM = 256   # A row tile (sublane axis)
TK = 512   # A column / reduction tile (lane axis, multiple of 128)


def _round_up(x, m):
    return (x + m - 1) // m * m


# ---------------------------------------------------------------------------
# K0: XW1 = X @ W1   (row-tiled; everything small)
# ---------------------------------------------------------------------------
def _xw_kernel(x_ref, w1_ref, o_ref):
    o_ref[...] = jnp.dot(x_ref[...], w1_ref[...],
                         preferred_element_type=jnp.float32)


# ---------------------------------------------------------------------------
# K1: G = relu(A_hat @ XW1 + b1) @ W2   (layer-1 aggregate, fold layer-2 weight)
# ---------------------------------------------------------------------------
def _layer1_kernel(a_ref, xw1_ref, b1_ref, w2_ref, g_ref, acc_ref):
    k = pl.program_id(1)

    @pl.when(k == 0)
    def _():
        acc_ref[...] = jnp.zeros_like(acc_ref)

    a = a_ref[...].astype(jnp.float32)          # bf16 in HBM/VMEM, f32 in vregs
    acc_ref[...] += jnp.dot(a, xw1_ref[...], preferred_element_type=jnp.float32)

    @pl.when(k == pl.num_programs(1) - 1)
    def _():
        h = jnp.maximum(acc_ref[...] + b1_ref[...], 0.0)   # conv1 bias + ReLU
        # TODO(synk): F.dropout(training=True) not implemented; eval mode == identity.
        g_ref[...] = jnp.dot(h, w2_ref[...], preferred_element_type=jnp.float32)


# ---------------------------------------------------------------------------
# K2: Y = A_hat @ G   (layer-2 aggregate; accumulate directly in the output)
# ---------------------------------------------------------------------------
def _layer2_kernel(a_ref, g_ref, y_ref):
    k = pl.program_id(1)

    @pl.when(k == 0)
    def _():
        y_ref[...] = jnp.zeros_like(y_ref)

    a = a_ref[...].astype(jnp.float32)
    y_ref[...] += jnp.dot(a, g_ref[...], preferred_element_type=jnp.float32)


# ---------------------------------------------------------------------------
# K3: out = P @ Y + b2   (global mean pool; P rows sum to 1, so + b2 commutes)
# ---------------------------------------------------------------------------
def _pool_kernel(p_ref, y_ref, b2_ref, o_ref):
    k = pl.program_id(0)

    @pl.when(k == 0)
    def _():
        o_ref[...] = jnp.zeros_like(o_ref)

    o_ref[...] += jnp.dot(p_ref[...], y_ref[...],
                          preferred_element_type=jnp.float32)

    @pl.when(k == pl.num_programs(0) - 1)
    def _():
        o_ref[...] += b2_ref[...]


# ---------------------------------------------------------------------------
# Wrapper: glue (normalized adjacency, pool matrix, padding) + 4 pallas_calls
# ---------------------------------------------------------------------------
@functools.partial(jax.jit, static_argnames=("num_graphs",))
def gcn_forward(x, edge_index, batch, w1, b1, w2, b2, num_graphs):
    """x: (N, F) f32, edge_index: (2, E) i32, batch: (N,) i32."""
    N, F_in = x.shape
    H = w1.shape[1]
    C = w2.shape[1]
    n_pad = _round_up(N, max(TM, TK))
    gm, gk = n_pad // TM, n_pad // TK

    # ---- glue: symmetric-normalized adjacency with self loops (PyG gcn_norm)
    # TODO(synk): dense N x N A_hat; for large sparse graphs use a scalar-prefetch
    # gather SpMM (neighbor lists + PrefetchScalarGridSpec) instead of dense tiles.
    src, dst = edge_index[0], edge_index[1]
    adj = jnp.zeros((N, N), dtype=jnp.float32)
    adj = adj.at[dst, src].set(1.0)                 # row = target, col = source
    diag = jnp.arange(N)
    adj = adj.at[diag, diag].set(1.0)               # add_remaining_self_loops (no doubling)
    deg = jnp.sum(adj, axis=1)
    dinv = jnp.where(deg > 0, 1.0 / jnp.sqrt(jnp.maximum(deg, 1e-12)), 0.0)
    a_hat = dinv[:, None] * adj * dinv[None, :]     # (N, N)

    # ---- glue: mean-pool matrix ----
    one_hot = (batch[None, :] == jnp.arange(num_graphs)[:, None]).astype(jnp.float32)
    counts = jnp.maximum(jnp.sum(one_hot, axis=1, keepdims=True), 1.0)
    pool = one_hot / counts                          # (num_graphs, N)

    # ---- pad node axis to the tile grid; A_hat stored bf16 (HBM-bound stream)
    a_pad = jnp.zeros((n_pad, n_pad), jnp.bfloat16).at[:N, :N].set(
        a_hat.astype(jnp.bfloat16))
    x_pad = jnp.zeros((n_pad, F_in), jnp.float32).at[:N, :].set(x)
    p_pad = jnp.zeros((num_graphs, n_pad), jnp.float32).at[:, :N].set(pool)
    b1r = b1.reshape(1, H).astype(jnp.float32)
    b2r = b2.reshape(1, C).astype(jnp.float32)

    params_rows = pltpu.CompilerParams(dimension_semantics=("parallel",))
    params_stream = pltpu.CompilerParams(
        dimension_semantics=("parallel", "arbitrary"),
        vmem_limit_bytes=32 * 1024 * 1024)
    params_red = pltpu.CompilerParams(dimension_semantics=("arbitrary",))

    # K0: XW1 = X @ W1
    xw1 = pl.pallas_call(
        _xw_kernel,
        out_shape=jax.ShapeDtypeStruct((n_pad, H), jnp.float32),
        grid=(gm,),
        in_specs=[pl.BlockSpec((TM, F_in), lambda i: (i, 0)),
                  pl.BlockSpec((F_in, H), lambda i: (0, 0))],
        out_specs=pl.BlockSpec((TM, H), lambda i: (i, 0)),
        compiler_params=params_rows,
    )(x_pad, w1)

    # K1: G = relu(A_hat @ XW1 + b1) @ W2
    g = pl.pallas_call(
        _layer1_kernel,
        out_shape=jax.ShapeDtypeStruct((n_pad, C), jnp.float32),
        grid=(gm, gk),
        in_specs=[pl.BlockSpec((TM, TK), lambda i, k: (i, k)),
                  pl.BlockSpec((TK, H), lambda i, k: (k, 0)),
                  pl.BlockSpec((1, H), lambda i, k: (0, 0)),
                  pl.BlockSpec((H, C), lambda i, k: (0, 0))],
        out_specs=pl.BlockSpec((TM, C), lambda i, k: (i, 0)),
        scratch_shapes=[pltpu.VMEM((TM, H), jnp.float32)],
        compiler_params=params_stream,
        cost_estimate=pl.CostEstimate(
            flops=2 * n_pad * n_pad * H + 2 * n_pad * H * C,
            transcendentals=0,
            bytes_accessed=n_pad * n_pad * 2 + gm * n_pad * H * 4 + n_pad * C * 4),
    )(a_pad, xw1, b1r, w2)

    # K2: Y = A_hat @ G
    y = pl.pallas_call(
        _layer2_kernel,
        out_shape=jax.ShapeDtypeStruct((n_pad, C), jnp.float32),
        grid=(gm, gk),
        in_specs=[pl.BlockSpec((TM, TK), lambda i, k: (i, k)),
                  pl.BlockSpec((TK, C), lambda i, k: (k, 0))],
        out_specs=pl.BlockSpec((TM, C), lambda i, k: (i, 0)),
        compiler_params=params_stream,
        cost_estimate=pl.CostEstimate(
            flops=2 * n_pad * n_pad * C,
            transcendentals=0,
            bytes_accessed=n_pad * n_pad * 2 + gm * n_pad * C * 4 + n_pad * C * 4),
    )(a_pad, g)

    # K3: out = P @ Y + b2   (global mean pool)
    out = pl.pallas_call(
        _pool_kernel,
        out_shape=jax.ShapeDtypeStruct((num_graphs, C), jnp.float32),
        grid=(gk,),
        in_specs=[pl.BlockSpec((num_graphs, TK), lambda k: (0, k)),
                  pl.BlockSpec((TK, C), lambda k: (k, 0)),
                  pl.BlockSpec((1, C), lambda k: (0, 0))],
        out_specs=pl.BlockSpec((num_graphs, C), lambda k: (0, 0)),
        compiler_params=params_red,
    )(p_pad, y, b2r)

    return out


if __name__ == "__main__":
    key = jax.random.PRNGKey(0)
    k_x, k_w1, k_w2 = jax.random.split(key, 3)

    # Small synthetic graph batch: 2 graphs of 8 nodes each (N = 16 nodes).
    N = 16
    F_IN = 8          # num_node_features
    HIDDEN = 16       # GCNConv hidden size (fixed to 16 in the module)
    C_OUT = 4         # num_output_features
    NUM_GRAPHS = 2

    x = jax.random.normal(k_x, (N, F_IN), dtype=jnp.float32)

    # Ring edges inside each graph (both directions), deterministic.
    edges = []
    for g in range(NUM_GRAPHS):
        base = g * 8
        for i in range(8):
            a = base + i
            b = base + (i + 1) % 8
            edges.append((a, b))
            edges.append((b, a))
    edge_index = jnp.array(edges, dtype=jnp.int32).T          # (2, E)

    batch = jnp.repeat(jnp.arange(NUM_GRAPHS, dtype=jnp.int32), 8)  # (N,)

    # Deterministic parameter init (glorot-ish scale, zero biases like PyG).
    w1 = jax.random.normal(k_w1, (F_IN, HIDDEN), dtype=jnp.float32) * (1.0 / jnp.sqrt(F_IN))
    b1 = jnp.zeros((HIDDEN,), dtype=jnp.float32)
    w2 = jax.random.normal(k_w2, (HIDDEN, C_OUT), dtype=jnp.float32) * (1.0 / jnp.sqrt(HIDDEN))
    b2 = jnp.zeros((C_OUT,), dtype=jnp.float32)

    out = gcn_forward(x, edge_index, batch, w1, b1, w2, b2, num_graphs=NUM_GRAPHS)
    jax.block_until_ready(out)
    assert out.shape == (NUM_GRAPHS, C_OUT)
    print("KERNEL_OK")
</pallas_src>

<mosaic_0001>
module attributes {stable_mosaic.version = 11 : i64} {
  func.func @_xw_kernel(%arg0: i32, %arg1: memref<256x8xf32, #tpu.memory_space<vmem>>, %arg2: memref<8x16xf32, #tpu.memory_space<vmem>>, %arg3: memref<256x16xf32, #tpu.memory_space<vmem>>) attributes {dimension_semantics = [#tpu.dimension_semantics<parallel>], iteration_bounds = array<i64: 2>, scalar_prefetch = 0 : i64, scratch_operands = 0 : i64, tpu.core_type = #tpu.core_type<tc>, window_params = [{transform_indices = @transform_0, window_bounds = array<i64: 256, 8>}, {pipeline_mode = #tpu.pipeline_mode<synchronous>, transform_indices = @transform_1, window_bounds = array<i64: 8, 16>}, {transform_indices = @transform_2, window_bounds = array<i64: 256, 16>}]} {
    %c0 = arith.constant 0 : index
    %c0_0 = arith.constant 0 : index
    %0 = vector.load %arg1[%c0, %c0_0] : memref<256x8xf32, #tpu.memory_space<vmem>>, vector<256x8xf32>
    %c0_1 = arith.constant 0 : index
    %c0_2 = arith.constant 0 : index
    %1 = vector.load %arg2[%c0_1, %c0_2] : memref<8x16xf32, #tpu.memory_space<vmem>>, vector<8x16xf32>
    %cst = arith.constant dense<0.000000e+00> : vector<256x16xf32>
    %2 = tpu.matmul %0, %1, %cst {dimension_numbers = #tpu.dot_dimension_numbers<[1], [0], [0], [1], [0, 0, 1, 1], [], []>} : vector<256x8xf32>, vector<8x16xf32>, vector<256x16xf32> -> vector<256x16xf32>
    %c0_3 = arith.constant 0 : index
    %c0_4 = arith.constant 0 : index
    %3 = vector.load %arg3[%c0_3, %c0_4] : memref<256x16xf32, #tpu.memory_space<vmem>>, vector<256x16xf32>
    tpu.vector_store %arg3[%c0_3, %c0_4], %2 {strides = array<i32>} : memref<256x16xf32, #tpu.memory_space<vmem>>, vector<256x16xf32>,
    return
  }
  func.func @transform_0(%arg0: i32) -> (i32, i32) {
    %c0_i32 = arith.constant 0 : i32
    %c0_i32_0 = arith.constant 0 : i32
    return %arg0, %c0_i32 : i32, i32
  }
  func.func @transform_1(%arg0: i32) -> (i32, i32) {
    %c0_i32 = arith.constant 0 : i32
    %c0_i32_0 = arith.constant 0 : i32
    %c0_i32_1 = arith.constant 0 : i32
    return %c0_i32, %c0_i32_0 : i32, i32
  }
  func.func @transform_2(%arg0: i32) -> (i32, i32) {
    %c0_i32 = arith.constant 0 : i32
    %c0_i32_0 = arith.constant 0 : i32
    return %arg0, %c0_i32 : i32, i32
  }
}

module attributes {stable_mosaic.version = 11 : i64} {
  func.func @_layer1_kernel(%arg0: i32, %arg1: i32, %arg2: memref<256x512xbf16, #tpu.memory_space<vmem>>, %arg3: memref<512x16xf32, #tpu.memory_space<vmem>>, %arg4: memref<1x16xf32, #tpu.memory_space<vmem>>, %arg5: memref<16x4xf32, #tpu.memory_space<vmem>>, %arg6: memref<256x4xf32, #tpu.memory_space<vmem>>, %arg7: memref<256x16xf32, #tpu.memory_space<vmem>>) attributes {dimension_semantics = [#tpu.dimension_semantics<parallel>, #tpu.dimension_semantics<arbitrary>], iteration_bounds = array<i64: 2, 1>, scalar_prefetch = 0 : i64, scratch_operands = 1 : i64, tpu.core_type = #tpu.core_type<tc>, window_params = [{transform_indices = @transform_0, window_bounds = array<i64: 256, 512>}, {transform_indices = @transform_1, window_bounds = array<i64: 512, 16>}, {pipeline_mode = #tpu.pipeline_mode<synchronous>, transform_indices = @transform_2, window_bounds = array<i64: 1, 16>}, {pipeline_mode = #tpu.pipeline_mode<synchronous>, transform_indices = @transform_3, window_bounds = array<i64: 16, 4>}, {transform_indices = @transform_4, window_bounds = array<i64: 256, 4>}]} {
    %c0_i32 = arith.constant 0 : i32
    %0 = arith.cmpi eq, %arg1, %c0_i32 : i32
    %1 = arith.extui %0 : i1 to i32
    %c0_i32_0 = arith.constant 0 : i32
    %2 = arith.cmpi ne, %1, %c0_i32_0 : i32
    scf.if %2 {
      %cst_10 = arith.constant 0.000000e+00 : f32
      %13 = vector.broadcast %cst_10 : f32 to vector<256x16xf32>
      %c0_11 = arith.constant 0 : index
      %c0_12 = arith.constant 0 : index
      %14 = vector.load %arg7[%c0_11, %c0_12] : memref<256x16xf32, #tpu.memory_space<vmem>>, vector<256x16xf32>
      tpu.vector_store %arg7[%c0_11, %c0_12], %13 {strides = array<i32>} : memref<256x16xf32, #tpu.memory_space<vmem>>, vector<256x16xf32>,
    } else {
    }
    %c0 = arith.constant 0 : index
    %c0_1 = arith.constant 0 : index
    %3 = vector.load %arg2[%c0, %c0_1] : memref<256x512xbf16, #tpu.memory_space<vmem>>, vector<256x512xbf16>
    %4 = arith.extf %3 : vector<256x512xbf16> to vector<256x512xf32>
    %c0_2 = arith.constant 0 : index
    %c0_3 = arith.constant 0 : index
    %5 = vector.load %arg7[%c0_2, %c0_3] : memref<256x16xf32, #tpu.memory_space<vmem>>, vector<256x16xf32>
    %c0_4 = arith.constant 0 : index
    %c0_5 = arith.constant 0 : index
    %6 = vector.load %arg3[%c0_4, %c0_5] : memref<512x16xf32, #tpu.memory_space<vmem>>, vector<512x16xf32>
    %cst = arith.constant dense<0.000000e+00> : vector<256x16xf32>
    %7 = tpu.matmul %4, %6, %cst {dimension_numbers = #tpu.dot_dimension_numbers<[1], [0], [0], [1], [0, 0, 1, 1], [], []>} : vector<256x512xf32>, vector<512x16xf32>, vector<256x16xf32> -> vector<256x16xf32>
    %8 = arith.addf %5, %7 : vector<256x16xf32>
    %c0_6 = arith.constant 0 : index
    %c0_7 = arith.constant 0 : index
    %9 = vector.load %arg7[%c0_6, %c0_7] : memref<256x16xf32, #tpu.memory_space<vmem>>, vector<256x16xf32>
    tpu.vector_store %arg7[%c0_6, %c0_7], %8 {strides = array<i32>} : memref<256x16xf32, #tpu.memory_space<vmem>>, vector<256x16xf32>,
    %c0_i32_8 = arith.constant 0 : i32
    %10 = arith.cmpi eq, %arg1, %c0_i32_8 : i32
    %11 = arith.extui %10 : i1 to i32
    %c0_i32_9 = arith.constant 0 : i32
    %12 = arith.cmpi ne, %11, %c0_i32_9 : i32
    scf.if %12 {
      %c0_10 = arith.constant 0 : index
      %c0_11 = arith.constant 0 : index
      %13 = vector.load %arg7[%c0_10, %c0_11] : memref<256x16xf32, #tpu.memory_space<vmem>>, vector<256x16xf32>
      %c0_12 = arith.constant 0 : index
      %c0_13 = arith.constant 0 : index
      %14 = vector.load %arg4[%c0_12, %c0_13] : memref<1x16xf32, #tpu.memory_space<vmem>>, vector<1x16xf32>
      %15 = vector.broadcast %14 : vector<1x16xf32> to vector<256x16xf32>
      %16 = arith.addf %13, %15 : vector<256x16xf32>
      %cst_14 = arith.constant 0.000000e+00 : f32
      %17 = vector.broadcast %cst_14 : f32 to vector<256x16xf32>
      %18 = arith.maximumf %16, %17 : vector<256x16xf32>
      %c0_15 = arith.constant 0 : index
      %c0_16 = arith.constant 0 : index
      %19 = vector.load %arg5[%c0_15, %c0_16] : memref<16x4xf32, #tpu.memory_space<vmem>>, vector<16x4xf32>
      %cst_17 = arith.constant dense<0.000000e+00> : vector<256x4xf32>
      %20 = tpu.matmul %18, %19, %cst_17 {dimension_numbers = #tpu.dot_dimension_numbers<[1], [0], [0], [1], [0, 0, 1, 1], [], []>} : vector<256x16xf32>, vector<16x4xf32>, vector<256x4xf32> -> vector<256x4xf32>
      %c0_18 = arith.constant 0 : index
      %c0_19 = arith.constant 0 : index
      %21 = vector.load %arg6[%c0_18, %c0_19] : memref<256x4xf32, #tpu.memory_space<vmem>>, vector<256x4xf32>
      tpu.vector_store %arg6[%c0_18, %c0_19], %20 {strides = array<i32>} : memref<256x4xf32, #tpu.memory_space<vmem>>, vector<256x4xf32>,
    } else {
    }
    return
  }
  func.func @transform_0(%arg0: i32, %arg1: i32) -> (i32, i32) {
    %c0_i32 = arith.constant 0 : i32
    return %arg0, %arg1 : i32, i32
  }
  func.func @transform_1(%arg0: i32, %arg1: i32) -> (i32, i32) {
    %c0_i32 = arith.constant 0 : i32
    %c0_i32_0 = arith.constant 0 : i32
    return %arg1, %c0_i32 : i32, i32
  }
  func.func @transform_2(%arg0: i32, %arg1: i32) -> (i32, i32) {
    %c0_i32 = arith.constant 0 : i32
    %c0_i32_0 = arith.constant 0 : i32
    %c0_i32_1 = arith.constant 0 : i32
    return %c0_i32, %c0_i32_0 : i32, i32
  }
  func.func @transform_3(%arg0: i32, %arg1: i32) -> (i32, i32) {
    %c0_i32 = arith.constant 0 : i32
    %c0_i32_0 = arith.constant 0 : i32
    %c0_i32_1 = arith.constant 0 : i32
    return %c0_i32, %c0_i32_0 : i32, i32
  }
  func.func @transform_4(%arg0: i32, %arg1: i32) -> (i32, i32) {
    %c0_i32 = arith.constant 0 : i32
    %c0_i32_0 = arith.constant 0 : i32
    return %arg0, %c0_i32 : i32, i32
  }
}

module attributes {stable_mosaic.version = 11 : i64} {
  func.func @_layer2_kernel(%arg0: i32, %arg1: i32, %arg2: memref<256x512xbf16, #tpu.memory_space<vmem>>, %arg3: memref<512x4xf32, #tpu.memory_space<vmem>>, %arg4: memref<256x4xf32, #tpu.memory_space<vmem>>) attributes {dimension_semantics = [#tpu.dimension_semantics<parallel>, #tpu.dimension_semantics<arbitrary>], iteration_bounds = array<i64: 2, 1>, scalar_prefetch = 0 : i64, scratch_operands = 0 : i64, tpu.core_type = #tpu.core_type<tc>, window_params = [{transform_indices = @transform_0, window_bounds = array<i64: 256, 512>}, {transform_indices = @transform_1, window_bounds = array<i64: 512, 4>}, {transform_indices = @transform_2, window_bounds = array<i64: 256, 4>}]} {
    %c0_i32 = arith.constant 0 : i32
    %0 = arith.cmpi eq, %arg1, %c0_i32 : i32
    %1 = arith.extui %0 : i1 to i32
    %c0_i32_0 = arith.constant 0 : i32
    %2 = arith.cmpi ne, %1, %c0_i32_0 : i32
    scf.if %2 {
      %cst_8 = arith.constant 0.000000e+00 : f32
      %10 = vector.broadcast %cst_8 : f32 to vector<256x4xf32>
      %c0_9 = arith.constant 0 : index
      %c0_10 = arith.constant 0 : index
      %11 = vector.load %arg4[%c0_9, %c0_10] : memref<256x4xf32, #tpu.memory_space<vmem>>, vector<256x4xf32>
      tpu.vector_store %arg4[%c0_9, %c0_10], %10 {strides = array<i32>} : memref<256x4xf32, #tpu.memory_space<vmem>>, vector<256x4xf32>,
    } else {
    }
    %c0 = arith.constant 0 : index
    %c0_1 = arith.constant 0 : index
    %3 = vector.load %arg2[%c0, %c0_1] : memref<256x512xbf16, #tpu.memory_space<vmem>>, vector<256x512xbf16>
    %4 = arith.extf %3 : vector<256x512xbf16> to vector<256x512xf32>
    %c0_2 = arith.constant 0 : index
    %c0_3 = arith.constant 0 : index
    %5 = vector.load %arg4[%c0_2, %c0_3] : memref<256x4xf32, #tpu.memory_space<vmem>>, vector<256x4xf32>
    %c0_4 = arith.constant 0 : index
    %c0_5 = arith.constant 0 : index
    %6 = vector.load %arg3[%c0_4, %c0_5] : memref<512x4xf32, #tpu.memory_space<vmem>>, vector<512x4xf32>
    %cst = arith.constant dense<0.000000e+00> : vector<256x4xf32>
    %7 = tpu.matmul %4, %6, %cst {dimension_numbers = #tpu.dot_dimension_numbers<[1], [0], [0], [1], [0, 0, 1, 1], [], []>} : vector<256x512xf32>, vector<512x4xf32>, vector<256x4xf32> -> vector<256x4xf32>
    %8 = arith.addf %5, %7 : vector<256x4xf32>
    %c0_6 = arith.constant 0 : index
    %c0_7 = arith.constant 0 : index
    %9 = vector.load %arg4[%c0_6, %c0_7] : memref<256x4xf32, #tpu.memory_space<vmem>>, vector<256x4xf32>
    tpu.vector_store %arg4[%c0_6, %c0_7], %8 {strides = array<i32>} : memref<256x4xf32, #tpu.memory_space<vmem>>, vector<256x4xf32>,
    return
  }
  func.func @transform_0(%arg0: i32, %arg1: i32) -> (i32, i32) {
    %c0_i32 = arith.constant 0 : i32
    return %arg0, %arg1 : i32, i32
  }
  func.func @transform_1(%arg0: i32, %arg1: i32) -> (i32, i32) {
    %c0_i32 = arith.constant 0 : i32
    %c0_i32_0 = arith.constant 0 : i32
    return %arg1, %c0_i32 : i32, i32
  }
  func.func @transform_2(%arg0: i32, %arg1: i32) -> (i32, i32) {
    %c0_i32 = arith.constant 0 : i32
    %c0_i32_0 = arith.constant 0 : i32
    return %arg0, %c0_i32 : i32, i32
  }
}

module attributes {stable_mosaic.version = 11 : i64} {
  func.func @_pool_kernel(%arg0: i32, %arg1: memref<2x512xf32, #tpu.memory_space<vmem>>, %arg2: memref<512x4xf32, #tpu.memory_space<vmem>>, %arg3: memref<1x4xf32, #tpu.memory_space<vmem>>, %arg4: memref<2x4xf32, #tpu.memory_space<vmem>>) attributes {dimension_semantics = [#tpu.dimension_semantics<arbitrary>], iteration_bounds = array<i64: 1>, scalar_prefetch = 0 : i64, scratch_operands = 0 : i64, tpu.core_type = #tpu.core_type<tc>, window_params = [{transform_indices = @transform_0, window_bounds = array<i64: 2, 512>}, {transform_indices = @transform_1, window_bounds = array<i64: 512, 4>}, {pipeline_mode = #tpu.pipeline_mode<synchronous>, transform_indices = @transform_2, window_bounds = array<i64: 1, 4>}, {pipeline_mode = #tpu.pipeline_mode<synchronous>, transform_indices = @transform_3, window_bounds = array<i64: 2, 4>}]} {
    %c0_i32 = arith.constant 0 : i32
    %0 = arith.cmpi eq, %arg0, %c0_i32 : i32
    %1 = arith.extui %0 : i1 to i32
    %c0_i32_0 = arith.constant 0 : i32
    %2 = arith.cmpi ne, %1, %c0_i32_0 : i32
    scf.if %2 {
      %cst_10 = arith.constant 0.000000e+00 : f32
      %12 = vector.broadcast %cst_10 : f32 to vector<2x4xf32>
      %c0_11 = arith.constant 0 : index
      %c0_12 = arith.constant 0 : index
      %13 = vector.load %arg4[%c0_11, %c0_12] : memref<2x4xf32, #tpu.memory_space<vmem>>, vector<2x4xf32>
      tpu.vector_store %arg4[%c0_11, %c0_12], %12 {strides = array<i32>} : memref<2x4xf32, #tpu.memory_space<vmem>>, vector<2x4xf32>,
    } else {
    }
    %c0 = arith.constant 0 : index
    %c0_1 = arith.constant 0 : index
    %3 = vector.load %arg4[%c0, %c0_1] : memref<2x4xf32, #tpu.memory_space<vmem>>, vector<2x4xf32>
    %c0_2 = arith.constant 0 : index
    %c0_3 = arith.constant 0 : index
    %4 = vector.load %arg1[%c0_2, %c0_3] : memref<2x512xf32, #tpu.memory_space<vmem>>, vector<2x512xf32>
    %c0_4 = arith.constant 0 : index
    %c0_5 = arith.constant 0 : index
    %5 = vector.load %arg2[%c0_4, %c0_5] : memref<512x4xf32, #tpu.memory_space<vmem>>, vector<512x4xf32>
    %cst = arith.constant dense<0.000000e+00> : vector<2x4xf32>
    %6 = tpu.matmul %4, %5, %cst {dimension_numbers = #tpu.dot_dimension_numbers<[1], [0], [0], [1], [0, 0, 1, 1], [], []>} : vector<2x512xf32>, vector<512x4xf32>, vector<2x4xf32> -> vector<2x4xf32>
    %7 = arith.addf %3, %6 : vector<2x4xf32>
    %c0_6 = arith.constant 0 : index
    %c0_7 = arith.constant 0 : index
    %8 = vector.load %arg4[%c0_6, %c0_7] : memref<2x4xf32, #tpu.memory_space<vmem>>, vector<2x4xf32>
    tpu.vector_store %arg4[%c0_6, %c0_7], %7 {strides = array<i32>} : memref<2x4xf32, #tpu.memory_space<vmem>>, vector<2x4xf32>,
    %c0_i32_8 = arith.constant 0 : i32
    %9 = arith.cmpi eq, %arg0, %c0_i32_8 : i32
    %10 = arith.extui %9 : i1 to i32
    %c0_i32_9 = arith.constant 0 : i32
    %11 = arith.cmpi ne, %10, %c0_i32_9 : i32
    scf.if %11 {
      %c0_10 = arith.constant 0 : index
      %c0_11 = arith.constant 0 : index
      %12 = vector.load %arg4[%c0_10, %c0_11] : memref<2x4xf32, #tpu.memory_space<vmem>>, vector<2x4xf32>
      %c0_12 = arith.constant 0 : index
      %c0_13 = arith.constant 0 : index
      %13 = vector.load %arg3[%c0_12, %c0_13] : memref<1x4xf32, #tpu.memory_space<vmem>>, vector<1x4xf32>
      %14 = vector.broadcast %13 : vector<1x4xf32> to vector<2x4xf32>
      %15 = arith.addf %12, %14 : vector<2x4xf32>
      %c0_14 = arith.constant 0 : index
      %c0_15 = arith.constant 0 : index
      %16 = vector.load %arg4[%c0_14, %c0_15] : memref<2x4xf32, #tpu.memory_space<vmem>>, vector<2x4xf32>
      tpu.vector_store %arg4[%c0_14, %c0_15], %15 {strides = array<i32>} : memref<2x4xf32, #tpu.memory_space<vmem>>, vector<2x4xf32>,
    } else {
    }
    return
  }
  func.func @transform_0(%arg0: i32) -> (i32, i32) {
    %c0_i32 = arith.constant 0 : i32
    %c0_i32_0 = arith.constant 0 : i32
    return %c0_i32, %arg0 : i32, i32
  }
  func.func @transform_1(%arg0: i32) -> (i32, i32) {
    %c0_i32 = arith.constant 0 : i32
    %c0_i32_0 = arith.constant 0 : i32
    return %arg0, %c0_i32 : i32, i32
  }
  func.func @transform_2(%arg0: i32) -> (i32, i32) {
    %c0_i32 = arith.constant 0 : i32
    %c0_i32_0 = arith.constant 0 : i32
    %c0_i32_1 = arith.constant 0 : i32
    return %c0_i32, %c0_i32_0 : i32, i32
  }
  func.func @transform_3(%arg0: i32) -> (i32, i32) {
    %c0_i32 = arith.constant 0 : i32
    %c0_i32_0 = arith.constant 0 : i32
    %c0_i32_1 = arith.constant 0 : i32
    return %c0_i32, %c0_i32_0 : i32, i32
  }
}

</mosaic_0001>

<bundles_post_ra>
// kernel: gcn_forward.4
= control target key start
LH: loop header
LB: loop body
LE: loop exit
PB: predicated region body
PF: predicated region fallthrough
CT: control target
= control target key end

     0   :  { %s750_s9 = smov 0   ;;  %s909_s0 = inlined_call_operand.vmem [shape: f32[512,8], index: 0, kind: input, shape index: {}]   ;;  %s910_s1 = inlined_call_operand.vmem [shape: f32[8,16], index: 1, kind: input, shape index: {}]   ;;  %s911_s2 = inlined_call_operand.vmem [shape: f32[512,16], index: 2, kind: output, shape index: {}]  }
   0x1 LB: > { %s591_s10 = sadd.s32 4294967295, %s733_s9   ;;  %p595_p0 = scmp.ge.s32.totalorder %s733_s9, 1  ;;  %s733_s9 = sphi %s750_s9, %s12_s9  }
   0x2   : > { %p113_p1 = scmp.lt.s32.totalorder %s733_s9, 3 }
   0x4   : > { %p114_p2 = pnand %p595_p0, %p113_p1 }
   0x5   : > { %s596_s13 = sshll.u32 (!%p114_p2), %s591_s10, 5 }
   0x6   : > { %117 = sbr.rel (%p114_p2) target bundleno = 241 (0xf1), region = 28  ;;  %p136_p3 = scmp.lt.s32.totalorder (!%p114_p2), %s596_s13, 63 }
   0xb   : > { %v179_v0 = vld [vmem:[%s910_s1] sm:$0xff]  ;;  %s913_s13 = smov (!%p136_p3, %s596_s13), 63  ;;  %vm180_vm0 = vcmask 64512   ;;  %vm502_vm1 = vcmask 130048  }
   0xc   : > { %667 = vmatprep.subr.mxu0 %v179_v0  ;;  %717 = vmatprep.subr.mxu1 %v179_v0  ;;  %s597_s14 = sshll.u32 %s913_s13, 3 }
   0xd   : > { %668 = vmatpush3.msra.mxu0 %v179_v0  ;;  %718 = vmatpush3.msra.mxu1 %v179_v0  ;;  %s769_s17 = scalar_lea.vmem %s909_s0, %s597_s14  ;;  %s840_s20 = scalar_lea.vmem %s911_s2, %s597_s14 }
   0xe   : > { %v147_v1 = vld [vmem:[%s769_s17] sm:$0xff]  ;;  %v148_v3 = vld [vmem:[%s769_s17 + $0x8] sm:$0xff]  ;;  %v149_v5 = vld [vmem:[%s769_s17 + $0x10] sm:$0xff] }
   0xf   : > { %v163_v2 = vld [vmem:[%s769_s17 + $0x80] sm:$0xff]  ;;  %669 = vmatprep.mubr.msk.f32.mxu0 %vm180_vm0, %v147_v1  ;;  %v164_v4 = vld [vmem:[%s769_s17 + $0x88] sm:$0xff]  ;;  %v165_v6 = vld [vmem:[%s769_s17 + $0x90] sm:$0xff] }
  0x10   : > { %693 = vmatprep.mubr.msk.f32.mxu1 %vm180_vm0, %v163_v2  ;;  %670 = vmatmul.mubr.msk.f32.vlgmr.msra.gmra.mxu0 %vm180_vm0, %v148_v3  ;;  %v150_v7 = vld [vmem:[%s769_s17 + $0x18] sm:$0xff]  ;;  %v151_v9 = vld [vmem:[%s769_s17 + $0x20] sm:$0xff]  ;;  %v152_v11 = vld [vmem:[%s769_s17 + $0x28] sm:$0xff] }
  0x11   : > { %694 = vmatmul.mubr.msk.f32.vlgmr.msra.gmra.mxu1 %vm180_vm0, %v164_v4  ;;  %672 = vmatprep.mubr.msk.f32.mxu0 %vm180_vm0, %v149_v5  ;;  %v166_v8 = vld [vmem:[%s769_s17 + $0x98] sm:$0xff]  ;;  %v167_v10 = vld [vmem:[%s769_s17 + $0xa0] sm:$0xff]  ;;  %v168_v12 = vld [vmem:[%s769_s17 + $0xa8] sm:$0xff] }
  0x12   : > { %696 = vmatprep.mubr.msk.f32.mxu1 %vm180_vm0, %v165_v6  ;;  %v153_v13 = vld [vmem:[%s769_s17 + $0x30] sm:$0xff]  ;;  %v154_v15 = vld [vmem:[%s769_s17 + $0x38] sm:$0xff]  ;;  %v155_v17 = vld [vmem:[%s769_s17 + $0x40] sm:$0xff] }
  0x13   : > { %v169_v14 = vld [vmem:[%s769_s17 + $0xb0] sm:$0xff]  ;;  %v170_v16 = vld [vmem:[%s769_s17 + $0xb8] sm:$0xff]  ;;  %v171_v18 = vld [vmem:[%s769_s17 + $0xc0] sm:$0xff] }
  0x14   : > { %673 = vmatmul.mubr.msk.f32.gmra.mxu0 %vm180_vm0, %v150_v7  ;;  %v156_v19 = vld [vmem:[%s769_s17 + $0x48] sm:$0xff]  ;;  %v157_v21 = vld [vmem:[%s769_s17 + $0x50] sm:$0xff]  ;;  %v158_v23 = vld [vmem:[%s769_s17 + $0x58] sm:$0xff] }
  0x15   : > { %697 = vmatmul.mubr.msk.f32.gmra.mxu1 %vm180_vm0, %v166_v8  ;;  %675 = vmatprep.mubr.msk.f32.mxu0 %vm180_vm0, %v151_v9  ;;  %v172_v20 = vld [vmem:[%s769_s17 + $0xc8] sm:$0xff]  ;;  %v173_v22 = vld [vmem:[%s769_s17 + $0xd0] sm:$0xff]  ;;  %v174_v24 = vld [vmem:[%s769_s17 + $0xd8] sm:$0xff] }
  0x16   : > { %699 = vmatprep.mubr.msk.f32.mxu1 %vm180_vm0, %v167_v10  ;;  %v159_v25 = vld [vmem:[%s769_s17 + $0x60] sm:$0xff]  ;;  %v160_v27 = vld [vmem:[%s769_s17 + $0x68] sm:$0xff]  ;;  %v161_v29 = vld [vmem:[%s769_s17 + $0x70] sm:$0xff] }
  0x17   : > { %v175_v26 = vld [vmem:[%s769_s17 + $0xe0] sm:$0xff]  ;;  %v176_v28 = vld [vmem:[%s769_s17 + $0xe8] sm:$0xff]  ;;  %v177_v30 = vld [vmem:[%s769_s17 + $0xf0] sm:$0xff] }
  0x18   : > { %676 = vmatmul.mubr.msk.f32.gmra.mxu0 %vm180_vm0, %v152_v11  ;;  %v162_v31 = vld [vmem:[%s769_s17 + $0x78] sm:$0xff] }
  0x19   : > { %700 = vmatmul.mubr.msk.f32.gmra.mxu1 %vm180_vm0, %v168_v12  ;;  %678 = vmatprep.mubr.msk.f32.mxu0 %vm180_vm0, %v153_v13  ;;  %v178_v32 = vld [vmem:[%s769_s17 + $0xf8] sm:$0xff] }
  0x1a   : > { %702 = vmatprep.mubr.msk.f32.mxu1 %vm180_vm0, %v169_v14 }
  0x1c   : > { %679 = vmatmul.mubr.msk.f32.gmra.mxu0 %vm180_vm0, %v154_v15 }
  0x1d   : > { %703 = vmatmul.mubr.msk.f32.gmra.mxu1 %vm180_vm0, %v170_v16  ;;  %681 = vmatprep.mubr.msk.f32.mxu0 %vm180_vm0, %v155_v17 }
  0x1e   : > { %705 = vmatprep.mubr.msk.f32.mxu1 %vm180_vm0, %v171_v18 }
  0x20   : > { %682 = vmatmul.mubr.msk.f32.gmra.mxu0 %vm180_vm0, %v156_v19 }
  0x21   : > { %706 = vmatmul.mubr.msk.f32.gmra.mxu1 %vm180_vm0, %v172_v20  ;;  %684 = vmatprep.mubr.msk.f32.mxu0 %vm180_vm0, %v157_v21 }
  0x22   : > { %708 = vmatprep.mubr.msk.f32.mxu1 %vm180_vm0, %v173_v22 }
  0x24   : > { %685 = vmatmul.mubr.msk.f32.gmra.mxu0 %vm180_vm0, %v158_v23 }
  0x25   : > { %709 = vmatmul.mubr.msk.f32.gmra.mxu1 %vm180_vm0, %v174_v24  ;;  %687 = vmatprep.mubr.msk.f32.mxu0 %vm180_vm0, %v159_v25 }
  0x26   : > { %711 = vmatprep.mubr.msk.f32.mxu1 %vm180_vm0, %v175_v26 }
  0x28   : > { %688 = vmatmul.mubr.msk.f32.gmra.mxu0 %vm180_vm0, %v160_v27 }
  0x29   : > { %712 = vmatmul.mubr.msk.f32.gmra.mxu1 %vm180_vm0, %v176_v28  ;;  %690 = vmatprep.mubr.msk.f32.mxu0 %vm180_vm0, %v161_v29 }
  0x2a   : > { %714 = vmatprep.mubr.msk.f32.mxu1 %vm180_vm0, %v177_v30 }
  0x2c   : > { %691 = vmatmul.mubr.msk.f32.gmra.mxu0 %vm180_vm0, %v162_v31 }
  0x2d   : > { %715 = vmatmul.mubr.msk.f32.gmra.mxu1 %vm180_vm0, %v178_v32 }
  0xd0   : > { %v671_v33 = vpop.f32.mrf.mxu0 }
  0xd1   : > { %v695_v34 = vpop.f32.mrf.mxu1  ;;  %504 = vst.msk [vmem:[%s840_s20 + $0x8] sm:$0xff] %vm502_vm1, %v671_v33 }
  0xd2   : > { %520 = vst.msk [vmem:[%s840_s20 + $0x88] sm:$0xff] %vm502_vm1, %v695_v34  ;;  %v343_v35 = vpop.f32.mrf.mxu0 }
  0xd3   : > { %v423_v36 = vpop.f32.mrf.mxu1  ;;  %503 = vst.msk [vmem:[%s840_s20] sm:$0xff] %vm502_vm1, %v343_v35 }
  0xd4   : > { %519 = vst.msk [vmem:[%s840_s20 + $0x80] sm:$0xff] %vm502_vm1, %v423_v36  ;;  %v674_v37 = vpop.f32.mrf.mxu0 }
  0xd5   : > { %v698_v38 = vpop.f32.mrf.mxu1  ;;  %506 = vst.msk [vmem:[%s840_s20 + $0x18] sm:$0xff] %vm502_vm1, %v674_v37 }
  0xd6   : > { %522 = vst.msk [vmem:[%s840_s20 + $0x98] sm:$0xff] %vm502_vm1, %v698_v38  ;;  %v353_v39 = vpop.f32.mrf.mxu0 }
  0xd7   : > { %v433_v40 = vpop.f32.mrf.mxu1  ;;  %505 = vst.msk [vmem:[%s840_s20 + $0x10] sm:$0xff] %vm502_vm1, %v353_v39 }
  0xd8   : > { %521 = vst.msk [vmem:[%s840_s20 + $0x90] sm:$0xff] %vm502_vm1, %v433_v40  ;;  %v677_v41 = vpop.f32.mrf.mxu0 }
  0xd9   : > { %v701_v42 = vpop.f32.mrf.mxu1  ;;  %508 = vst.msk [vmem:[%s840_s20 + $0x28] sm:$0xff] %vm502_vm1, %v677_v41 }
  0xda   : > { %524 = vst.msk [vmem:[%s840_s20 + $0xa8] sm:$0xff] %vm502_vm1, %v701_v42  ;;  %v363_v43 = vpop.f32.mrf.mxu0 }
  0xdb   : > { %v443_v44 = vpop.f32.mrf.mxu1  ;;  %507 = vst.msk [vmem:[%s840_s20 + $0x20] sm:$0xff] %vm502_vm1, %v363_v43 }
  0xdc   : > { %523 = vst.msk [vmem:[%s840_s20 + $0xa0] sm:$0xff] %vm502_vm1, %v443_v44  ;;  %v680_v45 = vpop.f32.mrf.mxu0 }
  0xdd   : > { %v704_v46 = vpop.f32.mrf.mxu1  ;;  %510 = vst.msk [vmem:[%s840_s20 + $0x38] sm:$0xff] %vm502_vm1, %v680_v45 }
  0xde   : > { %526 = vst.msk [vmem:[%s840_s20 + $0xb8] sm:$0xff] %vm502_vm1, %v704_v46  ;;  %v373_v47 = vpop.f32.mrf.mxu0 }
  0xdf   : > { %v453_v48 = vpop.f32.mrf.mxu1  ;;  %509 = vst.msk [vmem:[%s840_s20 + $0x30] sm:$0xff] %vm502_vm1, %v373_v47 }
  0xe0   : > { %525 = vst.msk [vmem:[%s840_s20 + $0xb0] sm:$0xff] %vm502_vm1, %v453_v48  ;;  %v683_v49 = vpop.f32.mrf.mxu0 }
  0xe1   : > { %v707_v50 = vpop.f32.mrf.mxu1  ;;  %512 = vst.msk [vmem:[%s840_s20 + $0x48] sm:$0xff] %vm502_vm1, %v683_v49 }
  0xe2   : > { %528 = vst.msk [vmem:[%s840_s20 + $0xc8] sm:$0xff] %vm502_vm1, %v707_v50  ;;  %v383_v51 = vpop.f32.mrf.mxu0 }
  0xe3   : > { %v463_v52 = vpop.f32.mrf.mxu1  ;;  %511 = vst.msk [vmem:[%s840_s20 + $0x40] sm:$0xff] %vm502_vm1, %v383_v51 }
  0xe4   : > { %527 = vst.msk [vmem:[%s840_s20 + $0xc0] sm:$0xff] %vm502_vm1, %v463_v52  ;;  %v686_v53 = vpop.f32.mrf.mxu0 }
  0xe5   : > { %v710_v54 = vpop.f32.mrf.mxu1  ;;  %514 = vst.msk [vmem:[%s840_s20 + $0x58] sm:$0xff] %vm502_vm1, %v686_v53 }
  0xe6   : > { %530 = vst.msk [vmem:[%s840_s20 + $0xd8] sm:$0xff] %vm502_vm1, %v710_v54  ;;  %v393_v55 = vpop.f32.mrf.mxu0 }
  0xe7   : > { %v473_v56 = vpop.f32.mrf.mxu1  ;;  %513 = vst.msk [vmem:[%s840_s20 + $0x50] sm:$0xff] %vm502_vm1, %v393_v55 }
  0xe8   : > { %529 = vst.msk [vmem:[%s840_s20 + $0xd0] sm:$0xff] %vm502_vm1, %v473_v56  ;;  %v689_v57 = vpop.f32.mrf.mxu0 }
  0xe9   : > { %v713_v58 = vpop.f32.mrf.mxu1  ;;  %516 = vst.msk [vmem:[%s840_s20 + $0x68] sm:$0xff] %vm502_vm1, %v689_v57 }
  0xea   : > { %532 = vst.msk [vmem:[%s840_s20 + $0xe8] sm:$0xff] %vm502_vm1, %v713_v58  ;;  %v403_v59 = vpop.f32.mrf.mxu0 }
  0xeb   : > { %v483_v60 = vpop.f32.mrf.mxu1  ;;  %515 = vst.msk [vmem:[%s840_s20 + $0x60] sm:$0xff] %vm502_vm1, %v403_v59 }
  0xec   : > { %531 = vst.msk [vmem:[%s840_s20 + $0xe0] sm:$0xff] %vm502_vm1, %v483_v60  ;;  %v692_v61 = vpop.f32.mrf.mxu0 }
  0xed   : > { %v716_v62 = vpop.f32.mrf.mxu1  ;;  %518 = vst.msk [vmem:[%s840_s20 + $0x78] sm:$0xff] %vm502_vm1, %v692_v61 }
  0xee   : > { %534 = vst.msk [vmem:[%s840_s20 + $0xf8] sm:$0xff] %vm502_vm1, %v716_v62  ;;  %v413_v63 = vpop.f32.mrf.mxu0 }
  0xef   : > { %v493_v0 = vpop.f32.mrf.mxu1  ;;  %517 = vst.msk [vmem:[%s840_s20 + $0x70] sm:$0xff] %vm502_vm1, %v413_v63 }
  0xf0   : > { %533 = vst.msk [vmem:[%s840_s20 + $0xf0] sm:$0xff] %vm502_vm1, %v493_v0 }
  0xf1 PF: > { %s12_s9 = sadd.s32 1, %s733_s9  }
  0xf2   : > { %p9_p4 = scmp.ge.s32.totalorder %s12_s9, 4  }
  0xf4   :  { %11 = sbr.rel (!%p9_p4) target bundleno = 1 (0x1), region = 58 }

// kernel: gcn_forward.6
= control target key start
LH: loop header
LB: loop body
LE: loop exit
PB: predicated region body
PF: predicated region fallthrough
CT: control target
= control target key end

     0   :  { %s1205_s9 = smov 0   ;;  %s1207_s10 = smov 0   ;;  %s1761_s0 = inlined_call_operand.vmem [shape: bf16[512,512], index: 0, kind: input, shape index: {}]   ;;  %s1762_s1 = inlined_call_operand.vmem [shape: f32[512,4], index: 1, kind: input, shape index: {}]   ;;  %s1763_s2 = inlined_call_operand.vmem [shape: f32[512,4], index: 2, kind: output, shape index: {}]  }
   0x1   :  { %s1209_s11 = smov 0  }
   0x2 LB: > { %s24_s12 = sadd.s32 1, %s1183_s10  ;;  %p1131_p0 = scmp.ge.s32.totalorder %s1187_s11, 1  ;;  %s1187_s11 = sphi %s1209_s11, %s12_s11   ;;  %s1183_s10 = sphi %s1207_s10, %s1765_s10   ;;  %s1179_s9 = sphi %s1205_s9, %s1764_s9  }
   0x3   : > { %p26_p1 = scmp.ge.s32.totalorder %s24_s12, 2  ;;  %p144_p2 = scmp.lt.s32.totalorder %s1187_s11, 3 }
   0x5   : > { %s1767_s12 = smov (%p26_p1, %s24_s12), 0  ;;  %p145_p3 = pnand %p1131_p0, %p144_p2 }
   0x6   : > { %s1132_s25 = sshll.u32 (!%p145_p3), %s1179_s9, 5 }
   0x7   : > { %148 = sbr.rel (%p145_p3) target bundleno = 400 (0x190), region = 28  ;;  %p178_p4 = scmp.lt.s32.totalorder (!%p145_p3), %s1132_s25, 63 }
   0xc   : > { %v476_v0 = vld [vmem:[%s1762_s1 + $0x78] sm:$0xff]  ;;  %v1189_v2 = vmov 0.0   ;;  %v475_v3 = vld [vmem:[%s1762_s1 + $0x70] sm:$0xff]  ;;  %v474_v5 = vld [vmem:[%s1762_s1 + $0x68] sm:$0xff]  ;;  %s1769_s25 = smov (!%p178_p4, %s1132_s25), 63  ;;  %vm204_vm0 = vcmask 31744  }
   0xd   : > { %v508_v1 = vld [vmem:[%s1762_s1 + $0x178] sm:$0xff]  ;;  %525 = vmatprep.subr.mxu0 %v1189_v2  ;;  %750 = vmatprep.subr.mxu1 %v1189_v2  ;;  %v507_v4 = vld [vmem:[%s1762_s1 + $0x170] sm:$0xff]  ;;  %v506_v6 = vld [vmem:[%s1762_s1 + $0x168] sm:$0xff]  ;;  %s1139_s26 = sshll.u32 %s1769_s25, 4 }
   0xe   : > { %526 = vmatpush1.msra.mxu0 %v476_v0  ;;  %751 = vmatpush1.msra.mxu1 %v508_v1  ;;  %v473_v7 = vld [vmem:[%s1762_s1 + $0x60] sm:$0xff]  ;;  %v472_v9 = vld [vmem:[%s1762_s1 + $0x58] sm:$0xff]  ;;  %v471_v11 = vld [vmem:[%s1762_s1 + $0x50] sm:$0xff]  ;;  %s1454_s4 = scalar_lea.vmem %s1761_s0, %s1139_s26  ;;  %s1136_s26 = sshll.u32 %s1769_s25, 3 }
   0xf   : > { %527 = vmatprep.subr.mxu0 %v1189_v2  ;;  %752 = vmatprep.subr.mxu1 %v1189_v2  ;;  %v505_v8 = vld [vmem:[%s1762_s1 + $0x160] sm:$0xff]  ;;  %v504_v10 = vld [vmem:[%s1762_s1 + $0x158] sm:$0xff]  ;;  %v503_v12 = vld [vmem:[%s1762_s1 + $0x150] sm:$0xff]  ;;  %s1528_s29 = scalar_lea.vmem %s1763_s2, %s1136_s26 }
  0x10   : > { %528 = vmatpush1.msra.mxu0 %v475_v3  ;;  %753 = vmatpush1.msra.mxu1 %v507_v4  ;;  %v470_v13 = vld [vmem:[%s1762_s1 + $0x48] sm:$0xff]  ;;  %v469_v15 = vld [vmem:[%s1762_s1 + $0x40] sm:$0xff]  ;;  %v468_v17 = vld [vmem:[%s1762_s1 + $0x38] sm:$0xff]  ;;  %205 = vst.msk [vmem:[%s1528_s29] sm:$0xff] %vm204_vm0, %v1189_v2 }
  0x11   : > { %529 = vmatprep.subr.mxu0 %v1189_v2  ;;  %754 = vmatprep.subr.mxu1 %v1189_v2  ;;  %v502_v14 = vld [vmem:[%s1762_s1 + $0x148] sm:$0xff]  ;;  %v501_v16 = vld [vmem:[%s1762_s1 + $0x140] sm:$0xff]  ;;  %v500_v18 = vld [vmem:[%s1762_s1 + $0x138] sm:$0xff]  ;;  %206 = vst.msk [vmem:[%s1528_s29 + $0x8] sm:$0xff] %vm204_vm0, %v1189_v2 }
  0x12   : > { %530 = vmatpush1.msra.mxu0 %v474_v5  ;;  %755 = vmatpush1.msra.mxu1 %v506_v6  ;;  %v467_v19 = vld [vmem:[%s1762_s1 + $0x30] sm:$0xff]  ;;  %v466_v21 = vld [vmem:[%s1762_s1 + $0x28] sm:$0xff]  ;;  %v465_v23 = vld [vmem:[%s1762_s1 + $0x20] sm:$0xff]  ;;  %207 = vst.msk [vmem:[%s1528_s29 + $0x10] sm:$0xff] %vm204_vm0, %v1189_v2 }
  0x13   : > { %531 = vmatprep.subr.mxu0 %v1189_v2  ;;  %756 = vmatprep.subr.mxu1 %v1189_v2  ;;  %v499_v20 = vld [vmem:[%s1762_s1 + $0x130] sm:$0xff]  ;;  %v498_v22 = vld [vmem:[%s1762_s1 + $0x128] sm:$0xff]  ;;  %v497_v24 = vld [vmem:[%s1762_s1 + $0x120] sm:$0xff]  ;;  %208 = vst.msk [vmem:[%s1528_s29 + $0x18] sm:$0xff] %vm204_vm0, %v1189_v2 }
  0x14   : > { %532 = vmatpush1.msra.mxu0 %v473_v7  ;;  %757 = vmatpush1.msra.mxu1 %v505_v8  ;;  %v464_v25 = vld [vmem:[%s1762_s1 + $0x18] sm:$0xff]  ;;  %v463_v27 = vld [vmem:[%s1762_s1 + $0x10] sm:$0xff]  ;;  %v462_v29 = vld [vmem:[%s1762_s1 + $0x8] sm:$0xff]  ;;  %209 = vst.msk [vmem:[%s1528_s29 + $0x20] sm:$0xff] %vm204_vm0, %v1189_v2 }
  0x15   : > { %533 = vmatprep.subr.mxu0 %v1189_v2  ;;  %758 = vmatprep.subr.mxu1 %v1189_v2  ;;  %v496_v26 = vld [vmem:[%s1762_s1 + $0x118] sm:$0xff]  ;;  %v495_v28 = vld [vmem:[%s1762_s1 + $0x110] sm:$0xff]  ;;  %v494_v30 = vld [vmem:[%s1762_s1 + $0x108] sm:$0xff]  ;;  %210 = vst.msk [vmem:[%s1528_s29 + $0x28] sm:$0xff] %vm204_vm0, %v1189_v2 }
  0x16   : > { %534 = vmatpush1.msra.mxu0 %v472_v9  ;;  %759 = vmatpush1.msra.mxu1 %v504_v10  ;;  %v461_v31 = vld [vmem:[%s1762_s1] sm:$0xff]  ;;  %v492_v33 = vld [vmem:[%s1762_s1 + $0xf8] sm:$0xff]  ;;  %v491_v35 = vld [vmem:[%s1762_s1 + $0xf0] sm:$0xff]  ;;  %211 = vst.msk [vmem:[%s1528_s29 + $0x30] sm:$0xff] %vm204_vm0, %v1189_v2 }
  0x17   : > { %535 = vmatprep.subr.mxu0 %v1189_v2  ;;  %760 = vmatprep.subr.mxu1 %v1189_v2  ;;  %v493_v32 = vld [vmem:[%s1762_s1 + $0x100] sm:$0xff]  ;;  %v524_v34 = vld [vmem:[%s1762_s1 + $0x1f8] sm:$0xff]  ;;  %v523_v36 = vld [vmem:[%s1762_s1 + $0x1f0] sm:$0xff]  ;;  %212 = vst.msk [vmem:[%s1528_s29 + $0x38] sm:$0xff] %vm204_vm0, %v1189_v2 }
  0x18   : > { %536 = vmatpush1.msra.mxu0 %v471_v11  ;;  %761 = vmatpush1.msra.mxu1 %v503_v12  ;;  %v490_v37 = vld [vmem:[%s1762_s1 + $0xe8] sm:$0xff]  ;;  %v489_v39 = vld [vmem:[%s1762_s1 + $0xe0] sm:$0xff]  ;;  %v488_v41 = vld [vmem:[%s1762_s1 + $0xd8] sm:$0xff]  ;;  %213 = vst.msk [vmem:[%s1528_s29 + $0x40] sm:$0xff] %vm204_vm0, %v1189_v2 }
  0x19   : > { %537 = vmatprep.subr.mxu0 %v1189_v2  ;;  %762 = vmatprep.subr.mxu1 %v1189_v2  ;;  %v522_v38 = vld [vmem:[%s1762_s1 + $0x1e8] sm:$0xff]  ;;  %v521_v40 = vld [vmem:[%s1762_s1 + $0x1e0] sm:$0xff]  ;;  %v520_v42 = vld [vmem:[%s1762_s1 + $0x1d8] sm:$0xff]  ;;  %214 = vst.msk [vmem:[%s1528_s29 + $0x48] sm:$0xff] %vm204_vm0, %v1189_v2 }
  0x1a   : > { %538 = vmatpush1.msra.mxu0 %v470_v13  ;;  %763 = vmatpush1.msra.mxu1 %v502_v14  ;;  %v487_v43 = vld [vmem:[%s1762_s1 + $0xd0] sm:$0xff]  ;;  %v486_v45 = vld [vmem:[%s1762_s1 + $0xc8] sm:$0xff]  ;;  %v485_v47 = vld [vmem:[%s1762_s1 + $0xc0] sm:$0xff]  ;;  %215 = vst.msk [vmem:[%s1528_s29 + $0x50] sm:$0xff] %vm204_vm0, %v1189_v2 }
  0x1b   : > { %539 = vmatprep.subr.mxu0 %v1189_v2  ;;  %764 = vmatprep.subr.mxu1 %v1189_v2  ;;  %v519_v44 = vld [vmem:[%s1762_s1 + $0x1d0] sm:$0xff]  ;;  %v518_v46 = vld [vmem:[%s1762_s1 + $0x1c8] sm:$0xff]  ;;  %v517_v48 = vld [vmem:[%s1762_s1 + $0x1c0] sm:$0xff]  ;;  %216 = vst.msk [vmem:[%s1528_s29 + $0x58] sm:$0xff] %vm204_vm0, %v1189_v2 }
  0x1c   : > { %540 = vmatpush1.msra.mxu0 %v469_v15  ;;  %765 = vmatpush1.msra.mxu1 %v501_v16  ;;  %v484_v49 = vld [vmem:[%s1762_s1 + $0xb8] sm:$0xff]  ;;  %v483_v51 = vld [vmem:[%s1762_s1 + $0xb0] sm:$0xff]  ;;  %v482_v53 = vld [vmem:[%s1762_s1 + $0xa8] sm:$0xff]  ;;  %217 = vst.msk [vmem:[%s1528_s29 + $0x60] sm:$0xff] %vm204_vm0, %v1189_v2 }
  0x1d   : > { %541 = vmatprep.subr.mxu0 %v1189_v2  ;;  %766 = vmatprep.subr.mxu1 %v1189_v2  ;;  %v516_v50 = vld [vmem:[%s1762_s1 + $0x1b8] sm:$0xff]  ;;  %v515_v52 = vld [vmem:[%s1762_s1 + $0x1b0] sm:$0xff]  ;;  %v514_v54 = vld [vmem:[%s1762_s1 + $0x1a8] sm:$0xff]  ;;  %218 = vst.msk [vmem:[%s1528_s29 + $0x68] sm:$0xff] %vm204_vm0, %v1189_v2 }
  0x1e   : > { %542 = vmatpush1.msra.mxu0 %v468_v17  ;;  %767 = vmatpush1.msra.mxu1 %v500_v18  ;;  %v481_v55 = vld [vmem:[%s1762_s1 + $0xa0] sm:$0xff]  ;;  %v480_v57 = vld [vmem:[%s1762_s1 + $0x98] sm:$0xff]  ;;  %v479_v59 = vld [vmem:[%s1762_s1 + $0x90] sm:$0xff]  ;;  %219 = vst.msk [vmem:[%s1528_s29 + $0x70] sm:$0xff] %vm204_vm0, %v1189_v2 }
  0x1f   : > { %543 = vmatprep.subr.mxu0 %v1189_v2  ;;  %768 = vmatprep.subr.mxu1 %v1189_v2  ;;  %v513_v56 = vld [vmem:[%s1762_s1 + $0x1a0] sm:$0xff]  ;;  %v512_v58 = vld [vmem:[%s1762_s1 + $0x198] sm:$0xff]  ;;  %v511_v60 = vld [vmem:[%s1762_s1 + $0x190] sm:$0xff]  ;;  %220 = vst.msk [vmem:[%s1528_s29 + $0x78] sm:$0xff] %vm204_vm0, %v1189_v2 }
  0x20   : > { %544 = vmatpush1.msra.mxu0 %v467_v19  ;;  %769 = vmatpush1.msra.mxu1 %v499_v20  ;;  %v237_v61 = vld [vmem:[%s1454_s4] sm:$0xff]  ;;  %v238_v62 = vld [vmem:[%s1454_s4 + $0x8] sm:$0xff]  ;;  %v239_v3 = vld [vmem:[%s1454_s4 + $0x10] sm:$0xff]  ;;  %221 = vst.msk [vmem:[%s1528_s29 + $0x80] sm:$0xff] %vm204_vm0, %v1189_v2 }
  0x21   : > { %545 = vmatprep.subr.mxu0 %v1189_v2  ;;  %770 = vmatprep.subr.mxu1 %v1189_v2  ;;  %v478_v63 = vld [vmem:[%s1762_s1 + $0x88] sm:$0xff]  ;;  %v302_v1 = vunpack.c.h.bf16 %v237_v61  ;;  %v240_v4 = vld [vmem:[%s1454_s4 + $0x18] sm:$0xff]  ;;  %v477_v5 = vld [vmem:[%s1762_s1 + $0x80] sm:$0xff]  ;;  %v304_v6 = vunpack.c.h.bf16 %v238_v62  ;;  %v301_v7 = vunpack.c.l.bf16 %v237_v61  ;;  %v303_v9 = vunpack.c.l.bf16 %v238_v62  ;;  %222 = vst.msk [vmem:[%s1528_s29 + $0x88] sm:$0xff] %vm204_vm0, %v1189_v2 }
  0x22   : > { %546 = vmatpush1.msra.mxu0 %v466_v21  ;;  %771 = vmatpush1.msra.mxu1 %v498_v22  ;;  %v510_v0 = vld [vmem:[%s1762_s1 + $0x188] sm:$0xff]  ;;  %v509_v8 = vld [vmem:[%s1762_s1 + $0x180] sm:$0xff]  ;;  %v306_v10 = vunpack.c.h.bf16 %v239_v3  ;;  %v308_v11 = vunpack.c.h.bf16 %v240_v4  ;;  %v305_v14 = vunpack.c.l.bf16 %v239_v3  ;;  %v307_v15 = vunpack.c.l.bf16 %v240_v4  ;;  %v243_v18 = vld [vmem:[%s1454_s4 + $0x30] sm:$0xff]  ;;  %223 = vst.msk [vmem:[%s1528_s29 + $0x90] sm:$0xff] %vm204_vm0, %v1189_v2 }
  0x23   : > { %547 = vmatprep.subr.mxu0 %v1189_v2  ;;  %772 = vmatprep.subr.mxu1 %v1189_v2  ;;  %v241_v12 = vld [vmem:[%s1454_s4 + $0x20] sm:$0xff]  ;;  %v242_v13 = vld [vmem:[%s1454_s4 + $0x28] sm:$0xff]  ;;  %v244_v19 = vld [vmem:[%s1454_s4 + $0x38] sm:$0xff]  ;;  %v314_v22 = vunpack.c.h.bf16 %v243_v18  ;;  %224 = vst.msk [vmem:[%s1528_s29 + $0x98] sm:$0xff] %vm204_vm0, %v1189_v2 }
  0x24   : > { %548 = vmatpush1.msra.mxu0 %v465_v23  ;;  %773 = vmatpush1.msra.mxu1 %v497_v24  ;;  %v310_v16 = vunpack.c.h.bf16 %v241_v12  ;;  %v312_v17 = vunpack.c.h.bf16 %v242_v13  ;;  %v309_v20 = vunpack.c.l.bf16 %v241_v12  ;;  %v311_v21 = vunpack.c.l.bf16 %v242_v13  ;;  %v245_v24 = vld [vmem:[%s1454_s4 + $0x40] sm:$0xff]  ;;  %v258_v61 = vld [vmem:[%s1454_s4 + $0xa8] sm:$0xff]  ;;  %v259_v3 = vld [vmem:[%s1454_s4 + $0xb0] sm:$0xff]  ;;  %225 = vst.msk [vmem:[%s1528_s29 + $0xa0] sm:$0xff] %vm204_vm0, %v1189_v2 }
  0x25   : > { %549 = vmatprep.subr.mxu0 %v1189_v2  ;;  %774 = vmatprep.subr.mxu1 %v1189_v2  ;;  %v316_v23 = vunpack.c.h.bf16 %v244_v19  ;;  %v260_v4 = vld [vmem:[%s1454_s4 + $0xb8] sm:$0xff]  ;;  %226 = vst.msk [vmem:[%s1528_s29 + $0xa8] sm:$0xff] %vm204_vm0, %v1189_v2  ;;  %227 = vst.msk [vmem:[%s1528_s29 + $0xb0] sm:$0xff] %vm204_vm0, %v1189_v2 }
  0x26   : > { %550 = vmatpush1.msra.mxu0 %v464_v25  ;;  %775 = vmatpush1.msra.mxu1 %v496_v26  ;;  %v246_v25 = vld [vmem:[%s1454_s4 + $0x48] sm:$0xff]  ;;  %v313_v26 = vunpack.c.l.bf16 %v243_v18  ;;  %v347_v12 = vunpack.c.l.bf16 %v260_v4  ;;  %228 = vst.msk [vmem:[%s1528_s29 + $0xb8] sm:$0xff] %vm204_vm0, %v1189_v2  ;;  %229 = vst.msk [vmem:[%s1528_s29 + $0xc0] sm:$0xff] %vm204_vm0, %v1189_v2 }
  0x27   : > { %551 = vmatprep.subr.mxu0 %v1189_v2  ;;  %776 = vmatprep.subr.mxu1 %v1189_v2  ;;  %230 = vst.msk [vmem:[%s1528_s29 + $0xc8] sm:$0xff] %vm204_vm0, %v1189_v2  ;;  %231 = vst.msk [vmem:[%s1528_s29 + $0xd0] sm:$0xff] %vm204_vm0, %v1189_v2 }
  0x28   : > { %552 = vmatpush1.msra.mxu0 %v463_v27  ;;  %777 = vmatpush1.msra.mxu1 %v495_v28  ;;  %v315_v27 = vunpack.c.l.bf16 %v244_v19  ;;  %v318_v28 = vunpack.c.h.bf16 %v245_v24  ;;  %232 = vst.msk [vmem:[%s1528_s29 + $0xd8] sm:$0xff] %vm204_vm0, %v1189_v2  ;;  %233 = vst.msk [vmem:[%s1528_s29 + $0xe0] sm:$0xff] %vm204_vm0, %v1189_v2 }
  0x29   : > { %553 = vmatprep.subr.mxu0 %v1189_v2  ;;  %778 = vmatprep.subr.mxu1 %v1189_v2  ;;  %234 = vst.msk [vmem:[%s1528_s29 + $0xe8] sm:$0xff] %vm204_vm0, %v1189_v2  ;;  %235 = vst.msk [vmem:[%s1528_s29 + $0xf0] sm:$0xff] %vm204_vm0, %v1189_v2 }
  0x2a   : > { %554 = vmatpush1.msra.mxu0 %v462_v29  ;;  %779 = vmatpush1.msra.mxu1 %v494_v30  ;;  %v320_v29 = vunpack.c.h.bf16 %v246_v25  ;;  %v247_v30 = vld [vmem:[%s1454_s4 + $0x50] sm:$0xff]  ;;  %236 = vst.msk [vmem:[%s1528_s29 + $0xf8] sm:$0xff] %vm204_vm0, %v1189_v2 }
  0x2b   : > { %555 = vmatprep.subr.mxu0 %v1189_v2  ;;  %780 = vmatprep.subr.mxu1 %v1189_v2 }
  0x2c   : > { %556 = vmatpush1.msra.mxu0 %v461_v31  ;;  %781 = vmatpush1.msra.mxu1 %v493_v32  ;;  %v248_v31 = vld [vmem:[%s1454_s4 + $0x58] sm:$0xff]  ;;  %v317_v32 = vunpack.c.l.bf16 %v245_v24 }
  0x2d   : > { %557 = vmatprep.subr.mxu0 %v1189_v2  ;;  %782 = vmatprep.subr.mxu1 %v1189_v2 }
  0x2e   : > { %558 = vmatpush2.msra.mxu0 %v492_v33  ;;  %783 = vmatpush2.msra.mxu1 %v524_v34  ;;  %v319_v33 = vunpack.c.l.bf16 %v246_v25  ;;  %v322_v34 = vunpack.c.h.bf16 %v247_v30 }
  0x2f   : > { %559 = vmatprep.subr.mxu0 %v1189_v2  ;;  %784 = vmatprep.subr.mxu1 %v1189_v2 }
  0x30   : > { %560 = vmatpush2.msra.mxu0 %v491_v35  ;;  %785 = vmatpush2.msra.mxu1 %v523_v36  ;;  %v324_v35 = vunpack.c.h.bf16 %v248_v31  ;;  %v249_v36 = vld [vmem:[%s1454_s4 + $0x60] sm:$0xff] }
  0x31   : > { %561 = vmatprep.subr.mxu0 %v1189_v2  ;;  %786 = vmatprep.subr.mxu1 %v1189_v2 }
  0x32   : > { %562 = vmatpush2.msra.mxu0 %v490_v37  ;;  %787 = vmatpush2.msra.mxu1 %v522_v38  ;;  %v250_v37 = vld [vmem:[%s1454_s4 + $0x68] sm:$0xff]  ;;  %v321_v38 = vunpack.c.l.bf16 %v247_v30 }
  0x33   : > { %563 = vmatprep.subr.mxu0 %v1189_v2  ;;  %788 = vmatprep.subr.mxu1 %v1189_v2 }
  0x34   : > { %564 = vmatpush2.msra.mxu0 %v489_v39  ;;  %789 = vmatpush2.msra.mxu1 %v521_v40  ;;  %v323_v39 = vunpack.c.l.bf16 %v248_v31  ;;  %v326_v40 = vunpack.c.h.bf16 %v249_v36 }
  0x35   : > { %565 = vmatprep.subr.mxu0 %v1189_v2  ;;  %790 = vmatprep.subr.mxu1 %v1189_v2 }
  0x36   : > { %566 = vmatpush2.msra.mxu0 %v488_v41  ;;  %791 = vmatpush2.msra.mxu1 %v520_v42  ;;  %v328_v41 = vunpack.c.h.bf16 %v250_v37  ;;  %v251_v42 = vld [vmem:[%s1454_s4 + $0x70] sm:$0xff] }
  0x37   : > { %567 = vmatprep.subr.mxu0 %v1189_v2  ;;  %792 = vmatprep.subr.mxu1 %v1189_v2 }
  0x38   : > { %568 = vmatpush2.msra.mxu0 %v487_v43  ;;  %793 = vmatpush2.msra.mxu1 %v519_v44  ;;  %v252_v43 = vld [vmem:[%s1454_s4 + $0x78] sm:$0xff]  ;;  %v325_v44 = vunpack.c.l.bf16 %v249_v36 }
  0x39   : > { %569 = vmatprep.subr.mxu0 %v1189_v2  ;;  %794 = vmatprep.subr.mxu1 %v1189_v2 }
  0x3a   : > { %570 = vmatpush2.msra.mxu0 %v486_v45  ;;  %795 = vmatpush2.msra.mxu1 %v518_v46  ;;  %v327_v45 = vunpack.c.l.bf16 %v250_v37  ;;  %v330_v46 = vunpack.c.h.bf16 %v251_v42 }
  0x3b   : > { %571 = vmatprep.subr.mxu0 %v1189_v2  ;;  %796 = vmatprep.subr.mxu1 %v1189_v2 }
  0x3c   : > { %572 = vmatpush2.msra.mxu0 %v485_v47  ;;  %797 = vmatpush2.msra.mxu1 %v517_v48  ;;  %v332_v47 = vunpack.c.h.bf16 %v252_v43  ;;  %v253_v48 = vld [vmem:[%s1454_s4 + $0x80] sm:$0xff] }
  0x3d   : > { %573 = vmatprep.subr.mxu0 %v1189_v2  ;;  %798 = vmatprep.subr.mxu1 %v1189_v2 }
  0x3e   : > { %574 = vmatpush2.msra.mxu0 %v484_v49  ;;  %799 = vmatpush2.msra.mxu1 %v516_v50  ;;  %v254_v49 = vld [vmem:[%s1454_s4 + $0x88] sm:$0xff]  ;;  %v329_v50 = vunpack.c.l.bf16 %v251_v42 }
  0x3f   : > { %575 = vmatprep.subr.mxu0 %v1189_v2  ;;  %800 = vmatprep.subr.mxu1 %v1189_v2 }
  0x40   : > { %576 = vmatpush2.msra.mxu0 %v483_v51  ;;  %801 = vmatpush2.msra.mxu1 %v515_v52  ;;  %v331_v51 = vunpack.c.l.bf16 %v252_v43  ;;  %v334_v52 = vunpack.c.h.bf16 %v253_v48 }
  0x41   : > { %577 = vmatprep.subr.mxu0 %v1189_v2  ;;  %802 = vmatprep.subr.mxu1 %v1189_v2 }
  0x42   : > { %578 = vmatpush2.msra.mxu0 %v482_v53  ;;  %803 = vmatpush2.msra.mxu1 %v514_v54  ;;  %v336_v53 = vunpack.c.h.bf16 %v254_v49  ;;  %v255_v54 = vld [vmem:[%s1454_s4 + $0x90] sm:$0xff] }
  0x43   : > { %579 = vmatprep.subr.mxu0 %v1189_v2  ;;  %804 = vmatprep.subr.mxu1 %v1189_v2  ;;  %v337_v62 = vunpack.c.l.bf16 %v255_v54 }
  0x44   : > { %580 = vmatpush2.msra.mxu0 %v481_v55  ;;  %805 = vmatpush2.msra.mxu1 %v513_v56  ;;  %v256_v55 = vld [vmem:[%s1454_s4 + $0x98] sm:$0xff]  ;;  %v333_v56 = vunpack.c.l.bf16 %v253_v48 }
  0x45   : > { %581 = vmatprep.subr.mxu0 %v1189_v2  ;;  %806 = vmatprep.subr.mxu1 %v1189_v2 }
  0x46   : > { %582 = vmatpush2.msra.mxu0 %v480_v57  ;;  %807 = vmatpush2.msra.mxu1 %v512_v58  ;;  %v335_v57 = vunpack.c.l.bf16 %v254_v49  ;;  %v338_v58 = vunpack.c.h.bf16 %v255_v54 }
  0x47   : > { %583 = vmatprep.subr.mxu0 %v1189_v2  ;;  %808 = vmatprep.subr.mxu1 %v1189_v2 }
  0x48   : > { %584 = vmatpush2.msra.mxu0 %v479_v59  ;;  %809 = vmatpush2.msra.mxu1 %v511_v60  ;;  %v340_v59 = vunpack.c.h.bf16 %v256_v55  ;;  %v257_v60 = vld [vmem:[%s1454_s4 + $0xa0] sm:$0xff] }
  0x49   : > { %585 = vmatprep.subr.mxu0 %v1189_v2  ;;  %810 = vmatprep.subr.mxu1 %v1189_v2 }
  0x4a   : > { %586 = vmatpush2.msra.mxu0 %v478_v63  ;;  %811 = vmatpush2.msra.mxu1 %v510_v0  ;;  %v339_v63 = vunpack.c.l.bf16 %v256_v55  ;;  %v342_v0 = vunpack.c.h.bf16 %v257_v60 }
  0x4b   : > { %587 = vmatprep.subr.mxu0 %v1189_v2  ;;  %812 = vmatprep.subr.mxu1 %v1189_v2 }
  0x4c   : > { %588 = vmatpush2.msra.mxu0 %v477_v5  ;;  %589 = vmatprep.mubr.f32.mxu0 %v302_v1  ;;  %v344_v1 = vunpack.c.h.bf16 %v258_v61  ;;  %v341_v5 = vunpack.c.l.bf16 %v257_v60 }
  0x4d   : > { %813 = vmatpush2.msra.mxu1 %v509_v8  ;;  %814 = vmatprep.mubr.f32.mxu1 %v304_v6  ;;  %v343_v6 = vunpack.c.l.bf16 %v258_v61  ;;  %v348_v8 = vunpack.c.h.bf16 %v260_v4 }
  0x4e   : > { %590 = vmatmul.mubr.f32.vlgmr.msra.gmra.mxu0 %v301_v7  ;;  %815 = vmatmul.mubr.f32.vlgmr.msra.gmra.mxu1 %v303_v9  ;;  %v346_v7 = vunpack.c.h.bf16 %v259_v3  ;;  %v261_v9 = vld [vmem:[%s1454_s4 + $0xc0] sm:$0xff] }
  0x4f   : > { %594 = vmatprep.mubr.f32.mxu0 %v306_v10  ;;  %819 = vmatprep.mubr.f32.mxu1 %v308_v11  ;;  %v262_v10 = vld [vmem:[%s1454_s4 + $0xc8] sm:$0xff]  ;;  %v345_v11 = vunpack.c.l.bf16 %v259_v3  ;;  %v350_v13 = vunpack.c.h.bf16 %v261_v9 }
  0x50   : > { %v351_v18 = vunpack.c.l.bf16 %v262_v10 }
  0x52   : > { %595 = vmatmul.mubr.f32.gmra.mxu0 %v305_v14  ;;  %820 = vmatmul.mubr.f32.gmra.mxu1 %v307_v15  ;;  %v352_v14 = vunpack.c.h.bf16 %v262_v10  ;;  %v263_v15 = vld [vmem:[%s1454_s4 + $0xd0] sm:$0xff] }
  0x53   : > { %599 = vmatprep.mubr.f32.mxu0 %v310_v16  ;;  %824 = vmatprep.mubr.f32.mxu1 %v312_v17  ;;  %v264_v16 = vld [vmem:[%s1454_s4 + $0xd8] sm:$0xff]  ;;  %v349_v17 = vunpack.c.l.bf16 %v261_v9  ;;  %v354_v19 = vunpack.c.h.bf16 %v263_v15 }
  0x54   : > { %v355_v24 = vunpack.c.l.bf16 %v264_v16 }
  0x56   : > { %600 = vmatmul.mubr.f32.gmra.mxu0 %v309_v20  ;;  %825 = vmatmul.mubr.f32.gmra.mxu1 %v311_v21  ;;  %v356_v20 = vunpack.c.h.bf16 %v264_v16  ;;  %v265_v21 = vld [vmem:[%s1454_s4 + $0xe0] sm:$0xff] }
  0x57   : > { %604 = vmatprep.mubr.f32.mxu0 %v314_v22  ;;  %829 = vmatprep.mubr.f32.mxu1 %v316_v23  ;;  %v266_v22 = vld [vmem:[%s1454_s4 + $0xe8] sm:$0xff]  ;;  %v353_v23 = vunpack.c.l.bf16 %v263_v15  ;;  %v358_v25 = vunpack.c.h.bf16 %v265_v21 }
  0x58   : > { %v359_v30 = vunpack.c.l.bf16 %v266_v22 }
  0x5a   : > { %605 = vmatmul.mubr.f32.gmra.mxu0 %v313_v26  ;;  %830 = vmatmul.mubr.f32.gmra.mxu1 %v315_v27  ;;  %v360_v26 = vunpack.c.h.bf16 %v266_v22  ;;  %v267_v27 = vld [vmem:[%s1454_s4 + $0xf0] sm:$0xff] }
  0x5b   : > { %609 = vmatprep.mubr.f32.mxu0 %v318_v28  ;;  %834 = vmatprep.mubr.f32.mxu1 %v320_v29  ;;  %v268_v28 = vld [vmem:[%s1454_s4 + $0xf8] sm:$0xff]  ;;  %v357_v29 = vunpack.c.l.bf16 %v265_v21  ;;  %v362_v31 = vunpack.c.h.bf16 %v267_v27 }
  0x5c   : > { %v363_v36 = vunpack.c.l.bf16 %v268_v28 }
  0x5e   : > { %610 = vmatmul.mubr.f32.gmra.mxu0 %v317_v32  ;;  %835 = vmatmul.mubr.f32.gmra.mxu1 %v319_v33  ;;  %v364_v32 = vunpack.c.h.bf16 %v268_v28  ;;  %v269_v33 = vld [vmem:[%s1454_s4 + $0x100] sm:$0xff] }
  0x5f   : > { %614 = vmatprep.mubr.f32.mxu0 %v322_v34  ;;  %839 = vmatprep.mubr.f32.mxu1 %v324_v35  ;;  %v270_v34 = vld [vmem:[%s1454_s4 + $0x108] sm:$0xff]  ;;  %v361_v35 = vunpack.c.l.bf16 %v267_v27  ;;  %v366_v37 = vunpack.c.h.bf16 %v269_v33 }
  0x60   : > { %v367_v42 = vunpack.c.l.bf16 %v270_v34 }
  0x62   : > { %615 = vmatmul.mubr.f32.gmra.mxu0 %v321_v38  ;;  %840 = vmatmul.mubr.f32.gmra.mxu1 %v323_v39  ;;  %v368_v38 = vunpack.c.h.bf16 %v270_v34  ;;  %v271_v39 = vld [vmem:[%s1454_s4 + $0x110] sm:$0xff] }
  0x63   : > { %619 = vmatprep.mubr.f32.mxu0 %v326_v40  ;;  %844 = vmatprep.mubr.f32.mxu1 %v328_v41  ;;  %v272_v40 = vld [vmem:[%s1454_s4 + $0x118] sm:$0xff]  ;;  %v365_v41 = vunpack.c.l.bf16 %v269_v33  ;;  %v370_v43 = vunpack.c.h.bf16 %v271_v39 }
  0x64   : > { %v371_v48 = vunpack.c.l.bf16 %v272_v40 }
  0x66   : > { %620 = vmatmul.mubr.f32.gmra.mxu0 %v325_v44  ;;  %845 = vmatmul.mubr.f32.gmra.mxu1 %v327_v45  ;;  %v372_v44 = vunpack.c.h.bf16 %v272_v40  ;;  %v273_v45 = vld [vmem:[%s1454_s4 + $0x120] sm:$0xff] }
  0x67   : > { %624 = vmatprep.mubr.f32.mxu0 %v330_v46  ;;  %849 = vmatprep.mubr.f32.mxu1 %v332_v47  ;;  %v274_v46 = vld [vmem:[%s1454_s4 + $0x128] sm:$0xff]  ;;  %v369_v47 = vunpack.c.l.bf16 %v271_v39  ;;  %v374_v2 = vunpack.c.h.bf16 %v273_v45 }
  0x68   : > { %v376_v49 = vunpack.c.h.bf16 %v274_v46 }
  0x6a   : > { %625 = vmatmul.mubr.f32.gmra.mxu0 %v329_v50  ;;  %850 = vmatmul.mubr.f32.gmra.mxu1 %v331_v51  ;;  %v275_v50 = vld [vmem:[%s1454_s4 + $0x130] sm:$0xff]  ;;  %v276_v51 = vld [vmem:[%s1454_s4 + $0x138] sm:$0xff] }
  0x6b   : > { %629 = vmatprep.mubr.f32.mxu0 %v334_v52  ;;  %854 = vmatprep.mubr.f32.mxu1 %v336_v53  ;;  %v373_v52 = vunpack.c.l.bf16 %v273_v45  ;;  %v375_v53 = vunpack.c.l.bf16 %v274_v46  ;;  %v378_v54 = vunpack.c.h.bf16 %v275_v50  ;;  %v380_v55 = vunpack.c.h.bf16 %v276_v51 }
  0x6e   : > { %630 = vmatmul.mubr.f32.gmra.mxu0 %v333_v56  ;;  %855 = vmatmul.mubr.f32.gmra.mxu1 %v335_v57  ;;  %v277_v56 = vld [vmem:[%s1454_s4 + $0x140] sm:$0xff]  ;;  %v278_v57 = vld [vmem:[%s1454_s4 + $0x148] sm:$0xff] }
  0x6f   : > { %634 = vmatprep.mubr.f32.mxu0 %v338_v58  ;;  %859 = vmatprep.mubr.f32.mxu1 %v340_v59  ;;  %v377_v58 = vunpack.c.l.bf16 %v275_v50  ;;  %v379_v59 = vunpack.c.l.bf16 %v276_v51  ;;  %v382_v60 = vunpack.c.h.bf16 %v277_v56  ;;  %v384_v61 = vunpack.c.h.bf16 %v278_v57 }
  0x72   : > { %635 = vmatmul.mubr.f32.gmra.mxu0 %v337_v62  ;;  %860 = vmatmul.mubr.f32.gmra.mxu1 %v339_v63  ;;  %v279_v62 = vld [vmem:[%s1454_s4 + $0x150] sm:$0xff]  ;;  %v280_v63 = vld [vmem:[%s1454_s4 + $0x158] sm:$0xff] }
  0x73   : > { %639 = vmatprep.mubr.f32.mxu0 %v342_v0  ;;  %864 = vmatprep.mubr.f32.mxu1 %v344_v1  ;;  %v381_v0 = vunpack.c.l.bf16 %v277_v56  ;;  %v383_v1 = vunpack.c.l.bf16 %v278_v57  ;;  %v386_v3 = vunpack.c.h.bf16 %v279_v62  ;;  %v388_v4 = vunpack.c.h.bf16 %v280_v63 }
  0x76   : > { %640 = vmatmul.mubr.f32.gmra.mxu0 %v341_v5  ;;  %865 = vmatmul.mubr.f32.gmra.mxu1 %v343_v6  ;;  %v281_v5 = vld [vmem:[%s1454_s4 + $0x160] sm:$0xff]  ;;  %v282_v6 = vld [vmem:[%s1454_s4 + $0x168] sm:$0xff] }
  0x77   : > { %644 = vmatprep.mubr.f32.mxu0 %v346_v7  ;;  %869 = vmatprep.mubr.f32.mxu1 %v348_v8  ;;  %v385_v7 = vunpack.c.l.bf16 %v279_v62  ;;  %v387_v8 = vunpack.c.l.bf16 %v280_v63  ;;  %v390_v9 = vunpack.c.h.bf16 %v281_v5  ;;  %v392_v10 = vunpack.c.h.bf16 %v282_v6 }
  0x7a   : > { %645 = vmatmul.mubr.f32.gmra.mxu0 %v345_v11  ;;  %870 = vmatmul.mubr.f32.gmra.mxu1 %v347_v12  ;;  %v283_v11 = vld [vmem:[%s1454_s4 + $0x170] sm:$0xff]  ;;  %v284_v12 = vld [vmem:[%s1454_s4 + $0x178] sm:$0xff] }
  0x7b   : > { %649 = vmatprep.mubr.f32.mxu0 %v350_v13  ;;  %874 = vmatprep.mubr.f32.mxu1 %v352_v14  ;;  %v389_v13 = vunpack.c.l.bf16 %v281_v5  ;;  %v391_v14 = vunpack.c.l.bf16 %v282_v6  ;;  %v394_v15 = vunpack.c.h.bf16 %v283_v11  ;;  %v396_v16 = vunpack.c.h.bf16 %v284_v12 }
  0x7e   : > { %650 = vmatmul.mubr.f32.gmra.mxu0 %v349_v17  ;;  %875 = vmatmul.mubr.f32.gmra.mxu1 %v351_v18  ;;  %v285_v17 = vld [vmem:[%s1454_s4 + $0x180] sm:$0xff]  ;;  %v286_v18 = vld [vmem:[%s1454_s4 + $0x188] sm:$0xff] }
  0x7f   : > { %654 = vmatprep.mubr.f32.mxu0 %v354_v19  ;;  %879 = vmatprep.mubr.f32.mxu1 %v356_v20  ;;  %v393_v19 = vunpack.c.l.bf16 %v283_v11  ;;  %v395_v20 = vunpack.c.l.bf16 %v284_v12  ;;  %v398_v21 = vunpack.c.h.bf16 %v285_v17  ;;  %v400_v22 = vunpack.c.h.bf16 %v286_v18  ;;  %v430_v11 = vld [vmem:[%s1528_s29 + $0x8] sm:$0xff] }
  0x82   : > { %655 = vmatmul.mubr.f32.gmra.mxu0 %v353_v23  ;;  %880 = vmatmul.mubr.f32.gmra.mxu1 %v355_v24  ;;  %v287_v23 = vld [vmem:[%s1454_s4 + $0x190] sm:$0xff]  ;;  %v288_v24 = vld [vmem:[%s1454_s4 + $0x198] sm:$0xff] }
  0x83   : > { %659 = vmatprep.mubr.f32.mxu0 %v358_v25  ;;  %884 = vmatprep.mubr.f32.mxu1 %v360_v26  ;;  %v397_v25 = vunpack.c.l.bf16 %v285_v17  ;;  %v399_v26 = vunpack.c.l.bf16 %v286_v18  ;;  %v402_v27 = vunpack.c.h.bf16 %v287_v23  ;;  %v404_v28 = vunpack.c.h.bf16 %v288_v24  ;;  %v431_v18 = vld [vmem:[%s1528_s29 + $0x10] sm:$0xff] }
  0x86   : > { %660 = vmatmul.mubr.f32.gmra.mxu0 %v357_v29  ;;  %885 = vmatmul.mubr.f32.gmra.mxu1 %v359_v30  ;;  %v289_v29 = vld [vmem:[%s1454_s4 + $0x1a0] sm:$0xff]  ;;  %v290_v30 = vld [vmem:[%s1454_s4 + $0x1a8] sm:$0xff] }
  0x87   : > { %664 = vmatprep.mubr.f32.mxu0 %v362_v31  ;;  %889 = vmatprep.mubr.f32.mxu1 %v364_v32  ;;  %v401_v31 = vunpack.c.l.bf16 %v287_v23  ;;  %v403_v32 = vunpack.c.l.bf16 %v288_v24  ;;  %v406_v33 = vunpack.c.h.bf16 %v289_v29  ;;  %v408_v34 = vunpack.c.h.bf16 %v290_v30 }
  0x8a   : > { %665 = vmatmul.mubr.f32.gmra.mxu0 %v361_v35  ;;  %890 = vmatmul.mubr.f32.gmra.mxu1 %v363_v36  ;;  %v291_v35 = vld [vmem:[%s1454_s4 + $0x1b0] sm:$0xff]  ;;  %v292_v36 = vld [vmem:[%s1454_s4 + $0x1b8] sm:$0xff] }
  0x8b   : > { %669 = vmatprep.mubr.f32.mxu0 %v366_v37  ;;  %894 = vmatprep.mubr.f32.mxu1 %v368_v38  ;;  %v405_v37 = vunpack.c.l.bf16 %v289_v29  ;;  %v407_v38 = vunpack.c.l.bf16 %v290_v30  ;;  %v410_v39 = vunpack.c.h.bf16 %v291_v35  ;;  %v412_v40 = vunpack.c.h.bf16 %v292_v36 }
  0x8e   : > { %670 = vmatmul.mubr.f32.gmra.mxu0 %v365_v41  ;;  %895 = vmatmul.mubr.f32.gmra.mxu1 %v367_v42  ;;  %v293_v41 = vld [vmem:[%s1454_s4 + $0x1c0] sm:$0xff]  ;;  %v294_v42 = vld [vmem:[%s1454_s4 + $0x1c8] sm:$0xff] }
  0x8f   : > { %674 = vmatprep.mubr.f32.mxu0 %v370_v43  ;;  %899 = vmatprep.mubr.f32.mxu1 %v372_v44  ;;  %v409_v43 = vunpack.c.l.bf16 %v291_v35  ;;  %v411_v44 = vunpack.c.l.bf16 %v292_v36  ;;  %v414_v45 = vunpack.c.h.bf16 %v293_v41  ;;  %v416_v46 = vunpack.c.h.bf16 %v294_v42 }
  0x92   : > { %675 = vmatmul.mubr.f32.gmra.mxu0 %v369_v47  ;;  %900 = vmatmul.mubr.f32.gmra.mxu1 %v371_v48  ;;  %v295_v47 = vld [vmem:[%s1454_s4 + $0x1d0] sm:$0xff]  ;;  %v296_v48 = vld [vmem:[%s1454_s4 + $0x1d8] sm:$0xff] }
  0x93   : > { %679 = vmatprep.mubr.f32.mxu0 %v374_v2  ;;  %904 = vmatprep.mubr.f32.mxu1 %v376_v49  ;;  %v413_v2 = vunpack.c.l.bf16 %v293_v41  ;;  %v415_v49 = vunpack.c.l.bf16 %v294_v42  ;;  %v418_v50 = vunpack.c.h.bf16 %v295_v47  ;;  %v420_v51 = vunpack.c.h.bf16 %v296_v48 }
  0x96   : > { %680 = vmatmul.mubr.f32.gmra.mxu0 %v373_v52  ;;  %905 = vmatmul.mubr.f32.gmra.mxu1 %v375_v53  ;;  %v297_v52 = vld [vmem:[%s1454_s4 + $0x1e0] sm:$0xff]  ;;  %v298_v53 = vld [vmem:[%s1454_s4 + $0x1e8] sm:$0xff] }
  0x97   : > { %684 = vmatprep.mubr.f32.mxu0 %v378_v54  ;;  %909 = vmatprep.mubr.f32.mxu1 %v380_v55  ;;  %v417_v54 = vunpack.c.l.bf16 %v295_v47  ;;  %v419_v55 = vunpack.c.l.bf16 %v296_v48  ;;  %v422_v56 = vunpack.c.h.bf16 %v297_v52  ;;  %v424_v57 = vunpack.c.h.bf16 %v298_v53 }
  0x9a   : > { %685 = vmatmul.mubr.f32.gmra.mxu0 %v377_v58  ;;  %910 = vmatmul.mubr.f32.gmra.mxu1 %v379_v59  ;;  %v299_v58 = vld [vmem:[%s1454_s4 + $0x1f0] sm:$0xff]  ;;  %v300_v59 = vld [vmem:[%s1454_s4 + $0x1f8] sm:$0xff] }
  0x9b   : > { %689 = vmatprep.mubr.f32.mxu0 %v382_v60  ;;  %914 = vmatprep.mubr.f32.mxu1 %v384_v61  ;;  %v421_v60 = vunpack.c.l.bf16 %v297_v52  ;;  %v423_v61 = vunpack.c.l.bf16 %v298_v53  ;;  %v426_v62 = vunpack.c.h.bf16 %v299_v58  ;;  %v428_v63 = vunpack.c.h.bf16 %v300_v59  ;;  %v436_v52 = vld [vmem:[%s1528_s29 + $0x38] sm:$0xff] }
  0x9e   : > { %690 = vmatmul.mubr.f32.gmra.mxu0 %v381_v0  ;;  %915 = vmatmul.mubr.f32.gmra.mxu1 %v383_v1  ;;  %v425_v0 = vunpack.c.l.bf16 %v299_v58  ;;  %v427_v1 = vunpack.c.l.bf16 %v300_v59  ;;  %v437_v59 = vld [vmem:[%s1528_s29 + $0x40] sm:$0xff] }
  0x9f   : > { %694 = vmatprep.mubr.f32.mxu0 %v386_v3  ;;  %919 = vmatprep.mubr.f32.mxu1 %v388_v4  ;;  %v429_v4 = vld [vmem:[%s1528_s29] sm:$0xff] }
  0xa2   : > { %695 = vmatmul.mubr.f32.gmra.mxu0 %v385_v7  ;;  %920 = vmatmul.mubr.f32.gmra.mxu1 %v387_v8 }
  0xa3   : > { %699 = vmatprep.mubr.f32.mxu0 %v390_v9  ;;  %924 = vmatprep.mubr.f32.mxu1 %v392_v10 }
  0xa6   : > { %700 = vmatmul.mubr.f32.gmra.mxu0 %v389_v13  ;;  %925 = vmatmul.mubr.f32.gmra.mxu1 %v391_v14 }
  0xa7   : > { %704 = vmatprep.mubr.f32.mxu0 %v394_v15  ;;  %929 = vmatprep.mubr.f32.mxu1 %v396_v16 }
  0xaa   : > { %705 = vmatmul.mubr.f32.gmra.mxu0 %v393_v19  ;;  %930 = vmatmul.mubr.f32.gmra.mxu1 %v395_v20 }
  0xab   : > { %709 = vmatprep.mubr.f32.mxu0 %v398_v21  ;;  %934 = vmatprep.mubr.f32.mxu1 %v400_v22 }
  0xae   : > { %710 = vmatmul.mubr.f32.gmra.mxu0 %v397_v25  ;;  %935 = vmatmul.mubr.f32.gmra.mxu1 %v399_v26  ;;  %v432_v25 = vld [vmem:[%s1528_s29 + $0x18] sm:$0xff] }
  0xaf   : > { %714 = vmatprep.mubr.f32.mxu0 %v402_v27  ;;  %939 = vmatprep.mubr.f32.mxu1 %v404_v28 }
  0xb2   : > { %715 = vmatmul.mubr.f32.gmra.mxu0 %v401_v31  ;;  %940 = vmatmul.mubr.f32.gmra.mxu1 %v403_v32  ;;  %v433_v32 = vld [vmem:[%s1528_s29 + $0x20] sm:$0xff] }
  0xb3   : > { %719 = vmatprep.mubr.f32.mxu0 %v406_v33  ;;  %944 = vmatprep.mubr.f32.mxu1 %v408_v34 }
  0xb6   : > { %720 = vmatmul.mubr.f32.gmra.mxu0 %v405_v37  ;;  %945 = vmatmul.mubr.f32.gmra.mxu1 %v407_v38 }
  0xb7   : > { %724 = vmatprep.mubr.f32.mxu0 %v410_v39  ;;  %949 = vmatprep.mubr.f32.mxu1 %v412_v40  ;;  %v434_v39 = vld [vmem:[%s1528_s29 + $0x28] sm:$0xff] }
  0xba   : > { %725 = vmatmul.mubr.f32.gmra.mxu0 %v409_v43  ;;  %950 = vmatmul.mubr.f32.gmra.mxu1 %v411_v44 }
  0xbb   : > { %729 = vmatprep.mubr.f32.mxu0 %v414_v45  ;;  %954 = vmatprep.mubr.f32.mxu1 %v416_v46  ;;  %v435_v46 = vld [vmem:[%s1528_s29 + $0x30] sm:$0xff] }
  0xbe   : > { %730 = vmatmul.mubr.f32.gmra.mxu0 %v413_v2  ;;  %955 = vmatmul.mubr.f32.gmra.mxu1 %v415_v49 }
  0xbf   : > { %734 = vmatprep.mubr.f32.mxu0 %v418_v50  ;;  %959 = vmatprep.mubr.f32.mxu1 %v420_v51 }
  0xc2   : > { %735 = vmatmul.mubr.f32.gmra.mxu0 %v417_v54  ;;  %960 = vmatmul.mubr.f32.gmra.mxu1 %v419_v55 }
  0xc3   : > { %739 = vmatprep.mubr.f32.mxu0 %v422_v56  ;;  %964 = vmatprep.mubr.f32.mxu1 %v424_v57 }
  0xc6   : > { %740 = vmatmul.mubr.f32.gmra.mxu0 %v421_v60  ;;  %965 = vmatmul.mubr.f32.gmra.mxu1 %v423_v61 }
  0xc7   : > { %744 = vmatprep.mubr.f32.mxu0 %v426_v62  ;;  %969 = vmatprep.mubr.f32.mxu1 %v428_v63 }
  0xca   : > { %745 = vmatmul.mubr.f32.gmra.mxu0 %v425_v0  ;;  %970 = vmatmul.mubr.f32.gmra.mxu1 %v427_v1 }
 0x10e   : > { %v591_v3 = vpop.f32.mrf.mxu0  ;;  %v816_v5 = vpop.f32.mrf.mxu1 }
 0x10f   : > { %v817_v6 = vadd.f32 %v816_v5, %v591_v3  ;;  %v438_v3 = vld [vmem:[%s1528_s29 + $0x48] sm:$0xff] }
 0x110   : > { %v593_v7 = vpop.f32.mrf.mxu0  ;;  %v818_v8 = vpop.f32.mrf.mxu1 }
 0x111   : > { %v975_v9 = vadd.f32 %v817_v6, %v429_v4 }
 0x112   : > { %v596_v10 = vpop.f32.mrf.mxu0  ;;  %v821_v12 = vpop.f32.mrf.mxu1 }
 0x113   : > { %1008 = vst.msk [vmem:[%s1528_s29] sm:$0xff] %vm204_vm0, %v975_v9  ;;  %v822_v13 = vadd.f32 %v821_v12, %v596_v10  ;;  %v439_v10 = vld [vmem:[%s1528_s29 + $0x50] sm:$0xff] }
 0x114   : > { %v598_v14 = vpop.f32.mrf.mxu0  ;;  %v823_v15 = vpop.f32.mrf.mxu1 }
 0x115   : > { %v976_v16 = vadd.f32 %v822_v13, %v430_v11 }
 0x116   : > { %v601_v17 = vpop.f32.mrf.mxu0  ;;  %v826_v19 = vpop.f32.mrf.mxu1 }
 0x117   : > { %1009 = vst.msk [vmem:[%s1528_s29 + $0x8] sm:$0xff] %vm204_vm0, %v976_v16  ;;  %v827_v20 = vadd.f32 %v826_v19, %v601_v17  ;;  %v440_v17 = vld [vmem:[%s1528_s29 + $0x58] sm:$0xff] }
 0x118   : > { %v603_v21 = vpop.f32.mrf.mxu0  ;;  %v828_v22 = vpop.f32.mrf.mxu1 }
 0x119   : > { %v977_v23 = vadd.f32 %v827_v20, %v431_v18 }
 0x11a   : > { %v606_v24 = vpop.f32.mrf.mxu0  ;;  %v831_v26 = vpop.f32.mrf.mxu1 }
 0x11b   : > { %1010 = vst.msk [vmem:[%s1528_s29 + $0x10] sm:$0xff] %vm204_vm0, %v977_v23  ;;  %v832_v27 = vadd.f32 %v831_v26, %v606_v24  ;;  %v441_v24 = vld [vmem:[%s1528_s29 + $0x60] sm:$0xff] }
 0x11c   : > { %v608_v28 = vpop.f32.mrf.mxu0  ;;  %v833_v29 = vpop.f32.mrf.mxu1 }
 0x11d   : > { %v978_v30 = vadd.f32 %v832_v27, %v432_v25 }
 0x11e   : > { %v611_v31 = vpop.f32.mrf.mxu0  ;;  %v836_v33 = vpop.f32.mrf.mxu1 }
 0x11f   : > { %1011 = vst.msk [vmem:[%s1528_s29 + $0x18] sm:$0xff] %vm204_vm0, %v978_v30  ;;  %v837_v34 = vadd.f32 %v836_v33, %v611_v31  ;;  %v442_v31 = vld [vmem:[%s1528_s29 + $0x68] sm:$0xff] }
 0x120   : > { %v613_v35 = vpop.f32.mrf.mxu0  ;;  %v838_v36 = vpop.f32.mrf.mxu1 }
 0x121   : > { %v979_v37 = vadd.f32 %v837_v34, %v433_v32 }
 0x122   : > { %v616_v38 = vpop.f32.mrf.mxu0  ;;  %v841_v40 = vpop.f32.mrf.mxu1 }
 0x123   : > { %1012 = vst.msk [vmem:[%s1528_s29 + $0x20] sm:$0xff] %vm204_vm0, %v979_v37  ;;  %v842_v41 = vadd.f32 %v841_v40, %v616_v38  ;;  %v443_v38 = vld [vmem:[%s1528_s29 + $0x70] sm:$0xff] }
 0x124   : > { %v618_v42 = vpop.f32.mrf.mxu0  ;;  %v843_v43 = vpop.f32.mrf.mxu1 }
 0x125   : > { %v980_v44 = vadd.f32 %v842_v41, %v434_v39 }
 0x126   : > { %v621_v45 = vpop.f32.mrf.mxu0  ;;  %v846_v47 = vpop.f32.mrf.mxu1 }
 0x127   : > { %1013 = vst.msk [vmem:[%s1528_s29 + $0x28] sm:$0xff] %vm204_vm0, %v980_v44  ;;  %v847_v48 = vadd.f32 %v846_v47, %v621_v45  ;;  %v444_v45 = vld [vmem:[%s1528_s29 + $0x78] sm:$0xff] }
 0x128   : > { %v623_v2 = vpop.f32.mrf.mxu0  ;;  %v848_v49 = vpop.f32.mrf.mxu1 }
 0x129   : > { %v981_v50 = vadd.f32 %v847_v48, %v435_v46 }
 0x12a   : > { %v626_v51 = vpop.f32.mrf.mxu0  ;;  %v851_v53 = vpop.f32.mrf.mxu1 }
 0x12b   : > { %1014 = vst.msk [vmem:[%s1528_s29 + $0x30] sm:$0xff] %vm204_vm0, %v981_v50  ;;  %v852_v54 = vadd.f32 %v851_v53, %v626_v51  ;;  %v445_v51 = vld [vmem:[%s1528_s29 + $0x80] sm:$0xff] }
 0x12c   : > { %v628_v55 = vpop.f32.mrf.mxu0  ;;  %v853_v56 = vpop.f32.mrf.mxu1 }
 0x12d   : > { %v982_v57 = vadd.f32 %v852_v54, %v436_v52 }
 0x12e   : > { %v631_v58 = vpop.f32.mrf.mxu0  ;;  %v856_v60 = vpop.f32.mrf.mxu1 }
 0x12f   : > { %1015 = vst.msk [vmem:[%s1528_s29 + $0x38] sm:$0xff] %vm204_vm0, %v982_v57  ;;  %v857_v61 = vadd.f32 %v856_v60, %v631_v58  ;;  %v446_v58 = vld [vmem:[%s1528_s29 + $0x88] sm:$0xff] }
 0x130   : > { %v633_v62 = vpop.f32.mrf.mxu0  ;;  %v858_v63 = vpop.f32.mrf.mxu1 }
 0x131   : > { %v983_v0 = vadd.f32 %v857_v61, %v437_v59 }
 0x132   : > { %v636_v1 = vpop.f32.mrf.mxu0  ;;  %v861_v4 = vpop.f32.mrf.mxu1 }
 0x133   : > { %1016 = vst.msk [vmem:[%s1528_s29 + $0x40] sm:$0xff] %vm204_vm0, %v983_v0  ;;  %v862_v5 = vadd.f32 %v861_v4, %v636_v1  ;;  %v447_v1 = vld [vmem:[%s1528_s29 + $0x90] sm:$0xff] }
 0x134   : > { %v638_v6 = vpop.f32.mrf.mxu0  ;;  %v863_v7 = vpop.f32.mrf.mxu1 }
 0x135   : > { %v984_v8 = vadd.f32 %v862_v5, %v438_v3 }
 0x136   : > { %v641_v9 = vpop.f32.mrf.mxu0  ;;  %v866_v11 = vpop.f32.mrf.mxu1 }
 0x137   : > { %1017 = vst.msk [vmem:[%s1528_s29 + $0x48] sm:$0xff] %vm204_vm0, %v984_v8  ;;  %v867_v12 = vadd.f32 %v866_v11, %v641_v9  ;;  %v448_v9 = vld [vmem:[%s1528_s29 + $0x98] sm:$0xff] }
 0x138   : > { %v643_v13 = vpop.f32.mrf.mxu0  ;;  %v868_v14 = vpop.f32.mrf.mxu1 }
 0x139   : > { %v985_v15 = vadd.f32 %v867_v12, %v439_v10 }
 0x13a   : > { %v646_v16 = vpop.f32.mrf.mxu0  ;;  %v871_v18 = vpop.f32.mrf.mxu1 }
 0x13b   : > { %1018 = vst.msk [vmem:[%s1528_s29 + $0x50] sm:$0xff] %vm204_vm0, %v985_v15  ;;  %v872_v19 = vadd.f32 %v871_v18, %v646_v16  ;;  %v449_v16 = vld [vmem:[%s1528_s29 + $0xa0] sm:$0xff] }
 0x13c   : > { %v648_v20 = vpop.f32.mrf.mxu0  ;;  %v873_v21 = vpop.f32.mrf.mxu1 }
 0x13d   : > { %v986_v22 = vadd.f32 %v872_v19, %v440_v17 }
 0x13e   : > { %v651_v23 = vpop.f32.mrf.mxu0  ;;  %v876_v25 = vpop.f32.mrf.mxu1 }
 0x13f   : > { %1019 = vst.msk [vmem:[%s1528_s29 + $0x58] sm:$0xff] %vm204_vm0, %v986_v22  ;;  %v877_v26 = vadd.f32 %v876_v25, %v651_v23  ;;  %v450_v23 = vld [vmem:[%s1528_s29 + $0xa8] sm:$0xff] }
 0x140   : > { %v653_v27 = vpop.f32.mrf.mxu0  ;;  %v878_v28 = vpop.f32.mrf.mxu1 }
 0x141   : > { %v987_v29 = vadd.f32 %v877_v26, %v441_v24 }
 0x142   : > { %v656_v30 = vpop.f32.mrf.mxu0  ;;  %v881_v32 = vpop.f32.mrf.mxu1 }
 0x143   : > { %1020 = vst.msk [vmem:[%s1528_s29 + $0x60] sm:$0xff] %vm204_vm0, %v987_v29  ;;  %v882_v33 = vadd.f32 %v881_v32, %v656_v30  ;;  %v451_v30 = vld [vmem:[%s1528_s29 + $0xb0] sm:$0xff] }
 0x144   : > { %v658_v34 = vpop.f32.mrf.mxu0  ;;  %v883_v35 = vpop.f32.mrf.mxu1 }
 0x145   : > { %v988_v36 = vadd.f32 %v882_v33, %v442_v31 }
 0x146   : > { %v661_v37 = vpop.f32.mrf.mxu0  ;;  %v886_v39 = vpop.f32.mrf.mxu1 }
 0x147   : > { %1021 = vst.msk [vmem:[%s1528_s29 + $0x68] sm:$0xff] %vm204_vm0, %v988_v36  ;;  %v887_v40 = vadd.f32 %v886_v39, %v661_v37  ;;  %v452_v37 = vld [vmem:[%s1528_s29 + $0xb8] sm:$0xff] }
 0x148   : > { %v663_v41 = vpop.f32.mrf.mxu0  ;;  %v888_v42 = vpop.f32.mrf.mxu1 }
 0x149   : > { %v989_v43 = vadd.f32 %v887_v40, %v443_v38 }
 0x14a   : > { %v666_v44 = vpop.f32.mrf.mxu0  ;;  %v891_v46 = vpop.f32.mrf.mxu1 }
 0x14b   : > { %1022 = vst.msk [vmem:[%s1528_s29 + $0x70] sm:$0xff] %vm204_vm0, %v989_v43  ;;  %v892_v47 = vadd.f32 %v891_v46, %v666_v44  ;;  %v453_v44 = vld [vmem:[%s1528_s29 + $0xc0] sm:$0xff] }
 0x14c   : > { %v668_v48 = vpop.f32.mrf.mxu0  ;;  %v893_v2 = vpop.f32.mrf.mxu1 }
 0x14d   : > { %v990_v49 = vadd.f32 %v892_v47, %v444_v45 }
 0x14e   : > { %v671_v50 = vpop.f32.mrf.mxu0  ;;  %v896_v52 = vpop.f32.mrf.mxu1 }
 0x14f   : > { %1023 = vst.msk [vmem:[%s1528_s29 + $0x78] sm:$0xff] %vm204_vm0, %v990_v49  ;;  %v897_v53 = vadd.f32 %v896_v52, %v671_v50  ;;  %v454_v50 = vld [vmem:[%s1528_s29 + $0xc8] sm:$0xff] }
 0x150   : > { %v673_v54 = vpop.f32.mrf.mxu0  ;;  %v898_v55 = vpop.f32.mrf.mxu1 }
 0x151   : > { %v991_v56 = vadd.f32 %v897_v53, %v445_v51 }
 0x152   : > { %v676_v57 = vpop.f32.mrf.mxu0  ;;  %v901_v59 = vpop.f32.mrf.mxu1 }
 0x153   : > { %1024 = vst.msk [vmem:[%s1528_s29 + $0x80] sm:$0xff] %vm204_vm0, %v991_v56  ;;  %v902_v60 = vadd.f32 %v901_v59, %v676_v57  ;;  %v455_v57 = vld [vmem:[%s1528_s29 + $0xd0] sm:$0xff] }
 0x154   : > { %v678_v61 = vpop.f32.mrf.mxu0  ;;  %v903_v62 = vpop.f32.mrf.mxu1 }
 0x155   : > { %v992_v63 = vadd.f32 %v902_v60, %v446_v58 }
 0x156   : > { %v681_v0 = vpop.f32.mrf.mxu0  ;;  %v906_v3 = vpop.f32.mrf.mxu1 }
 0x157   : > { %1025 = vst.msk [vmem:[%s1528_s29 + $0x88] sm:$0xff] %vm204_vm0, %v992_v63  ;;  %v907_v4 = vadd.f32 %v906_v3, %v681_v0  ;;  %v456_v0 = vld [vmem:[%s1528_s29 + $0xd8] sm:$0xff] }
 0x158   : > { %v683_v5 = vpop.f32.mrf.mxu0  ;;  %v908_v6 = vpop.f32.mrf.mxu1 }
 0x159   : > { %v993_v7 = vadd.f32 %v907_v4, %v447_v1 }
 0x15a   : > { %v686_v8 = vpop.f32.mrf.mxu0  ;;  %v911_v10 = vpop.f32.mrf.mxu1 }
 0x15b   : > { %1026 = vst.msk [vmem:[%s1528_s29 + $0x90] sm:$0xff] %vm204_vm0, %v993_v7  ;;  %v912_v11 = vadd.f32 %v911_v10, %v686_v8  ;;  %v457_v8 = vld [vmem:[%s1528_s29 + $0xe0] sm:$0xff] }
 0x15c   : > { %v688_v12 = vpop.f32.mrf.mxu0  ;;  %v913_v13 = vpop.f32.mrf.mxu1 }
 0x15d   : > { %v994_v14 = vadd.f32 %v912_v11, %v448_v9 }
 0x15e   : > { %v691_v15 = vpop.f32.mrf.mxu0  ;;  %v916_v17 = vpop.f32.mrf.mxu1 }
 0x15f   : > { %1027 = vst.msk [vmem:[%s1528_s29 + $0x98] sm:$0xff] %vm204_vm0, %v994_v14  ;;  %v917_v18 = vadd.f32 %v916_v17, %v691_v15  ;;  %v458_v15 = vld [vmem:[%s1528_s29 + $0xe8] sm:$0xff] }
 0x160   : > { %v693_v19 = vpop.f32.mrf.mxu0  ;;  %v918_v20 = vpop.f32.mrf.mxu1 }
 0x161   : > { %v995_v21 = vadd.f32 %v917_v18, %v449_v16 }
 0x162   : > { %v696_v22 = vpop.f32.mrf.mxu0  ;;  %v921_v24 = vpop.f32.mrf.mxu1 }
 0x163   : > { %1028 = vst.msk [vmem:[%s1528_s29 + $0xa0] sm:$0xff] %vm204_vm0, %v995_v21  ;;  %v922_v25 = vadd.f32 %v921_v24, %v696_v22  ;;  %v459_v22 = vld [vmem:[%s1528_s29 + $0xf0] sm:$0xff] }
 0x164   : > { %v698_v26 = vpop.f32.mrf.mxu0  ;;  %v923_v27 = vpop.f32.mrf.mxu1 }
 0x165   : > { %v996_v28 = vadd.f32 %v922_v25, %v450_v23 }
 0x166   : > { %v701_v29 = vpop.f32.mrf.mxu0  ;;  %v926_v31 = vpop.f32.mrf.mxu1 }
 0x167   : > { %1029 = vst.msk [vmem:[%s1528_s29 + $0xa8] sm:$0xff] %vm204_vm0, %v996_v28  ;;  %v927_v32 = vadd.f32 %v926_v31, %v701_v29  ;;  %v460_v29 = vld [vmem:[%s1528_s29 + $0xf8] sm:$0xff] }
 0x168   : > { %v703_v33 = vpop.f32.mrf.mxu0  ;;  %v928_v34 = vpop.f32.mrf.mxu1 }
 0x169   : > { %v997_v35 = vadd.f32 %v927_v32, %v451_v30 }
 0x16a   : > { %v706_v36 = vpop.f32.mrf.mxu0  ;;  %v931_v38 = vpop.f32.mrf.mxu1 }
 0x16b   : > { %1030 = vst.msk [vmem:[%s1528_s29 + $0xb0] sm:$0xff] %vm204_vm0, %v997_v35  ;;  %v932_v39 = vadd.f32 %v931_v38, %v706_v36 }
 0x16c   : > { %v708_v40 = vpop.f32.mrf.mxu0  ;;  %v933_v41 = vpop.f32.mrf.mxu1 }
 0x16d   : > { %v998_v42 = vadd.f32 %v932_v39, %v452_v37 }
 0x16e   : > { %v711_v43 = vpop.f32.mrf.mxu0  ;;  %v936_v45 = vpop.f32.mrf.mxu1 }
 0x16f   : > { %1031 = vst.msk [vmem:[%s1528_s29 + $0xb8] sm:$0xff] %vm204_vm0, %v998_v42  ;;  %v937_v46 = vadd.f32 %v936_v45, %v711_v43 }
 0x170   : > { %v713_v47 = vpop.f32.mrf.mxu0  ;;  %v938_v48 = vpop.f32.mrf.mxu1 }
 0x171   : > { %v999_v2 = vadd.f32 %v937_v46, %v453_v44 }
 0x172   : > { %v716_v49 = vpop.f32.mrf.mxu0  ;;  %v941_v51 = vpop.f32.mrf.mxu1 }
 0x173   : > { %1032 = vst.msk [vmem:[%s1528_s29 + $0xc0] sm:$0xff] %vm204_vm0, %v999_v2  ;;  %v942_v52 = vadd.f32 %v941_v51, %v716_v49 }
 0x174   : > { %v718_v53 = vpop.f32.mrf.mxu0  ;;  %v943_v54 = vpop.f32.mrf.mxu1 }
 0x175   : > { %v1000_v55 = vadd.f32 %v942_v52, %v454_v50 }
 0x176   : > { %v721_v56 = vpop.f32.mrf.mxu0  ;;  %v946_v58 = vpop.f32.mrf.mxu1 }
 0x177   : > { %1033 = vst.msk [vmem:[%s1528_s29 + $0xc8] sm:$0xff] %vm204_vm0, %v1000_v55  ;;  %v947_v59 = vadd.f32 %v946_v58, %v721_v56 }
 0x178   : > { %v723_v60 = vpop.f32.mrf.mxu0  ;;  %v948_v61 = vpop.f32.mrf.mxu1 }
 0x179   : > { %v1001_v62 = vadd.f32 %v947_v59, %v455_v57 }
 0x17a   : > { %v726_v63 = vpop.f32.mrf.mxu0  ;;  %v951_v1 = vpop.f32.mrf.mxu1 }
 0x17b   : > { %1034 = vst.msk [vmem:[%s1528_s29 + $0xd0] sm:$0xff] %vm204_vm0, %v1001_v62  ;;  %v952_v3 = vadd.f32 %v951_v1, %v726_v63 }
 0x17c   : > { %v728_v4 = vpop.f32.mrf.mxu0  ;;  %v953_v5 = vpop.f32.mrf.mxu1 }
 0x17d   : > { %v1002_v6 = vadd.f32 %v952_v3, %v456_v0 }
 0x17e   : > { %v731_v7 = vpop.f32.mrf.mxu0  ;;  %v956_v9 = vpop.f32.mrf.mxu1 }
 0x17f   : > { %1035 = vst.msk [vmem:[%s1528_s29 + $0xd8] sm:$0xff] %vm204_vm0, %v1002_v6  ;;  %v957_v10 = vadd.f32 %v956_v9, %v731_v7 }
 0x180   : > { %v733_v11 = vpop.f32.mrf.mxu0  ;;  %v958_v12 = vpop.f32.mrf.mxu1 }
 0x181   : > { %v1003_v13 = vadd.f32 %v957_v10, %v457_v8 }
 0x182   : > { %v736_v14 = vpop.f32.mrf.mxu0  ;;  %v961_v16 = vpop.f32.mrf.mxu1 }
 0x183   : > { %1036 = vst.msk [vmem:[%s1528_s29 + $0xe0] sm:$0xff] %vm204_vm0, %v1003_v13  ;;  %v962_v17 = vadd.f32 %v961_v16, %v736_v14 }
 0x184   : > { %v738_v18 = vpop.f32.mrf.mxu0  ;;  %v963_v19 = vpop.f32.mrf.mxu1 }
 0x185   : > { %v1004_v20 = vadd.f32 %v962_v17, %v458_v15 }
 0x186   : > { %v741_v21 = vpop.f32.mrf.mxu0  ;;  %v966_v23 = vpop.f32.mrf.mxu1 }
 0x187   : > { %1037 = vst.msk [vmem:[%s1528_s29 + $0xe8] sm:$0xff] %vm204_vm0, %v1004_v20  ;;  %v967_v24 = vadd.f32 %v966_v23, %v741_v21 }
 0x188   : > { %v743_v25 = vpop.f32.mrf.mxu0  ;;  %v968_v26 = vpop.f32.mrf.mxu1 }
 0x189   : > { %v1005_v27 = vadd.f32 %v967_v24, %v459_v22 }
 0x18a   : > { %v746_v28 = vpop.f32.mrf.mxu0  ;;  %v971_v30 = vpop.f32.mrf.mxu1 }
 0x18b   : > { %1038 = vst.msk [vmem:[%s1528_s29 + $0xf0] sm:$0xff] %vm204_vm0, %v1005_v27  ;;  %v972_v31 = vadd.f32 %v971_v30, %v746_v28 }
 0x18c   : > { %v748_v32 = vpop.f32.mrf.mxu0  ;;  %v973_v33 = vpop.f32.mrf.mxu1 }
 0x18d   : > { %v1006_v34 = vadd.f32 %v972_v31, %v460_v29 }
 0x18f   : > { %1039 = vst.msk [vmem:[%s1528_s29 + $0xf8] sm:$0xff] %vm204_vm0, %v1006_v34 }
 0x190 PF: > { %s12_s11 = sadd.s32 1, %s1187_s11   ;;  %s1764_s9 = smov %s1183_s10 }
 0x191   : > { %p9_p5 = scmp.ge.s32.totalorder %s12_s11, 4   ;;  %s1765_s10 = smov %s1767_s12 }
 0x193   :  { %11 = sbr.rel (!%p9_p5) target bundleno = 2 (0x2), region = 65 }

// kernel: gcn_forward.5
= control target key start
LH: loop header
LB: loop body
LE: loop exit
PB: predicated region body
PF: predicated region fallthrough
CT: control target
= control target key end

     0   :  { %s1854_s15 = smov 0   ;;  %s1856_s16 = smov 0   ;;  %s2453_s0 = inlined_call_operand.vmem [shape: bf16[512,512], index: 0, kind: input, shape index: {}]   ;;  %s2454_s1 = inlined_call_operand.vmem [shape: f32[512,16], index: 1, kind: input, shape index: {}]   ;;  %s2455_s2 = inlined_call_operand.vmem [shape: f32[1,16], index: 2, kind: input, shape index: {}]   ;;  %s2456_s3 = inlined_call_operand.vmem [shape: f32[16,4], index: 3, kind: input, shape index: {}]   ;;  %s2457_s4 = inlined_call_operand.vmem [shape: f32[512,4], index: 4, kind: output, shape index: {}]  }
   0x1   :  { %s1858_s17 = smov 0  }
   0x2 LB: > { %s26_s18 = sadd.s32 1, %s1822_s16  ;;  %p1647_p0 = scmp.ge.s32.totalorder %s1826_s17, 1  ;;  %s1826_s17 = sphi %s1858_s17, %s14_s17   ;;  %s1822_s16 = sphi %s1856_s16, %s2459_s16   ;;  %s1818_s15 = sphi %s1854_s15, %s2458_s15  }
   0x3   : > { %p28_p1 = scmp.ge.s32.totalorder %s26_s18, 2  ;;  %p194_p2 = scmp.lt.s32.totalorder %s1826_s17, 3 }
   0x5   : > { %s2461_s18 = smov (%p28_p1, %s26_s18), 0  ;;  %p195_p3 = pnand %p1647_p0, %p194_p2 }
   0x6   : > { %s1648_s11 = sshll.u32 (!%p195_p3), %s1818_s15, 5 }
   0x7   : > { %198 = sbr.rel (%p195_p3) target bundleno = 607 (0x25f), region = 36  ;;  %p232_p4 = scmp.lt.s32.totalorder (!%p195_p3), %s1648_s11, 63 }
   0xc   : > { %v530_v0 = vld [vmem:[%s2454_s1 + $0x78] sm:$0xff]  ;;  %v1828_v2 = vmov 0.0   ;;  %v529_v3 = vld [vmem:[%s2454_s1 + $0x70] sm:$0xff]  ;;  %v528_v5 = vld [vmem:[%s2454_s1 + $0x68] sm:$0xff]  ;;  %s2463_s11 = smov (!%p232_p4, %s1648_s11), 63  ;;  %vm258_vm0 = vcmask 130048  }
   0xd   : > { %v562_v1 = vld [vmem:[%s2454_s1 + $0x178] sm:$0xff]  ;;  %579 = vmatprep.subr.mxu0 %v1828_v2  ;;  %804 = vmatprep.subr.mxu1 %v1828_v2  ;;  %v561_v4 = vld [vmem:[%s2454_s1 + $0x170] sm:$0xff]  ;;  %v560_v6 = vld [vmem:[%s2454_s1 + $0x168] sm:$0xff]  ;;  %s1688_s14 = sshll.u32 %s2463_s11, 4  ;;  %259 = vst.msk [vmem:[#allocation2] sm:$0xff] %vm258_vm0, %v1828_v2  ;;  %s1652_s25 = sshll.u32 %s2463_s11, 3 }
   0xe   : > { %580 = vmatpush1.msra.mxu0 %v530_v0  ;;  %805 = vmatpush1.msra.mxu1 %v562_v1  ;;  %v527_v7 = vld [vmem:[%s2454_s1 + $0x60] sm:$0xff]  ;;  %v526_v9 = vld [vmem:[%s2454_s1 + $0x58] sm:$0xff]  ;;  %v525_v11 = vld [vmem:[%s2454_s1 + $0x50] sm:$0xff]  ;;  %s2103_s24 = scalar_lea.vmem %s2453_s0, %s1688_s14  ;;  %260 = vst.msk [vmem:[#allocation2 + $0x8] sm:$0xff] %vm258_vm0, %v1828_v2  ;;  %s2378_s28 = scalar_lea.vmem %s2457_s4, %s1652_s25  ;;  %vm1523_vm1 = vcmask 31744  }
   0xf   : > { %581 = vmatprep.subr.mxu0 %v1828_v2  ;;  %806 = vmatprep.subr.mxu1 %v1828_v2  ;;  %v559_v8 = vld [vmem:[%s2454_s1 + $0x160] sm:$0xff]  ;;  %v558_v10 = vld [vmem:[%s2454_s1 + $0x158] sm:$0xff]  ;;  %v557_v12 = vld [vmem:[%s2454_s1 + $0x150] sm:$0xff]  ;;  %261 = vst.msk [vmem:[#allocation2 + $0x10] sm:$0xff] %vm258_vm0, %v1828_v2 }
  0x10   : > { %582 = vmatpush1.msra.mxu0 %v529_v3  ;;  %807 = vmatpush1.msra.mxu1 %v561_v4  ;;  %v524_v13 = vld [vmem:[%s2454_s1 + $0x48] sm:$0xff]  ;;  %v523_v15 = vld [vmem:[%s2454_s1 + $0x40] sm:$0xff]  ;;  %v522_v17 = vld [vmem:[%s2454_s1 + $0x38] sm:$0xff]  ;;  %262 = vst.msk [vmem:[#allocation2 + $0x18] sm:$0xff] %vm258_vm0, %v1828_v2 }
  0x11   : > { %583 = vmatprep.subr.mxu0 %v1828_v2  ;;  %808 = vmatprep.subr.mxu1 %v1828_v2  ;;  %v556_v14 = vld [vmem:[%s2454_s1 + $0x148] sm:$0xff]  ;;  %v555_v16 = vld [vmem:[%s2454_s1 + $0x140] sm:$0xff]  ;;  %v554_v18 = vld [vmem:[%s2454_s1 + $0x138] sm:$0xff]  ;;  %263 = vst.msk [vmem:[#allocation2 + $0x20] sm:$0xff] %vm258_vm0, %v1828_v2 }
  0x12   : > { %584 = vmatpush1.msra.mxu0 %v528_v5  ;;  %809 = vmatpush1.msra.mxu1 %v560_v6  ;;  %v521_v19 = vld [vmem:[%s2454_s1 + $0x30] sm:$0xff]  ;;  %v520_v21 = vld [vmem:[%s2454_s1 + $0x28] sm:$0xff]  ;;  %v519_v23 = vld [vmem:[%s2454_s1 + $0x20] sm:$0xff]  ;;  %264 = vst.msk [vmem:[#allocation2 + $0x28] sm:$0xff] %vm258_vm0, %v1828_v2 }
  0x13   : > { %585 = vmatprep.subr.mxu0 %v1828_v2  ;;  %810 = vmatprep.subr.mxu1 %v1828_v2  ;;  %v553_v20 = vld [vmem:[%s2454_s1 + $0x130] sm:$0xff]  ;;  %v552_v22 = vld [vmem:[%s2454_s1 + $0x128] sm:$0xff]  ;;  %v551_v24 = vld [vmem:[%s2454_s1 + $0x120] sm:$0xff]  ;;  %265 = vst.msk [vmem:[#allocation2 + $0x30] sm:$0xff] %vm258_vm0, %v1828_v2 }
  0x14   : > { %586 = vmatpush1.msra.mxu0 %v527_v7  ;;  %811 = vmatpush1.msra.mxu1 %v559_v8  ;;  %v518_v25 = vld [vmem:[%s2454_s1 + $0x18] sm:$0xff]  ;;  %v517_v27 = vld [vmem:[%s2454_s1 + $0x10] sm:$0xff]  ;;  %v516_v29 = vld [vmem:[%s2454_s1 + $0x8] sm:$0xff]  ;;  %266 = vst.msk [vmem:[#allocation2 + $0x38] sm:$0xff] %vm258_vm0, %v1828_v2 }
  0x15   : > { %587 = vmatprep.subr.mxu0 %v1828_v2  ;;  %812 = vmatprep.subr.mxu1 %v1828_v2  ;;  %v550_v26 = vld [vmem:[%s2454_s1 + $0x118] sm:$0xff]  ;;  %v549_v28 = vld [vmem:[%s2454_s1 + $0x110] sm:$0xff]  ;;  %v548_v30 = vld [vmem:[%s2454_s1 + $0x108] sm:$0xff]  ;;  %267 = vst.msk [vmem:[#allocation2 + $0x40] sm:$0xff] %vm258_vm0, %v1828_v2 }
  0x16   : > { %588 = vmatpush1.msra.mxu0 %v526_v9  ;;  %813 = vmatpush1.msra.mxu1 %v558_v10  ;;  %v515_v31 = vld [vmem:[%s2454_s1] sm:$0xff]  ;;  %v546_v33 = vld [vmem:[%s2454_s1 + $0xf8] sm:$0xff]  ;;  %v545_v35 = vld [vmem:[%s2454_s1 + $0xf0] sm:$0xff]  ;;  %268 = vst.msk [vmem:[#allocation2 + $0x48] sm:$0xff] %vm258_vm0, %v1828_v2 }
  0x17   : > { %589 = vmatprep.subr.mxu0 %v1828_v2  ;;  %814 = vmatprep.subr.mxu1 %v1828_v2  ;;  %v547_v32 = vld [vmem:[%s2454_s1 + $0x100] sm:$0xff]  ;;  %v578_v34 = vld [vmem:[%s2454_s1 + $0x1f8] sm:$0xff]  ;;  %v577_v36 = vld [vmem:[%s2454_s1 + $0x1f0] sm:$0xff]  ;;  %269 = vst.msk [vmem:[#allocation2 + $0x50] sm:$0xff] %vm258_vm0, %v1828_v2 }
  0x18   : > { %590 = vmatpush1.msra.mxu0 %v525_v11  ;;  %815 = vmatpush1.msra.mxu1 %v557_v12  ;;  %v544_v37 = vld [vmem:[%s2454_s1 + $0xe8] sm:$0xff]  ;;  %v543_v39 = vld [vmem:[%s2454_s1 + $0xe0] sm:$0xff]  ;;  %v542_v41 = vld [vmem:[%s2454_s1 + $0xd8] sm:$0xff]  ;;  %270 = vst.msk [vmem:[#allocation2 + $0x58] sm:$0xff] %vm258_vm0, %v1828_v2 }
  0x19   : > { %591 = vmatprep.subr.mxu0 %v1828_v2  ;;  %816 = vmatprep.subr.mxu1 %v1828_v2  ;;  %v576_v38 = vld [vmem:[%s2454_s1 + $0x1e8] sm:$0xff]  ;;  %v575_v40 = vld [vmem:[%s2454_s1 + $0x1e0] sm:$0xff]  ;;  %v574_v42 = vld [vmem:[%s2454_s1 + $0x1d8] sm:$0xff]  ;;  %271 = vst.msk [vmem:[#allocation2 + $0x60] sm:$0xff] %vm258_vm0, %v1828_v2 }
  0x1a   : > { %592 = vmatpush1.msra.mxu0 %v524_v13  ;;  %817 = vmatpush1.msra.mxu1 %v556_v14  ;;  %v541_v43 = vld [vmem:[%s2454_s1 + $0xd0] sm:$0xff]  ;;  %v540_v45 = vld [vmem:[%s2454_s1 + $0xc8] sm:$0xff]  ;;  %v539_v47 = vld [vmem:[%s2454_s1 + $0xc0] sm:$0xff]  ;;  %272 = vst.msk [vmem:[#allocation2 + $0x68] sm:$0xff] %vm258_vm0, %v1828_v2 }
  0x1b   : > { %593 = vmatprep.subr.mxu0 %v1828_v2  ;;  %818 = vmatprep.subr.mxu1 %v1828_v2  ;;  %v573_v44 = vld [vmem:[%s2454_s1 + $0x1d0] sm:$0xff]  ;;  %v572_v46 = vld [vmem:[%s2454_s1 + $0x1c8] sm:$0xff]  ;;  %v571_v48 = vld [vmem:[%s2454_s1 + $0x1c0] sm:$0xff]  ;;  %273 = vst.msk [vmem:[#allocation2 + $0x70] sm:$0xff] %vm258_vm0, %v1828_v2 }
  0x1c   : > { %594 = vmatpush1.msra.mxu0 %v523_v15  ;;  %819 = vmatpush1.msra.mxu1 %v555_v16  ;;  %v538_v49 = vld [vmem:[%s2454_s1 + $0xb8] sm:$0xff]  ;;  %v537_v51 = vld [vmem:[%s2454_s1 + $0xb0] sm:$0xff]  ;;  %v536_v53 = vld [vmem:[%s2454_s1 + $0xa8] sm:$0xff]  ;;  %274 = vst.msk [vmem:[#allocation2 + $0x78] sm:$0xff] %vm258_vm0, %v1828_v2 }
  0x1d   : > { %595 = vmatprep.subr.mxu0 %v1828_v2  ;;  %820 = vmatprep.subr.mxu1 %v1828_v2  ;;  %v570_v50 = vld [vmem:[%s2454_s1 + $0x1b8] sm:$0xff]  ;;  %v569_v52 = vld [vmem:[%s2454_s1 + $0x1b0] sm:$0xff]  ;;  %v568_v54 = vld [vmem:[%s2454_s1 + $0x1a8] sm:$0xff]  ;;  %275 = vst.msk [vmem:[#allocation2 + $0x80] sm:$0xff] %vm258_vm0, %v1828_v2 }
  0x1e   : > { %596 = vmatpush1.msra.mxu0 %v522_v17  ;;  %821 = vmatpush1.msra.mxu1 %v554_v18  ;;  %v535_v55 = vld [vmem:[%s2454_s1 + $0xa0] sm:$0xff]  ;;  %v534_v57 = vld [vmem:[%s2454_s1 + $0x98] sm:$0xff]  ;;  %v533_v59 = vld [vmem:[%s2454_s1 + $0x90] sm:$0xff]  ;;  %276 = vst.msk [vmem:[#allocation2 + $0x88] sm:$0xff] %vm258_vm0, %v1828_v2 }
  0x1f   : > { %597 = vmatprep.subr.mxu0 %v1828_v2  ;;  %822 = vmatprep.subr.mxu1 %v1828_v2  ;;  %v567_v56 = vld [vmem:[%s2454_s1 + $0x1a0] sm:$0xff]  ;;  %v566_v58 = vld [vmem:[%s2454_s1 + $0x198] sm:$0xff]  ;;  %v565_v60 = vld [vmem:[%s2454_s1 + $0x190] sm:$0xff]  ;;  %277 = vst.msk [vmem:[#allocation2 + $0x90] sm:$0xff] %vm258_vm0, %v1828_v2 }
  0x20   : > { %598 = vmatpush1.msra.mxu0 %v521_v19  ;;  %823 = vmatpush1.msra.mxu1 %v553_v20  ;;  %v291_v61 = vld [vmem:[%s2103_s24] sm:$0xff]  ;;  %v292_v62 = vld [vmem:[%s2103_s24 + $0x8] sm:$0xff]  ;;  %v293_v3 = vld [vmem:[%s2103_s24 + $0x10] sm:$0xff]  ;;  %278 = vst.msk [vmem:[#allocation2 + $0x98] sm:$0xff] %vm258_vm0, %v1828_v2 }
  0x21   : > { %599 = vmatprep.subr.mxu0 %v1828_v2  ;;  %824 = vmatprep.subr.mxu1 %v1828_v2  ;;  %v532_v63 = vld [vmem:[%s2454_s1 + $0x88] sm:$0xff]  ;;  %v356_v1 = vunpack.c.h.bf16 %v291_v61  ;;  %v294_v4 = vld [vmem:[%s2103_s24 + $0x18] sm:$0xff]  ;;  %v531_v5 = vld [vmem:[%s2454_s1 + $0x80] sm:$0xff]  ;;  %v358_v6 = vunpack.c.h.bf16 %v292_v62  ;;  %v355_v7 = vunpack.c.l.bf16 %v291_v61  ;;  %v357_v9 = vunpack.c.l.bf16 %v292_v62  ;;  %279 = vst.msk [vmem:[#allocation2 + $0xa0] sm:$0xff] %vm258_vm0, %v1828_v2 }
  0x22   : > { %600 = vmatpush1.msra.mxu0 %v520_v21  ;;  %825 = vmatpush1.msra.mxu1 %v552_v22  ;;  %v564_v0 = vld [vmem:[%s2454_s1 + $0x188] sm:$0xff]  ;;  %v563_v8 = vld [vmem:[%s2454_s1 + $0x180] sm:$0xff]  ;;  %v360_v10 = vunpack.c.h.bf16 %v293_v3  ;;  %v362_v11 = vunpack.c.h.bf16 %v294_v4  ;;  %v359_v15 = vunpack.c.l.bf16 %v293_v3  ;;  %v361_v16 = vunpack.c.l.bf16 %v294_v4  ;;  %v297_v19 = vld [vmem:[%s2103_s24 + $0x30] sm:$0xff]  ;;  %280 = vst.msk [vmem:[#allocation2 + $0xa8] sm:$0xff] %vm258_vm0, %v1828_v2 }
  0x23   : > { %601 = vmatprep.subr.mxu0 %v1828_v2  ;;  %826 = vmatprep.subr.mxu1 %v1828_v2  ;;  %v295_v12 = vld [vmem:[%s2103_s24 + $0x20] sm:$0xff]  ;;  %v296_v13 = vld [vmem:[%s2103_s24 + $0x28] sm:$0xff]  ;;  %v298_v20 = vld [vmem:[%s2103_s24 + $0x38] sm:$0xff]  ;;  %281 = vst.msk [vmem:[#allocation2 + $0xb0] sm:$0xff] %vm258_vm0, %v1828_v2 }
  0x24   : > { %602 = vmatpush1.msra.mxu0 %v519_v23  ;;  %827 = vmatpush1.msra.mxu1 %v551_v24  ;;  %v1201_v14 = vld [vmem:[%s2456_s3 + $0x8] sm:$0xff]  ;;  %v364_v17 = vunpack.c.h.bf16 %v295_v12  ;;  %v366_v18 = vunpack.c.h.bf16 %v296_v13  ;;  %v363_v21 = vunpack.c.l.bf16 %v295_v12  ;;  %v365_v22 = vunpack.c.l.bf16 %v296_v13  ;;  %v311_v61 = vld [vmem:[%s2103_s24 + $0xa0] sm:$0xff]  ;;  %v313_v4 = vld [vmem:[%s2103_s24 + $0xb0] sm:$0xff]  ;;  %282 = vst.msk [vmem:[#allocation2 + $0xb8] sm:$0xff] %vm258_vm0, %v1828_v2 }
  0x25   : > { %603 = vmatprep.subr.mxu0 %v1828_v2  ;;  %828 = vmatprep.subr.mxu1 %v1828_v2  ;;  %v368_v23 = vunpack.c.h.bf16 %v297_v19  ;;  %v370_v24 = vunpack.c.h.bf16 %v298_v20  ;;  %v312_v62 = vld [vmem:[%s2103_s24 + $0xa8] sm:$0xff]  ;;  %v399_v12 = vunpack.c.l.bf16 %v313_v4  ;;  %283 = vst.msk [vmem:[#allocation2 + $0xc0] sm:$0xff] %vm258_vm0, %v1828_v2  ;;  %284 = vst.msk [vmem:[#allocation2 + $0xc8] sm:$0xff] %vm258_vm0, %v1828_v2 }
  0x26   : > { %604 = vmatpush1.msra.mxu0 %v518_v25  ;;  %829 = vmatpush1.msra.mxu1 %v550_v26  ;;  %v299_v25 = vld [vmem:[%s2103_s24 + $0x40] sm:$0xff]  ;;  %v300_v26 = vld [vmem:[%s2103_s24 + $0x48] sm:$0xff]  ;;  %v398_v3 = vunpack.c.h.bf16 %v312_v62  ;;  %285 = vst.msk [vmem:[#allocation2 + $0xd0] sm:$0xff] %vm258_vm0, %v1828_v2  ;;  %286 = vst.msk [vmem:[#allocation2 + $0xd8] sm:$0xff] %vm258_vm0, %v1828_v2 }
  0x27   : > { %605 = vmatprep.subr.mxu0 %v1828_v2  ;;  %830 = vmatprep.subr.mxu1 %v1828_v2  ;;  %287 = vst.msk [vmem:[#allocation2 + $0xe0] sm:$0xff] %vm258_vm0, %v1828_v2  ;;  %288 = vst.msk [vmem:[#allocation2 + $0xe8] sm:$0xff] %vm258_vm0, %v1828_v2 }
  0x28   : > { %606 = vmatpush1.msra.mxu0 %v517_v27  ;;  %831 = vmatpush1.msra.mxu1 %v549_v28  ;;  %v367_v27 = vunpack.c.l.bf16 %v297_v19  ;;  %v369_v28 = vunpack.c.l.bf16 %v298_v20  ;;  %289 = vst.msk [vmem:[#allocation2 + $0xf0] sm:$0xff] %vm258_vm0, %v1828_v2  ;;  %290 = vst.msk [vmem:[#allocation2 + $0xf8] sm:$0xff] %vm258_vm0, %v1828_v2 }
  0x29   : > { %607 = vmatprep.subr.mxu0 %v1828_v2  ;;  %832 = vmatprep.subr.mxu1 %v1828_v2 }
  0x2a   : > { %608 = vmatpush1.msra.mxu0 %v516_v29  ;;  %833 = vmatpush1.msra.mxu1 %v548_v30  ;;  %v372_v29 = vunpack.c.h.bf16 %v299_v25  ;;  %v374_v30 = vunpack.c.h.bf16 %v300_v26 }
  0x2b   : > { %609 = vmatprep.subr.mxu0 %v1828_v2  ;;  %834 = vmatprep.subr.mxu1 %v1828_v2 }
  0x2c   : > { %610 = vmatpush1.msra.mxu0 %v515_v31  ;;  %835 = vmatpush1.msra.mxu1 %v547_v32  ;;  %v301_v31 = vld [vmem:[%s2103_s24 + $0x50] sm:$0xff]  ;;  %v302_v32 = vld [vmem:[%s2103_s24 + $0x58] sm:$0xff] }
  0x2d   : > { %611 = vmatprep.subr.mxu0 %v1828_v2  ;;  %836 = vmatprep.subr.mxu1 %v1828_v2 }
  0x2e   : > { %612 = vmatpush2.msra.mxu0 %v546_v33  ;;  %837 = vmatpush2.msra.mxu1 %v578_v34  ;;  %v371_v33 = vunpack.c.l.bf16 %v299_v25  ;;  %v373_v34 = vunpack.c.l.bf16 %v300_v26 }
  0x2f   : > { %613 = vmatprep.subr.mxu0 %v1828_v2  ;;  %838 = vmatprep.subr.mxu1 %v1828_v2 }
  0x30   : > { %614 = vmatpush2.msra.mxu0 %v545_v35  ;;  %839 = vmatpush2.msra.mxu1 %v577_v36  ;;  %v376_v35 = vunpack.c.h.bf16 %v301_v31  ;;  %v378_v36 = vunpack.c.h.bf16 %v302_v32 }
  0x31   : > { %615 = vmatprep.subr.mxu0 %v1828_v2  ;;  %840 = vmatprep.subr.mxu1 %v1828_v2 }
  0x32   : > { %616 = vmatpush2.msra.mxu0 %v544_v37  ;;  %841 = vmatpush2.msra.mxu1 %v576_v38  ;;  %v303_v37 = vld [vmem:[%s2103_s24 + $0x60] sm:$0xff]  ;;  %v304_v38 = vld [vmem:[%s2103_s24 + $0x68] sm:$0xff] }
  0x33   : > { %617 = vmatprep.subr.mxu0 %v1828_v2  ;;  %842 = vmatprep.subr.mxu1 %v1828_v2 }
  0x34   : > { %618 = vmatpush2.msra.mxu0 %v543_v39  ;;  %843 = vmatpush2.msra.mxu1 %v575_v40  ;;  %v375_v39 = vunpack.c.l.bf16 %v301_v31  ;;  %v377_v40 = vunpack.c.l.bf16 %v302_v32 }
  0x35   : > { %619 = vmatprep.subr.mxu0 %v1828_v2  ;;  %844 = vmatprep.subr.mxu1 %v1828_v2 }
  0x36   : > { %620 = vmatpush2.msra.mxu0 %v542_v41  ;;  %845 = vmatpush2.msra.mxu1 %v574_v42  ;;  %v380_v41 = vunpack.c.h.bf16 %v303_v37  ;;  %v382_v42 = vunpack.c.h.bf16 %v304_v38 }
  0x37   : > { %621 = vmatprep.subr.mxu0 %v1828_v2  ;;  %846 = vmatprep.subr.mxu1 %v1828_v2 }
  0x38   : > { %622 = vmatpush2.msra.mxu0 %v541_v43  ;;  %847 = vmatpush2.msra.mxu1 %v573_v44  ;;  %v305_v43 = vld [vmem:[%s2103_s24 + $0x70] sm:$0xff]  ;;  %v306_v44 = vld [vmem:[%s2103_s24 + $0x78] sm:$0xff] }
  0x39   : > { %623 = vmatprep.subr.mxu0 %v1828_v2  ;;  %848 = vmatprep.subr.mxu1 %v1828_v2 }
  0x3a   : > { %624 = vmatpush2.msra.mxu0 %v540_v45  ;;  %849 = vmatpush2.msra.mxu1 %v572_v46  ;;  %v379_v45 = vunpack.c.l.bf16 %v303_v37  ;;  %v381_v46 = vunpack.c.l.bf16 %v304_v38 }
  0x3b   : > { %625 = vmatprep.subr.mxu0 %v1828_v2  ;;  %850 = vmatprep.subr.mxu1 %v1828_v2 }
  0x3c   : > { %626 = vmatpush2.msra.mxu0 %v539_v47  ;;  %851 = vmatpush2.msra.mxu1 %v571_v48  ;;  %v384_v47 = vunpack.c.h.bf16 %v305_v43  ;;  %v386_v48 = vunpack.c.h.bf16 %v306_v44 }
  0x3d   : > { %627 = vmatprep.subr.mxu0 %v1828_v2  ;;  %852 = vmatprep.subr.mxu1 %v1828_v2 }
  0x3e   : > { %628 = vmatpush2.msra.mxu0 %v538_v49  ;;  %853 = vmatpush2.msra.mxu1 %v570_v50  ;;  %v307_v49 = vld [vmem:[%s2103_s24 + $0x80] sm:$0xff]  ;;  %v308_v50 = vld [vmem:[%s2103_s24 + $0x88] sm:$0xff] }
  0x3f   : > { %629 = vmatprep.subr.mxu0 %v1828_v2  ;;  %854 = vmatprep.subr.mxu1 %v1828_v2 }
  0x40   : > { %630 = vmatpush2.msra.mxu0 %v537_v51  ;;  %855 = vmatpush2.msra.mxu1 %v569_v52  ;;  %v383_v51 = vunpack.c.l.bf16 %v305_v43  ;;  %v385_v52 = vunpack.c.l.bf16 %v306_v44 }
  0x41   : > { %631 = vmatprep.subr.mxu0 %v1828_v2  ;;  %856 = vmatprep.subr.mxu1 %v1828_v2 }
  0x42   : > { %632 = vmatpush2.msra.mxu0 %v536_v53  ;;  %857 = vmatpush2.msra.mxu1 %v568_v54  ;;  %v388_v53 = vunpack.c.h.bf16 %v307_v49  ;;  %v390_v54 = vunpack.c.h.bf16 %v308_v50 }
  0x43   : > { %633 = vmatprep.subr.mxu0 %v1828_v2  ;;  %858 = vmatprep.subr.mxu1 %v1828_v2 }
  0x44   : > { %634 = vmatpush2.msra.mxu0 %v535_v55  ;;  %859 = vmatpush2.msra.mxu1 %v567_v56  ;;  %v309_v55 = vld [vmem:[%s2103_s24 + $0x90] sm:$0xff]  ;;  %v310_v56 = vld [vmem:[%s2103_s24 + $0x98] sm:$0xff] }
  0x45   : > { %635 = vmatprep.subr.mxu0 %v1828_v2  ;;  %860 = vmatprep.subr.mxu1 %v1828_v2 }
  0x46   : > { %636 = vmatpush2.msra.mxu0 %v534_v57  ;;  %861 = vmatpush2.msra.mxu1 %v566_v58  ;;  %v387_v57 = vunpack.c.l.bf16 %v307_v49  ;;  %v389_v58 = vunpack.c.l.bf16 %v308_v50 }
  0x47   : > { %637 = vmatprep.subr.mxu0 %v1828_v2  ;;  %862 = vmatprep.subr.mxu1 %v1828_v2 }
  0x48   : > { %638 = vmatpush2.msra.mxu0 %v533_v59  ;;  %863 = vmatpush2.msra.mxu1 %v565_v60  ;;  %v392_v59 = vunpack.c.h.bf16 %v309_v55  ;;  %v394_v60 = vunpack.c.h.bf16 %v310_v56 }
  0x49   : > { %639 = vmatprep.subr.mxu0 %v1828_v2  ;;  %864 = vmatprep.subr.mxu1 %v1828_v2 }
  0x4a   : > { %640 = vmatpush2.msra.mxu0 %v532_v63  ;;  %865 = vmatpush2.msra.mxu1 %v564_v0  ;;  %v391_v63 = vunpack.c.l.bf16 %v309_v55  ;;  %v393_v0 = vunpack.c.l.bf16 %v310_v56 }
  0x4b   : > { %641 = vmatprep.subr.mxu0 %v1828_v2  ;;  %866 = vmatprep.subr.mxu1 %v1828_v2 }
  0x4c   : > { %642 = vmatpush2.msra.mxu0 %v531_v5  ;;  %643 = vmatprep.mubr.f32.mxu0 %v356_v1  ;;  %v396_v1 = vunpack.c.h.bf16 %v311_v61  ;;  %v314_v5 = vld [vmem:[%s2103_s24 + $0xb8] sm:$0xff] }
  0x4d   : > { %867 = vmatpush2.msra.mxu1 %v563_v8  ;;  %868 = vmatprep.mubr.f32.mxu1 %v358_v6  ;;  %v395_v6 = vunpack.c.l.bf16 %v311_v61  ;;  %v400_v8 = vunpack.c.h.bf16 %v313_v4  ;;  %v401_v13 = vunpack.c.l.bf16 %v314_v5 }
  0x4e   : > { %644 = vmatmul.mubr.f32.vlgmr.msra.gmra.mxu0 %v355_v7  ;;  %869 = vmatmul.mubr.f32.vlgmr.msra.gmra.mxu1 %v357_v9  ;;  %v397_v7 = vunpack.c.l.bf16 %v312_v62  ;;  %v402_v9 = vunpack.c.h.bf16 %v314_v5 }
  0x4f   : > { %648 = vmatprep.mubr.f32.mxu0 %v360_v10  ;;  %873 = vmatprep.mubr.f32.mxu1 %v362_v11  ;;  %v315_v10 = vld [vmem:[%s2103_s24 + $0xc0] sm:$0xff]  ;;  %v316_v11 = vld [vmem:[%s2103_s24 + $0xc8] sm:$0xff] }
  0x50   : > { %1723 = vmatprep.subr.mxu0 %v1201_v14  ;;  %1775 = vmatprep.subr.mxu1 %v1201_v14  ;;  %v405_v19 = vunpack.c.l.bf16 %v316_v11 }
  0x51   : > { %1724 = vmatpush3.msra.mxu0 %v1201_v14  ;;  %1777 = vmatpush3.msra.mxu1 %v1201_v14  ;;  %v404_v14 = vunpack.c.h.bf16 %v315_v10 }
  0x52   : > { %649 = vmatmul.mubr.f32.gmra.mxu0 %v359_v15  ;;  %874 = vmatmul.mubr.f32.gmra.mxu1 %v361_v16  ;;  %v406_v15 = vunpack.c.h.bf16 %v316_v11  ;;  %v317_v16 = vld [vmem:[%s2103_s24 + $0xd0] sm:$0xff] }
  0x53   : > { %653 = vmatprep.mubr.f32.mxu0 %v364_v17  ;;  %878 = vmatprep.mubr.f32.mxu1 %v366_v18  ;;  %v318_v17 = vld [vmem:[%s2103_s24 + $0xd8] sm:$0xff]  ;;  %v403_v18 = vunpack.c.l.bf16 %v315_v10  ;;  %v408_v20 = vunpack.c.h.bf16 %v317_v16 }
  0x54   : > { %v409_v25 = vunpack.c.l.bf16 %v318_v17 }
  0x56   : > { %654 = vmatmul.mubr.f32.gmra.mxu0 %v363_v21  ;;  %879 = vmatmul.mubr.f32.gmra.mxu1 %v365_v22  ;;  %v410_v21 = vunpack.c.h.bf16 %v318_v17  ;;  %v319_v22 = vld [vmem:[%s2103_s24 + $0xe0] sm:$0xff] }
  0x57   : > { %658 = vmatprep.mubr.f32.mxu0 %v368_v23  ;;  %883 = vmatprep.mubr.f32.mxu1 %v370_v24  ;;  %v320_v23 = vld [vmem:[%s2103_s24 + $0xe8] sm:$0xff]  ;;  %v407_v24 = vunpack.c.l.bf16 %v317_v16  ;;  %v412_v26 = vunpack.c.h.bf16 %v319_v22 }
  0x58   : > { %v413_v31 = vunpack.c.l.bf16 %v320_v23 }
  0x5a   : > { %659 = vmatmul.mubr.f32.gmra.mxu0 %v367_v27  ;;  %884 = vmatmul.mubr.f32.gmra.mxu1 %v369_v28  ;;  %v414_v27 = vunpack.c.h.bf16 %v320_v23  ;;  %v321_v28 = vld [vmem:[%s2103_s24 + $0xf0] sm:$0xff] }
  0x5b   : > { %663 = vmatprep.mubr.f32.mxu0 %v372_v29  ;;  %888 = vmatprep.mubr.f32.mxu1 %v374_v30  ;;  %v322_v29 = vld [vmem:[%s2103_s24 + $0xf8] sm:$0xff]  ;;  %v411_v30 = vunpack.c.l.bf16 %v319_v22  ;;  %v416_v32 = vunpack.c.h.bf16 %v321_v28 }
  0x5c   : > { %v417_v37 = vunpack.c.l.bf16 %v322_v29 }
  0x5e   : > { %664 = vmatmul.mubr.f32.gmra.mxu0 %v371_v33  ;;  %889 = vmatmul.mubr.f32.gmra.mxu1 %v373_v34  ;;  %v418_v33 = vunpack.c.h.bf16 %v322_v29  ;;  %v323_v34 = vld [vmem:[%s2103_s24 + $0x100] sm:$0xff] }
  0x5f   : > { %668 = vmatprep.mubr.f32.mxu0 %v376_v35  ;;  %893 = vmatprep.mubr.f32.mxu1 %v378_v36  ;;  %v324_v35 = vld [vmem:[%s2103_s24 + $0x108] sm:$0xff]  ;;  %v415_v36 = vunpack.c.l.bf16 %v321_v28  ;;  %v420_v38 = vunpack.c.h.bf16 %v323_v34 }
  0x60   : > { %v421_v43 = vunpack.c.l.bf16 %v324_v35 }
  0x62   : > { %669 = vmatmul.mubr.f32.gmra.mxu0 %v375_v39  ;;  %894 = vmatmul.mubr.f32.gmra.mxu1 %v377_v40  ;;  %v422_v39 = vunpack.c.h.bf16 %v324_v35  ;;  %v325_v40 = vld [vmem:[%s2103_s24 + $0x110] sm:$0xff] }
  0x63   : > { %673 = vmatprep.mubr.f32.mxu0 %v380_v41  ;;  %898 = vmatprep.mubr.f32.mxu1 %v382_v42  ;;  %v326_v41 = vld [vmem:[%s2103_s24 + $0x118] sm:$0xff]  ;;  %v419_v42 = vunpack.c.l.bf16 %v323_v34  ;;  %v424_v44 = vunpack.c.h.bf16 %v325_v40 }
  0x64   : > { %v425_v49 = vunpack.c.l.bf16 %v326_v41 }
  0x66   : > { %674 = vmatmul.mubr.f32.gmra.mxu0 %v379_v45  ;;  %899 = vmatmul.mubr.f32.gmra.mxu1 %v381_v46  ;;  %v426_v45 = vunpack.c.h.bf16 %v326_v41  ;;  %v327_v46 = vld [vmem:[%s2103_s24 + $0x120] sm:$0xff] }
  0x67   : > { %678 = vmatprep.mubr.f32.mxu0 %v384_v47  ;;  %903 = vmatprep.mubr.f32.mxu1 %v386_v48  ;;  %v328_v47 = vld [vmem:[%s2103_s24 + $0x128] sm:$0xff]  ;;  %v423_v48 = vunpack.c.l.bf16 %v325_v40  ;;  %v428_v2 = vunpack.c.h.bf16 %v327_v46 }
  0x68   : > { %v430_v50 = vunpack.c.h.bf16 %v328_v47 }
  0x6a   : > { %679 = vmatmul.mubr.f32.gmra.mxu0 %v383_v51  ;;  %904 = vmatmul.mubr.f32.gmra.mxu1 %v385_v52  ;;  %v329_v51 = vld [vmem:[%s2103_s24 + $0x130] sm:$0xff]  ;;  %v330_v52 = vld [vmem:[%s2103_s24 + $0x138] sm:$0xff] }
  0x6b   : > { %683 = vmatprep.mubr.f32.mxu0 %v388_v53  ;;  %908 = vmatprep.mubr.f32.mxu1 %v390_v54  ;;  %v427_v53 = vunpack.c.l.bf16 %v327_v46  ;;  %v429_v54 = vunpack.c.l.bf16 %v328_v47  ;;  %v432_v55 = vunpack.c.h.bf16 %v329_v51  ;;  %v434_v56 = vunpack.c.h.bf16 %v330_v52 }
  0x6e   : > { %684 = vmatmul.mubr.f32.gmra.mxu0 %v387_v57  ;;  %909 = vmatmul.mubr.f32.gmra.mxu1 %v389_v58  ;;  %v331_v57 = vld [vmem:[%s2103_s24 + $0x140] sm:$0xff]  ;;  %v332_v58 = vld [vmem:[%s2103_s24 + $0x148] sm:$0xff] }
  0x6f   : > { %688 = vmatprep.mubr.f32.mxu0 %v392_v59  ;;  %913 = vmatprep.mubr.f32.mxu1 %v394_v60  ;;  %v431_v59 = vunpack.c.l.bf16 %v329_v51  ;;  %v433_v60 = vunpack.c.l.bf16 %v330_v52  ;;  %v436_v61 = vunpack.c.h.bf16 %v331_v57  ;;  %v438_v62 = vunpack.c.h.bf16 %v332_v58 }
  0x72   : > { %689 = vmatmul.mubr.f32.gmra.mxu0 %v391_v63  ;;  %914 = vmatmul.mubr.f32.gmra.mxu1 %v393_v0  ;;  %v333_v63 = vld [vmem:[%s2103_s24 + $0x150] sm:$0xff]  ;;  %v334_v0 = vld [vmem:[%s2103_s24 + $0x158] sm:$0xff] }
  0x73   : > { %693 = vmatprep.mubr.f32.mxu0 %v396_v1  ;;  %918 = vmatprep.mubr.f32.mxu1 %v398_v3  ;;  %v435_v1 = vunpack.c.l.bf16 %v331_v57  ;;  %v437_v3 = vunpack.c.l.bf16 %v332_v58  ;;  %v440_v4 = vunpack.c.h.bf16 %v333_v63  ;;  %v442_v5 = vunpack.c.h.bf16 %v334_v0 }
  0x76   : > { %694 = vmatmul.mubr.f32.gmra.mxu0 %v395_v6  ;;  %919 = vmatmul.mubr.f32.gmra.mxu1 %v397_v7  ;;  %v335_v6 = vld [vmem:[%s2103_s24 + $0x160] sm:$0xff]  ;;  %v336_v7 = vld [vmem:[%s2103_s24 + $0x168] sm:$0xff] }
  0x77   : > { %698 = vmatprep.mubr.f32.mxu0 %v400_v8  ;;  %923 = vmatprep.mubr.f32.mxu1 %v402_v9  ;;  %v439_v8 = vunpack.c.l.bf16 %v333_v63  ;;  %v441_v9 = vunpack.c.l.bf16 %v334_v0  ;;  %v444_v10 = vunpack.c.h.bf16 %v335_v6  ;;  %v446_v11 = vunpack.c.h.bf16 %v336_v7 }
  0x78   : > { %v445_v16 = vunpack.c.l.bf16 %v336_v7 }
  0x7a   : > { %699 = vmatmul.mubr.f32.gmra.mxu0 %v399_v12  ;;  %924 = vmatmul.mubr.f32.gmra.mxu1 %v401_v13  ;;  %v337_v12 = vld [vmem:[%s2103_s24 + $0x170] sm:$0xff]  ;;  %v338_v13 = vld [vmem:[%s2103_s24 + $0x178] sm:$0xff] }
  0x7b   : > { %703 = vmatprep.mubr.f32.mxu0 %v404_v14  ;;  %928 = vmatprep.mubr.f32.mxu1 %v406_v15  ;;  %v1200_v14 = vld [vmem:[%s2456_s3] sm:$0xff]  ;;  %v443_v15 = vunpack.c.l.bf16 %v335_v6  ;;  %v448_v17 = vunpack.c.h.bf16 %v337_v12  ;;  %v449_v22 = vunpack.c.l.bf16 %v338_v13 }
  0x7c   : > { %1725 = vmatprep.subr.mxu0 %v1200_v14  ;;  %1776 = vmatprep.subr.mxu1 %v1200_v14  ;;  %v483_v6 = vld [vmem:[#allocation2] sm:$0xff] }
  0x7d   : > { %1726 = vmatpush3.msra.mxu0 %v1200_v14  ;;  %1778 = vmatpush3.msra.mxu1 %v1200_v14 }
  0x7e   : > { %704 = vmatmul.mubr.f32.gmra.mxu0 %v403_v18  ;;  %929 = vmatmul.mubr.f32.gmra.mxu1 %v405_v19  ;;  %v450_v18 = vunpack.c.h.bf16 %v338_v13  ;;  %v339_v19 = vld [vmem:[%s2103_s24 + $0x180] sm:$0xff]  ;;  %v484_v13 = vld [vmem:[#allocation2 + $0x8] sm:$0xff] }
  0x7f   : > { %708 = vmatprep.mubr.f32.mxu0 %v408_v20  ;;  %933 = vmatprep.mubr.f32.mxu1 %v410_v21  ;;  %v340_v20 = vld [vmem:[%s2103_s24 + $0x188] sm:$0xff]  ;;  %v447_v21 = vunpack.c.l.bf16 %v337_v12  ;;  %v452_v23 = vunpack.c.h.bf16 %v339_v19 }
  0x80   : > { %v453_v28 = vunpack.c.l.bf16 %v340_v20 }
  0x82   : > { %709 = vmatmul.mubr.f32.gmra.mxu0 %v407_v24  ;;  %934 = vmatmul.mubr.f32.gmra.mxu1 %v409_v25  ;;  %v454_v24 = vunpack.c.h.bf16 %v340_v20  ;;  %v341_v25 = vld [vmem:[%s2103_s24 + $0x190] sm:$0xff] }
  0x83   : > { %713 = vmatprep.mubr.f32.mxu0 %v412_v26  ;;  %938 = vmatprep.mubr.f32.mxu1 %v414_v27  ;;  %v342_v26 = vld [vmem:[%s2103_s24 + $0x198] sm:$0xff]  ;;  %v451_v27 = vunpack.c.l.bf16 %v339_v19  ;;  %v456_v29 = vunpack.c.h.bf16 %v341_v25  ;;  %v485_v20 = vld [vmem:[#allocation2 + $0x10] sm:$0xff] }
  0x84   : > { %v457_v34 = vunpack.c.l.bf16 %v342_v26 }
  0x86   : > { %714 = vmatmul.mubr.f32.gmra.mxu0 %v411_v30  ;;  %939 = vmatmul.mubr.f32.gmra.mxu1 %v413_v31  ;;  %v458_v30 = vunpack.c.h.bf16 %v342_v26  ;;  %v343_v31 = vld [vmem:[%s2103_s24 + $0x1a0] sm:$0xff] }
  0x87   : > { %718 = vmatprep.mubr.f32.mxu0 %v416_v32  ;;  %943 = vmatprep.mubr.f32.mxu1 %v418_v33  ;;  %v344_v32 = vld [vmem:[%s2103_s24 + $0x1a8] sm:$0xff]  ;;  %v455_v33 = vunpack.c.l.bf16 %v341_v25  ;;  %v460_v35 = vunpack.c.h.bf16 %v343_v31  ;;  %v2278_v25 = vld [vmem:[%s2455_s2] ss:$0 sm:$0xff] }
  0x88   : > { %v461_v40 = vunpack.c.l.bf16 %v344_v32 }
  0x8a   : > { %719 = vmatmul.mubr.f32.gmra.mxu0 %v415_v36  ;;  %944 = vmatmul.mubr.f32.gmra.mxu1 %v417_v37  ;;  %v462_v36 = vunpack.c.h.bf16 %v344_v32  ;;  %v345_v37 = vld [vmem:[%s2103_s24 + $0x1b0] sm:$0xff] }
  0x8b   : > { %723 = vmatprep.mubr.f32.mxu0 %v420_v38  ;;  %948 = vmatprep.mubr.f32.mxu1 %v422_v39  ;;  %v346_v38 = vld [vmem:[%s2103_s24 + $0x1b8] sm:$0xff]  ;;  %v459_v39 = vunpack.c.l.bf16 %v343_v31  ;;  %v464_v41 = vunpack.c.h.bf16 %v345_v37 }
  0x8c   : > { %v465_v46 = vunpack.c.l.bf16 %v346_v38 }
  0x8e   : > { %724 = vmatmul.mubr.f32.gmra.mxu0 %v419_v42  ;;  %949 = vmatmul.mubr.f32.gmra.mxu1 %v421_v43  ;;  %v466_v42 = vunpack.c.h.bf16 %v346_v38  ;;  %v347_v43 = vld [vmem:[%s2103_s24 + $0x1c0] sm:$0xff] }
  0x8f   : > { %728 = vmatprep.mubr.f32.mxu0 %v424_v44  ;;  %953 = vmatprep.mubr.f32.mxu1 %v426_v45  ;;  %v348_v44 = vld [vmem:[%s2103_s24 + $0x1c8] sm:$0xff]  ;;  %v463_v45 = vunpack.c.l.bf16 %v345_v37  ;;  %v468_v47 = vunpack.c.h.bf16 %v347_v43  ;;  %v487_v38 = vld [vmem:[#allocation2 + $0x20] sm:$0xff] }
  0x90   : > { %v469_v51 = vunpack.c.l.bf16 %v348_v44 }
  0x92   : > { %729 = vmatmul.mubr.f32.gmra.mxu0 %v423_v48  ;;  %954 = vmatmul.mubr.f32.gmra.mxu1 %v425_v49  ;;  %v470_v48 = vunpack.c.h.bf16 %v348_v44  ;;  %v349_v49 = vld [vmem:[%s2103_s24 + $0x1d0] sm:$0xff] }
  0x93   : > { %733 = vmatprep.mubr.f32.mxu0 %v428_v2  ;;  %958 = vmatprep.mubr.f32.mxu1 %v430_v50  ;;  %v350_v2 = vld [vmem:[%s2103_s24 + $0x1d8] sm:$0xff]  ;;  %v467_v50 = vunpack.c.l.bf16 %v347_v43  ;;  %v472_v52 = vunpack.c.h.bf16 %v349_v49 }
  0x94   : > { %v473_v57 = vunpack.c.l.bf16 %v350_v2 }
  0x96   : > { %734 = vmatmul.mubr.f32.gmra.mxu0 %v427_v53  ;;  %959 = vmatmul.mubr.f32.gmra.mxu1 %v429_v54  ;;  %v474_v53 = vunpack.c.h.bf16 %v350_v2  ;;  %v351_v54 = vld [vmem:[%s2103_s24 + $0x1e0] sm:$0xff] }
  0x97   : > { %738 = vmatprep.mubr.f32.mxu0 %v432_v55  ;;  %963 = vmatprep.mubr.f32.mxu1 %v434_v56  ;;  %v352_v55 = vld [vmem:[%s2103_s24 + $0x1e8] sm:$0xff]  ;;  %v471_v56 = vunpack.c.l.bf16 %v349_v49  ;;  %v476_v58 = vunpack.c.h.bf16 %v351_v54 }
  0x98   : > { %v477_v63 = vunpack.c.l.bf16 %v352_v55 }
  0x9a   : > { %739 = vmatmul.mubr.f32.gmra.mxu0 %v431_v59  ;;  %964 = vmatmul.mubr.f32.gmra.mxu1 %v433_v60  ;;  %v478_v59 = vunpack.c.h.bf16 %v352_v55  ;;  %v353_v60 = vld [vmem:[%s2103_s24 + $0x1f0] sm:$0xff] }
  0x9b   : > { %743 = vmatprep.mubr.f32.mxu0 %v436_v61  ;;  %968 = vmatprep.mubr.f32.mxu1 %v438_v62  ;;  %v354_v61 = vld [vmem:[%s2103_s24 + $0x1f8] sm:$0xff]  ;;  %v475_v62 = vunpack.c.l.bf16 %v351_v54  ;;  %v480_v0 = vunpack.c.h.bf16 %v353_v60 }
  0x9e   : > { %744 = vmatmul.mubr.f32.gmra.mxu0 %v435_v1  ;;  %969 = vmatmul.mubr.f32.gmra.mxu1 %v437_v3  ;;  %v482_v1 = vunpack.c.h.bf16 %v354_v61  ;;  %v479_v3 = vunpack.c.l.bf16 %v353_v60 }
  0x9f   : > { %748 = vmatprep.mubr.f32.mxu0 %v440_v4  ;;  %973 = vmatprep.mubr.f32.mxu1 %v442_v5  ;;  %v481_v4 = vunpack.c.l.bf16 %v354_v61 }
  0xa2   : > { %749 = vmatmul.mubr.f32.gmra.mxu0 %v439_v8  ;;  %974 = vmatmul.mubr.f32.gmra.mxu1 %v441_v9 }
  0xa3   : > { %753 = vmatprep.mubr.f32.mxu0 %v444_v10  ;;  %978 = vmatprep.mubr.f32.mxu1 %v446_v11 }
  0xa6   : > { %754 = vmatmul.mubr.f32.gmra.mxu0 %v443_v15  ;;  %979 = vmatmul.mubr.f32.gmra.mxu1 %v445_v16 }
  0xa7   : > { %758 = vmatprep.mubr.f32.mxu0 %v448_v17  ;;  %983 = vmatprep.mubr.f32.mxu1 %v450_v18 }
  0xaa   : > { %759 = vmatmul.mubr.f32.gmra.mxu0 %v447_v21  ;;  %984 = vmatmul.mubr.f32.gmra.mxu1 %v449_v22 }
  0xab   : > { %763 = vmatprep.mubr.f32.mxu0 %v452_v23  ;;  %988 = vmatprep.mubr.f32.mxu1 %v454_v24 }
  0xae   : > { %764 = vmatmul.mubr.f32.gmra.mxu0 %v451_v27  ;;  %989 = vmatmul.mubr.f32.gmra.mxu1 %v453_v28  ;;  %v486_v28 = vld [vmem:[#allocation2 + $0x18] sm:$0xff] }
  0xaf   : > { %768 = vmatprep.mubr.f32.mxu0 %v456_v29  ;;  %993 = vmatprep.mubr.f32.mxu1 %v458_v30 }
  0xb2   : > { %769 = vmatmul.mubr.f32.gmra.mxu0 %v455_v33  ;;  %994 = vmatmul.mubr.f32.gmra.mxu1 %v457_v34 }
  0xb3   : > { %773 = vmatprep.mubr.f32.mxu0 %v460_v35  ;;  %998 = vmatprep.mubr.f32.mxu1 %v462_v36 }
  0xb6   : > { %774 = vmatmul.mubr.f32.gmra.mxu0 %v459_v39  ;;  %999 = vmatmul.mubr.f32.gmra.mxu1 %v461_v40 }
  0xb7   : > { %778 = vmatprep.mubr.f32.mxu0 %v464_v41  ;;  %1003 = vmatprep.mubr.f32.mxu1 %v466_v42 }
  0xba   : > { %779 = vmatmul.mubr.f32.gmra.mxu0 %v463_v45  ;;  %1004 = vmatmul.mubr.f32.gmra.mxu1 %v465_v46 }
  0xbb   : > { %783 = vmatprep.mubr.f32.mxu0 %v468_v47  ;;  %1008 = vmatprep.mubr.f32.mxu1 %v470_v48  ;;  %v488_v48 = vld [vmem:[#allocation2 + $0x28] sm:$0xff] }
  0xbe   : > { %784 = vmatmul.mubr.f32.gmra.mxu0 %v467_v50  ;;  %1009 = vmatmul.mubr.f32.gmra.mxu1 %v469_v51 }
  0xbf   : > { %788 = vmatprep.mubr.f32.mxu0 %v472_v52  ;;  %1013 = vmatprep.mubr.f32.mxu1 %v474_v53 }
  0xc2   : > { %789 = vmatmul.mubr.f32.gmra.mxu0 %v471_v56  ;;  %1014 = vmatmul.mubr.f32.gmra.mxu1 %v473_v57  ;;  %v489_v57 = vld [vmem:[#allocation2 + $0x30] sm:$0xff] }
  0xc3   : > { %793 = vmatprep.mubr.f32.mxu0 %v476_v58  ;;  %1018 = vmatprep.mubr.f32.mxu1 %v478_v59 }
  0xc6   : > { %794 = vmatmul.mubr.f32.gmra.mxu0 %v475_v62  ;;  %1019 = vmatmul.mubr.f32.gmra.mxu1 %v477_v63 }
  0xc7   : > { %798 = vmatprep.mubr.f32.mxu0 %v480_v0  ;;  %1023 = vmatprep.mubr.f32.mxu1 %v482_v1 }
  0xca   : > { %799 = vmatmul.mubr.f32.gmra.mxu0 %v479_v3  ;;  %1024 = vmatmul.mubr.f32.gmra.mxu1 %v481_v4  ;;  %v490_v4 = vld [vmem:[#allocation2 + $0x38] sm:$0xff] }
 0x10e   : > { %v645_v5 = vpop.f32.mrf.mxu0  ;;  %v870_v7 = vpop.f32.mrf.mxu1 }
 0x10f   : > { %v871_v8 = vadd.f32 %v870_v7, %v645_v5 }
 0x110   : > { %v647_v9 = vpop.f32.mrf.mxu0  ;;  %v872_v10 = vpop.f32.mrf.mxu1 }
 0x111   : > { %v1029_v11 = vadd.f32 %v871_v8, %v483_v6 }
 0x112   : > { %v650_v12 = vpop.f32.mrf.mxu0  ;;  %v875_v14 = vpop.f32.mrf.mxu1 }
 0x113   : > { %1062 = vst.msk [vmem:[#allocation2] sm:$0xff] %vm258_vm0, %v1029_v11  ;;  %v876_v15 = vadd.f32 %v875_v14, %v650_v12  ;;  %v491_v14 = vld [vmem:[#allocation2 + $0x40] sm:$0xff] }
 0x114   : > { %v652_v16 = vpop.f32.mrf.mxu0  ;;  %v877_v17 = vpop.f32.mrf.mxu1 }
 0x115   : > { %v1030_v18 = vadd.f32 %v876_v15, %v484_v13 }
 0x116   : > { %v655_v19 = vpop.f32.mrf.mxu0  ;;  %v880_v21 = vpop.f32.mrf.mxu1 }
 0x117   : > { %1063 = vst.msk [vmem:[#allocation2 + $0x8] sm:$0xff] %vm258_vm0, %v1030_v18  ;;  %v881_v22 = vadd.f32 %v880_v21, %v655_v19 }
 0x118   : > { %v657_v23 = vpop.f32.mrf.mxu0  ;;  %v882_v24 = vpop.f32.mrf.mxu1 }
 0x119   : > { %v1031_v26 = vadd.f32 %v881_v22, %v485_v20  ;;  %v492_v24 = vld [vmem:[#allocation2 + $0x48] sm:$0xff] }
 0x11a   : > { %v660_v27 = vpop.f32.mrf.mxu0  ;;  %v885_v29 = vpop.f32.mrf.mxu1  ;;  %v1097_v30 = vld [vmem:[#allocation2] sm:$0xff] }
 0x11b   : > { %1064 = vst.msk [vmem:[#allocation2 + $0x10] sm:$0xff] %vm258_vm0, %v1031_v26  ;;  %v886_v31 = vadd.f32 %v885_v29, %v660_v27  ;;  %v1136_v32 = vadd.f32 %v2278_v25, %v1097_v30 }
 0x11c   : > { %v662_v33 = vpop.f32.mrf.mxu0  ;;  %v887_v34 = vpop.f32.mrf.mxu1 }
 0x11d   : > { %v1032_v35 = vadd.f32 %v886_v31, %v486_v28  ;;  %v1168_v36 = vmax.f32 %v1136_v32, 0.0 }
 0x11e   : > { %v665_v37 = vpop.f32.mrf.mxu0  ;;  %v890_v39 = vpop.f32.mrf.mxu1  ;;  %v1098_v40 = vld [vmem:[#allocation2 + $0x8] sm:$0xff] }
 0x11f   : > { %1065 = vst.msk [vmem:[#allocation2 + $0x18] sm:$0xff] %vm258_vm0, %v1032_v35  ;;  %v891_v41 = vadd.f32 %v890_v39, %v665_v37  ;;  %1727 = vmatprep.mubr.msk.f32.mxu0 %vm258_vm0, %v1168_v36  ;;  %v1137_v42 = vadd.f32 %v2278_v25, %v1098_v40  ;;  %v493_v35 = vld [vmem:[#allocation2 + $0x50] sm:$0xff] }
 0x120   : > { %v667_v43 = vpop.f32.mrf.mxu0  ;;  %v892_v44 = vpop.f32.mrf.mxu1 }
 0x121   : > { %v1033_v45 = vadd.f32 %v891_v41, %v487_v38  ;;  %v1169_v46 = vmax.f32 %v1137_v42, 0.0 }
 0x122   : > { %v670_v47 = vpop.f32.mrf.mxu0  ;;  %v895_v49 = vpop.f32.mrf.mxu1  ;;  %v1099_v2 = vld [vmem:[#allocation2 + $0x10] sm:$0xff] }
 0x123   : > { %1066 = vst.msk [vmem:[#allocation2 + $0x20] sm:$0xff] %vm258_vm0, %v1033_v45  ;;  %v896_v50 = vadd.f32 %v895_v49, %v670_v47  ;;  %1728 = vmatmul.mubr.msk.f32.vlgmr.msra.gmra.mxu0 %vm258_vm0, %v1169_v46  ;;  %v1138_v51 = vadd.f32 %v2278_v25, %v1099_v2  ;;  %v494_v45 = vld [vmem:[#allocation2 + $0x58] sm:$0xff] }
 0x124   : > { %v672_v52 = vpop.f32.mrf.mxu0  ;;  %v897_v53 = vpop.f32.mrf.mxu1 }
 0x125   : > { %v1034_v54 = vadd.f32 %v896_v50, %v488_v48  ;;  %v1170_v55 = vmax.f32 %v1138_v51, 0.0 }
 0x126   : > { %v675_v56 = vpop.f32.mrf.mxu0  ;;  %v900_v58 = vpop.f32.mrf.mxu1  ;;  %v1100_v59 = vld [vmem:[#allocation2 + $0x18] sm:$0xff] }
 0x127   : > { %1067 = vst.msk [vmem:[#allocation2 + $0x28] sm:$0xff] %vm258_vm0, %v1034_v54  ;;  %v901_v60 = vadd.f32 %v900_v58, %v675_v56  ;;  %1730 = vmatprep.mubr.msk.f32.mxu0 %vm258_vm0, %v1170_v55  ;;  %v1139_v61 = vadd.f32 %v2278_v25, %v1100_v59  ;;  %v495_v54 = vld [vmem:[#allocation2 + $0x60] sm:$0xff] }
 0x128   : > { %v677_v62 = vpop.f32.mrf.mxu0  ;;  %v902_v63 = vpop.f32.mrf.mxu1 }
 0x129   : > { %v1035_v0 = vadd.f32 %v901_v60, %v489_v57  ;;  %v1171_v1 = vmax.f32 %v1139_v61, 0.0 }
 0x12a   : > { %v680_v3 = vpop.f32.mrf.mxu0  ;;  %v905_v5 = vpop.f32.mrf.mxu1  ;;  %v1101_v6 = vld [vmem:[#allocation2 + $0x20] sm:$0xff] }
 0x12b   : > { %1068 = vst.msk [vmem:[#allocation2 + $0x30] sm:$0xff] %vm258_vm0, %v1035_v0  ;;  %v906_v7 = vadd.f32 %v905_v5, %v680_v3  ;;  %1731 = vmatmul.mubr.msk.f32.gmra.mxu0 %vm258_vm0, %v1171_v1  ;;  %v1140_v8 = vadd.f32 %v2278_v25, %v1101_v6  ;;  %v496_v0 = vld [vmem:[#allocation2 + $0x68] sm:$0xff] }
 0x12c   : > { %v682_v9 = vpop.f32.mrf.mxu0  ;;  %v907_v10 = vpop.f32.mrf.mxu1 }
 0x12d   : > { %v1036_v11 = vadd.f32 %v906_v7, %v490_v4  ;;  %v1172_v12 = vmax.f32 %v1140_v8, 0.0 }
 0x12e   : > { %v685_v13 = vpop.f32.mrf.mxu0  ;;  %v910_v15 = vpop.f32.mrf.mxu1  ;;  %v1102_v16 = vld [vmem:[#allocation2 + $0x28] sm:$0xff] }
 0x12f   : > { %1069 = vst.msk [vmem:[#allocation2 + $0x38] sm:$0xff] %vm258_vm0, %v1036_v11  ;;  %v911_v17 = vadd.f32 %v910_v15, %v685_v13  ;;  %1733 = vmatprep.mubr.msk.f32.mxu0 %vm258_vm0, %v1172_v12  ;;  %v1141_v18 = vadd.f32 %v2278_v25, %v1102_v16  ;;  %v497_v11 = vld [vmem:[#allocation2 + $0x70] sm:$0xff] }
 0x130   : > { %v687_v19 = vpop.f32.mrf.mxu0  ;;  %v912_v20 = vpop.f32.mrf.mxu1 }
 0x131   : > { %v1037_v21 = vadd.f32 %v911_v17, %v491_v14  ;;  %v1173_v22 = vmax.f32 %v1141_v18, 0.0 }
 0x132   : > { %v690_v23 = vpop.f32.mrf.mxu0  ;;  %v915_v26 = vpop.f32.mrf.mxu1  ;;  %v1103_v27 = vld [vmem:[#allocation2 + $0x30] sm:$0xff] }
 0x133   : > { %1070 = vst.msk [vmem:[#allocation2 + $0x40] sm:$0xff] %vm258_vm0, %v1037_v21  ;;  %v916_v28 = vadd.f32 %v915_v26, %v690_v23  ;;  %1734 = vmatmul.mubr.msk.f32.gmra.mxu0 %vm258_vm0, %v1173_v22  ;;  %v1142_v29 = vadd.f32 %v2278_v25, %v1103_v27  ;;  %v498_v21 = vld [vmem:[#allocation2 + $0x78] sm:$0xff] }
 0x134   : > { %v692_v30 = vpop.f32.mrf.mxu0  ;;  %v917_v31 = vpop.f32.mrf.mxu1 }
 0x135   : > { %v1038_v32 = vadd.f32 %v916_v28, %v492_v24  ;;  %v1174_v33 = vmax.f32 %v1142_v29, 0.0 }
 0x136   : > { %v695_v34 = vpop.f32.mrf.mxu0  ;;  %v920_v36 = vpop.f32.mrf.mxu1  ;;  %v1104_v37 = vld [vmem:[#allocation2 + $0x38] sm:$0xff] }
 0x137   : > { %1071 = vst.msk [vmem:[#allocation2 + $0x48] sm:$0xff] %vm258_vm0, %v1038_v32  ;;  %v921_v38 = vadd.f32 %v920_v36, %v695_v34  ;;  %1736 = vmatprep.mubr.msk.f32.mxu0 %vm258_vm0, %v1174_v33  ;;  %v1143_v39 = vadd.f32 %v2278_v25, %v1104_v37  ;;  %v499_v32 = vld [vmem:[#allocation2 + $0x80] sm:$0xff] }
 0x138   : > { %v697_v40 = vpop.f32.mrf.mxu0  ;;  %v922_v41 = vpop.f32.mrf.mxu1 }
 0x139   : > { %v1039_v42 = vadd.f32 %v921_v38, %v493_v35  ;;  %v1175_v43 = vmax.f32 %v1143_v39, 0.0 }
 0x13a   : > { %v700_v44 = vpop.f32.mrf.mxu0  ;;  %v925_v46 = vpop.f32.mrf.mxu1  ;;  %v1105_v47 = vld [vmem:[#allocation2 + $0x40] sm:$0xff] }
 0x13b   : > { %1072 = vst.msk [vmem:[#allocation2 + $0x50] sm:$0xff] %vm258_vm0, %v1039_v42  ;;  %v926_v48 = vadd.f32 %v925_v46, %v700_v44  ;;  %1737 = vmatmul.mubr.msk.f32.gmra.mxu0 %vm258_vm0, %v1175_v43  ;;  %v1144_v49 = vadd.f32 %v2278_v25, %v1105_v47  ;;  %v500_v42 = vld [vmem:[#allocation2 + $0x88] sm:$0xff] }
 0x13c   : > { %v702_v2 = vpop.f32.mrf.mxu0  ;;  %v927_v50 = vpop.f32.mrf.mxu1 }
 0x13d   : > { %v1040_v51 = vadd.f32 %v926_v48, %v494_v45  ;;  %v1176_v52 = vmax.f32 %v1144_v49, 0.0 }
 0x13e   : > { %v705_v53 = vpop.f32.mrf.mxu0  ;;  %v930_v55 = vpop.f32.mrf.mxu1  ;;  %v1106_v56 = vld [vmem:[#allocation2 + $0x48] sm:$0xff] }
 0x13f   : > { %1073 = vst.msk [vmem:[#allocation2 + $0x58] sm:$0xff] %vm258_vm0, %v1040_v51  ;;  %v931_v57 = vadd.f32 %v930_v55, %v705_v53  ;;  %1739 = vmatprep.mubr.msk.f32.mxu0 %vm258_vm0, %v1176_v52  ;;  %v1145_v58 = vadd.f32 %v2278_v25, %v1106_v56  ;;  %v501_v51 = vld [vmem:[#allocation2 + $0x90] sm:$0xff] }
 0x140   : > { %v707_v59 = vpop.f32.mrf.mxu0  ;;  %v932_v60 = vpop.f32.mrf.mxu1 }
 0x141   : > { %v1041_v61 = vadd.f32 %v931_v57, %v495_v54  ;;  %v1177_v62 = vmax.f32 %v1145_v58, 0.0 }
 0x142   : > { %v710_v63 = vpop.f32.mrf.mxu0  ;;  %v935_v1 = vpop.f32.mrf.mxu1  ;;  %v1107_v3 = vld [vmem:[#allocation2 + $0x50] sm:$0xff] }
 0x143   : > { %1074 = vst.msk [vmem:[#allocation2 + $0x60] sm:$0xff] %vm258_vm0, %v1041_v61  ;;  %v936_v4 = vadd.f32 %v935_v1, %v710_v63  ;;  %1740 = vmatmul.mubr.msk.f32.gmra.mxu0 %vm258_vm0, %v1177_v62  ;;  %v1146_v5 = vadd.f32 %v2278_v25, %v1107_v3  ;;  %v502_v61 = vld [vmem:[#allocation2 + $0x98] sm:$0xff] }
 0x144   : > { %v712_v6 = vpop.f32.mrf.mxu0  ;;  %v937_v7 = vpop.f32.mrf.mxu1 }
 0x145   : > { %v1042_v8 = vadd.f32 %v936_v4, %v496_v0  ;;  %v1178_v9 = vmax.f32 %v1146_v5, 0.0 }
 0x146   : > { %v715_v10 = vpop.f32.mrf.mxu0  ;;  %v940_v12 = vpop.f32.mrf.mxu1  ;;  %v1108_v13 = vld [vmem:[#allocation2 + $0x58] sm:$0xff] }
 0x147   : > { %1075 = vst.msk [vmem:[#allocation2 + $0x68] sm:$0xff] %vm258_vm0, %v1042_v8  ;;  %v941_v14 = vadd.f32 %v940_v12, %v715_v10  ;;  %1742 = vmatprep.mubr.msk.f32.mxu0 %vm258_vm0, %v1178_v9  ;;  %v1147_v15 = vadd.f32 %v2278_v25, %v1108_v13  ;;  %v503_v8 = vld [vmem:[#allocation2 + $0xa0] sm:$0xff] }
 0x148   : > { %v717_v16 = vpop.f32.mrf.mxu0  ;;  %v942_v17 = vpop.f32.mrf.mxu1 }
 0x149   : > { %v1043_v18 = vadd.f32 %v941_v14, %v497_v11  ;;  %v1179_v19 = vmax.f32 %v1147_v15, 0.0 }
 0x14a   : > { %v720_v20 = vpop.f32.mrf.mxu0  ;;  %v945_v22 = vpop.f32.mrf.mxu1  ;;  %v1109_v23 = vld [vmem:[#allocation2 + $0x60] sm:$0xff] }
 0x14b   : > { %1076 = vst.msk [vmem:[#allocation2 + $0x70] sm:$0xff] %vm258_vm0, %v1043_v18  ;;  %v946_v24 = vadd.f32 %v945_v22, %v720_v20  ;;  %1743 = vmatmul.mubr.msk.f32.gmra.mxu0 %vm258_vm0, %v1179_v19  ;;  %v1148_v26 = vadd.f32 %v2278_v25, %v1109_v23  ;;  %v504_v18 = vld [vmem:[#allocation2 + $0xa8] sm:$0xff] }
 0x14c   : > { %v722_v27 = vpop.f32.mrf.mxu0  ;;  %v947_v28 = vpop.f32.mrf.mxu1 }
 0x14d   : > { %v1044_v29 = vadd.f32 %v946_v24, %v498_v21  ;;  %v1180_v30 = vmax.f32 %v1148_v26, 0.0 }
 0x14e   : > { %v725_v31 = vpop.f32.mrf.mxu0  ;;  %v950_v33 = vpop.f32.mrf.mxu1  ;;  %v1110_v34 = vld [vmem:[#allocation2 + $0x68] sm:$0xff] }
 0x14f   : > { %1077 = vst.msk [vmem:[#allocation2 + $0x78] sm:$0xff] %vm258_vm0, %v1044_v29  ;;  %v951_v35 = vadd.f32 %v950_v33, %v725_v31  ;;  %1745 = vmatprep.mubr.msk.f32.mxu0 %vm258_vm0, %v1180_v30  ;;  %v1149_v36 = vadd.f32 %v2278_v25, %v1110_v34  ;;  %v505_v29 = vld [vmem:[#allocation2 + $0xb0] sm:$0xff] }
 0x150   : > { %v727_v37 = vpop.f32.mrf.mxu0  ;;  %v952_v38 = vpop.f32.mrf.mxu1 }
 0x151   : > { %v1045_v39 = vadd.f32 %v951_v35, %v499_v32  ;;  %v1181_v40 = vmax.f32 %v1149_v36, 0.0 }
 0x152   : > { %v730_v41 = vpop.f32.mrf.mxu0  ;;  %v955_v43 = vpop.f32.mrf.mxu1  ;;  %v1111_v44 = vld [vmem:[#allocation2 + $0x70] sm:$0xff] }
 0x153   : > { %1078 = vst.msk [vmem:[#allocation2 + $0x80] sm:$0xff] %vm258_vm0, %v1045_v39  ;;  %v956_v45 = vadd.f32 %v955_v43, %v730_v41  ;;  %1746 = vmatmul.mubr.msk.f32.gmra.mxu0 %vm258_vm0, %v1181_v40  ;;  %v1150_v46 = vadd.f32 %v2278_v25, %v1111_v44  ;;  %v506_v39 = vld [vmem:[#allocation2 + $0xb8] sm:$0xff] }
 0x154   : > { %v732_v47 = vpop.f32.mrf.mxu0  ;;  %v957_v48 = vpop.f32.mrf.mxu1 }
 0x155   : > { %v1046_v49 = vadd.f32 %v956_v45, %v500_v42  ;;  %v1182_v2 = vmax.f32 %v1150_v46, 0.0 }
 0x156   : > { %v735_v50 = vpop.f32.mrf.mxu0  ;;  %v960_v52 = vpop.f32.mrf.mxu1  ;;  %v1112_v53 = vld [vmem:[#allocation2 + $0x78] sm:$0xff] }
 0x157   : > { %1079 = vst.msk [vmem:[#allocation2 + $0x88] sm:$0xff] %vm258_vm0, %v1046_v49  ;;  %v961_v54 = vadd.f32 %v960_v52, %v735_v50  ;;  %1748 = vmatprep.mubr.msk.f32.mxu0 %vm258_vm0, %v1182_v2  ;;  %v1151_v55 = vadd.f32 %v2278_v25, %v1112_v53  ;;  %v507_v49 = vld [vmem:[#allocation2 + $0xc0] sm:$0xff] }
 0x158   : > { %v737_v56 = vpop.f32.mrf.mxu0  ;;  %v962_v57 = vpop.f32.mrf.mxu1 }
 0x159   : > { %v1047_v58 = vadd.f32 %v961_v54, %v501_v51  ;;  %v1183_v59 = vmax.f32 %v1151_v55, 0.0 }
 0x15a   : > { %v740_v60 = vpop.f32.mrf.mxu0  ;;  %v965_v62 = vpop.f32.mrf.mxu1  ;;  %v1113_v63 = vld [vmem:[#allocation2 + $0x80] sm:$0xff] }
 0x15b   : > { %1080 = vst.msk [vmem:[#allocation2 + $0x90] sm:$0xff] %vm258_vm0, %v1047_v58  ;;  %v966_v0 = vadd.f32 %v965_v62, %v740_v60  ;;  %1749 = vmatmul.mubr.msk.f32.gmra.mxu0 %vm258_vm0, %v1183_v59  ;;  %v1152_v1 = vadd.f32 %v2278_v25, %v1113_v63  ;;  %v508_v58 = vld [vmem:[#allocation2 + $0xc8] sm:$0xff] }
 0x15c   : > { %v742_v3 = vpop.f32.mrf.mxu0  ;;  %v967_v4 = vpop.f32.mrf.mxu1 }
 0x15d   : > { %v1048_v5 = vadd.f32 %v966_v0, %v502_v61  ;;  %v1184_v6 = vmax.f32 %v1152_v1, 0.0 }
 0x15e   : > { %v745_v7 = vpop.f32.mrf.mxu0  ;;  %v970_v9 = vpop.f32.mrf.mxu1  ;;  %v1114_v10 = vld [vmem:[#allocation2 + $0x88] sm:$0xff] }
 0x15f   : > { %1081 = vst.msk [vmem:[#allocation2 + $0x98] sm:$0xff] %vm258_vm0, %v1048_v5  ;;  %v971_v11 = vadd.f32 %v970_v9, %v745_v7  ;;  %1751 = vmatprep.mubr.msk.f32.mxu1 %vm258_vm0, %v1184_v6  ;;  %v1153_v12 = vadd.f32 %v2278_v25, %v1114_v10  ;;  %v509_v5 = vld [vmem:[#allocation2 + $0xd0] sm:$0xff] }
 0x160   : > { %v747_v13 = vpop.f32.mrf.mxu0  ;;  %v972_v14 = vpop.f32.mrf.mxu1 }
 0x161   : > { %v1049_v15 = vadd.f32 %v971_v11, %v503_v8  ;;  %v1185_v16 = vmax.f32 %v1153_v12, 0.0 }
 0x162   : > { %v750_v17 = vpop.f32.mrf.mxu0  ;;  %v975_v19 = vpop.f32.mrf.mxu1  ;;  %v1115_v20 = vld [vmem:[#allocation2 + $0x90] sm:$0xff] }
 0x163   : > { %1082 = vst.msk [vmem:[#allocation2 + $0xa0] sm:$0xff] %vm258_vm0, %v1049_v15  ;;  %v976_v21 = vadd.f32 %v975_v19, %v750_v17  ;;  %1752 = vmatmul.mubr.msk.f32.vlgmr.msra.gmra.mxu1 %vm258_vm0, %v1185_v16  ;;  %v1154_v22 = vadd.f32 %v2278_v25, %v1115_v20  ;;  %v510_v15 = vld [vmem:[#allocation2 + $0xd8] sm:$0xff] }
 0x164   : > { %v752_v23 = vpop.f32.mrf.mxu0  ;;  %v977_v24 = vpop.f32.mrf.mxu1 }
 0x165   : > { %v1050_v26 = vadd.f32 %v976_v21, %v504_v18  ;;  %v1186_v27 = vmax.f32 %v1154_v22, 0.0 }
 0x166   : > { %v755_v28 = vpop.f32.mrf.mxu0  ;;  %v980_v30 = vpop.f32.mrf.mxu1  ;;  %v1116_v31 = vld [vmem:[#allocation2 + $0x98] sm:$0xff] }
 0x167   : > { %1083 = vst.msk [vmem:[#allocation2 + $0xa8] sm:$0xff] %vm258_vm0, %v1050_v26  ;;  %v981_v32 = vadd.f32 %v980_v30, %v755_v28  ;;  %1754 = vmatprep.mubr.msk.f32.mxu1 %vm258_vm0, %v1186_v27  ;;  %v1155_v33 = vadd.f32 %v2278_v25, %v1116_v31  ;;  %v511_v26 = vld [vmem:[#allocation2 + $0xe0] sm:$0xff] }
 0x168   : > { %v757_v34 = vpop.f32.mrf.mxu0  ;;  %v982_v35 = vpop.f32.mrf.mxu1 }
 0x169   : > { %v1051_v36 = vadd.f32 %v981_v32, %v505_v29  ;;  %v1187_v37 = vmax.f32 %v1155_v33, 0.0 }
 0x16a   : > { %v760_v38 = vpop.f32.mrf.mxu0  ;;  %v985_v40 = vpop.f32.mrf.mxu1  ;;  %v1117_v41 = vld [vmem:[#allocation2 + $0xa0] sm:$0xff] }
 0x16b   : > { %1084 = vst.msk [vmem:[#allocation2 + $0xb0] sm:$0xff] %vm258_vm0, %v1051_v36  ;;  %v986_v42 = vadd.f32 %v985_v40, %v760_v38  ;;  %1755 = vmatmul.mubr.msk.f32.gmra.mxu1 %vm258_vm0, %v1187_v37  ;;  %v1156_v43 = vadd.f32 %v2278_v25, %v1117_v41  ;;  %v512_v36 = vld [vmem:[#allocation2 + $0xe8] sm:$0xff] }
 0x16c   : > { %v762_v44 = vpop.f32.mrf.mxu0  ;;  %v987_v45 = vpop.f32.mrf.mxu1 }
 0x16d   : > { %v1052_v46 = vadd.f32 %v986_v42, %v506_v39  ;;  %v1188_v47 = vmax.f32 %v1156_v43, 0.0 }
 0x16e   : > { %v765_v48 = vpop.f32.mrf.mxu0  ;;  %v990_v2 = vpop.f32.mrf.mxu1  ;;  %v1118_v50 = vld [vmem:[#allocation2 + $0xa8] sm:$0xff] }
 0x16f   : > { %1085 = vst.msk [vmem:[#allocation2 + $0xb8] sm:$0xff] %vm258_vm0, %v1052_v46  ;;  %v991_v51 = vadd.f32 %v990_v2, %v765_v48  ;;  %1757 = vmatprep.mubr.msk.f32.mxu1 %vm258_vm0, %v1188_v47  ;;  %v1157_v52 = vadd.f32 %v2278_v25, %v1118_v50  ;;  %v513_v46 = vld [vmem:[#allocation2 + $0xf0] sm:$0xff] }
 0x170   : > { %v767_v53 = vpop.f32.mrf.mxu0  ;;  %v992_v54 = vpop.f32.mrf.mxu1 }
 0x171   : > { %v1053_v55 = vadd.f32 %v991_v51, %v507_v49  ;;  %v1189_v56 = vmax.f32 %v1157_v52, 0.0 }
 0x172   : > { %v770_v57 = vpop.f32.mrf.mxu0  ;;  %v995_v59 = vpop.f32.mrf.mxu1  ;;  %v1119_v60 = vld [vmem:[#allocation2 + $0xb0] sm:$0xff] }
 0x173   : > { %1086 = vst.msk [vmem:[#allocation2 + $0xc0] sm:$0xff] %vm258_vm0, %v1053_v55  ;;  %v996_v61 = vadd.f32 %v995_v59, %v770_v57  ;;  %1758 = vmatmul.mubr.msk.f32.gmra.mxu1 %vm258_vm0, %v1189_v56  ;;  %v1158_v62 = vadd.f32 %v2278_v25, %v1119_v60  ;;  %v514_v55 = vld [vmem:[#allocation2 + $0xf8] sm:$0xff] }
 0x174   : > { %v772_v63 = vpop.f32.mrf.mxu0  ;;  %v997_v0 = vpop.f32.mrf.mxu1 }
 0x175   : > { %v1054_v1 = vadd.f32 %v996_v61, %v508_v58  ;;  %v1190_v3 = vmax.f32 %v1158_v62, 0.0 }
 0x176   : > { %v775_v4 = vpop.f32.mrf.mxu0  ;;  %v1000_v6 = vpop.f32.mrf.mxu1  ;;  %v1120_v7 = vld [vmem:[#allocation2 + $0xb8] sm:$0xff] }
 0x177   : > { %1087 = vst.msk [vmem:[#allocation2 + $0xc8] sm:$0xff] %vm258_vm0, %v1054_v1  ;;  %v1001_v8 = vadd.f32 %v1000_v6, %v775_v4  ;;  %1760 = vmatprep.mubr.msk.f32.mxu1 %vm258_vm0, %v1190_v3  ;;  %v1159_v9 = vadd.f32 %v2278_v25, %v1120_v7 }
 0x178   : > { %v777_v10 = vpop.f32.mrf.mxu0  ;;  %v1002_v11 = vpop.f32.mrf.mxu1 }
 0x179   : > { %v1055_v12 = vadd.f32 %v1001_v8, %v509_v5  ;;  %v1191_v13 = vmax.f32 %v1159_v9, 0.0 }
 0x17a   : > { %v780_v14 = vpop.f32.mrf.mxu0  ;;  %v1005_v16 = vpop.f32.mrf.mxu1  ;;  %v1121_v17 = vld [vmem:[#allocation2 + $0xc0] sm:$0xff] }
 0x17b   : > { %1088 = vst.msk [vmem:[#allocation2 + $0xd0] sm:$0xff] %vm258_vm0, %v1055_v12  ;;  %v1006_v18 = vadd.f32 %v1005_v16, %v780_v14  ;;  %1761 = vmatmul.mubr.msk.f32.gmra.mxu1 %vm258_vm0, %v1191_v13  ;;  %v1160_v19 = vadd.f32 %v2278_v25, %v1121_v17 }
 0x17c   : > { %v782_v20 = vpop.f32.mrf.mxu0  ;;  %v1007_v21 = vpop.f32.mrf.mxu1 }
 0x17d   : > { %v1056_v22 = vadd.f32 %v1006_v18, %v510_v15  ;;  %v1192_v23 = vmax.f32 %v1160_v19, 0.0 }
 0x17e   : > { %v785_v24 = vpop.f32.mrf.mxu0  ;;  %v1010_v27 = vpop.f32.mrf.mxu1  ;;  %v1122_v28 = vld [vmem:[#allocation2 + $0xc8] sm:$0xff] }
 0x17f   : > { %1089 = vst.msk [vmem:[#allocation2 + $0xd8] sm:$0xff] %vm258_vm0, %v1056_v22  ;;  %v1011_v29 = vadd.f32 %v1010_v27, %v785_v24  ;;  %1763 = vmatprep.mubr.msk.f32.mxu1 %vm258_vm0, %v1192_v23  ;;  %v1161_v30 = vadd.f32 %v2278_v25, %v1122_v28 }
 0x180   : > { %v787_v31 = vpop.f32.mrf.mxu0  ;;  %v1012_v32 = vpop.f32.mrf.mxu1 }
 0x181   : > { %v1057_v33 = vadd.f32 %v1011_v29, %v511_v26  ;;  %v1193_v34 = vmax.f32 %v1161_v30, 0.0 }
 0x182   : > { %v790_v35 = vpop.f32.mrf.mxu0  ;;  %v1015_v37 = vpop.f32.mrf.mxu1  ;;  %v1123_v38 = vld [vmem:[#allocation2 + $0xd0] sm:$0xff] }
 0x183   : > { %1090 = vst.msk [vmem:[#allocation2 + $0xe0] sm:$0xff] %vm258_vm0, %v1057_v33  ;;  %v1016_v39 = vadd.f32 %v1015_v37, %v790_v35  ;;  %1764 = vmatmul.mubr.msk.f32.gmra.mxu1 %vm258_vm0, %v1193_v34  ;;  %v1162_v40 = vadd.f32 %v2278_v25, %v1123_v38 }
 0x184   : > { %v792_v41 = vpop.f32.mrf.mxu0  ;;  %v1017_v42 = vpop.f32.mrf.mxu1 }
 0x185   : > { %v1058_v43 = vadd.f32 %v1016_v39, %v512_v36  ;;  %v1194_v44 = vmax.f32 %v1162_v40, 0.0 }
 0x186   : > { %v795_v45 = vpop.f32.mrf.mxu0  ;;  %v1020_v47 = vpop.f32.mrf.mxu1  ;;  %v1124_v48 = vld [vmem:[#allocation2 + $0xd8] sm:$0xff] }
 0x187   : > { %1091 = vst.msk [vmem:[#allocation2 + $0xe8] sm:$0xff] %vm258_vm0, %v1058_v43  ;;  %v1021_v49 = vadd.f32 %v1020_v47, %v795_v45  ;;  %1766 = vmatprep.mubr.msk.f32.mxu1 %vm258_vm0, %v1194_v44  ;;  %v1163_v2 = vadd.f32 %v2278_v25, %v1124_v48 }
 0x188   : > { %v797_v50 = vpop.f32.mrf.mxu0  ;;  %v1022_v51 = vpop.f32.mrf.mxu1 }
 0x189   : > { %v1059_v52 = vadd.f32 %v1021_v49, %v513_v46  ;;  %v1195_v53 = vmax.f32 %v1163_v2, 0.0 }
 0x18a   : > { %v800_v54 = vpop.f32.mrf.mxu0  ;;  %v1025_v56 = vpop.f32.mrf.mxu1  ;;  %v1125_v57 = vld [vmem:[#allocation2 + $0xe0] sm:$0xff] }
 0x18b   : > { %1092 = vst.msk [vmem:[#allocation2 + $0xf0] sm:$0xff] %vm258_vm0, %v1059_v52  ;;  %v1026_v58 = vadd.f32 %v1025_v56, %v800_v54  ;;  %1767 = vmatmul.mubr.msk.f32.gmra.mxu1 %vm258_vm0, %v1195_v53  ;;  %v1164_v59 = vadd.f32 %v2278_v25, %v1125_v57 }
 0x18c   : > { %v802_v60 = vpop.f32.mrf.mxu0  ;;  %v1027_v61 = vpop.f32.mrf.mxu1 }
 0x18d   : > { %v1060_v62 = vadd.f32 %v1026_v58, %v514_v55  ;;  %v1196_v63 = vmax.f32 %v1164_v59, 0.0 }
 0x18e   : > { %v1126_v0 = vld [vmem:[#allocation2 + $0xe8] sm:$0xff] }
 0x18f   : > { %1093 = vst.msk [vmem:[#allocation2 + $0xf8] sm:$0xff] %vm258_vm0, %v1060_v62  ;;  %1769 = vmatprep.mubr.msk.f32.mxu1 %vm258_vm0, %v1196_v63  ;;  %v1165_v1 = vadd.f32 %v2278_v25, %v1126_v0 }
 0x191   : > { %v1197_v3 = vmax.f32 %v1165_v1, 0.0 }
 0x192   : > { %v1127_v4 = vld [vmem:[#allocation2 + $0xf0] sm:$0xff] }
 0x193   : > { %1770 = vmatmul.mubr.msk.f32.gmra.mxu1 %vm258_vm0, %v1197_v3  ;;  %v1166_v5 = vadd.f32 %v2278_v25, %v1127_v4 }
 0x195   : > { %v1198_v6 = vmax.f32 %v1166_v5, 0.0 }
 0x196   : > { %v1128_v7 = vld [vmem:[#allocation2 + $0xf8] sm:$0xff] }
 0x197   : > { %1772 = vmatprep.mubr.msk.f32.mxu1 %vm258_vm0, %v1198_v6  ;;  %v1167_v8 = vadd.f32 %v2278_v25, %v1128_v7 }
 0x199   : > { %v1199_v9 = vmax.f32 %v1167_v8, 0.0 }
 0x19b   : > { %1773 = vmatmul.mubr.msk.f32.gmra.mxu1 %vm258_vm0, %v1199_v9 }
 0x1e3   : > { %v1729_v10 = vpop.f32.mrf.mxu0 }
 0x1e4   : > { %1525 = vst.msk [vmem:[%s2378_s28 + $0x8] sm:$0xff] %vm1523_vm1, %v1729_v10 }
 0x1e5   : > { %v1364_v25 = vpop.f32.mrf.mxu0 }
 0x1e6   : > { %1524 = vst.msk [vmem:[%s2378_s28] sm:$0xff] %vm1523_vm1, %v1364_v25 }
 0x1eb   : > { %v1732_v11 = vpop.f32.mrf.mxu0 }
 0x1ec   : > { %1527 = vst.msk [vmem:[%s2378_s28 + $0x18] sm:$0xff] %vm1523_vm1, %v1732_v11 }
 0x1ed   : > { %v1374_v12 = vpop.f32.mrf.mxu0 }
 0x1ee   : > { %1526 = vst.msk [vmem:[%s2378_s28 + $0x10] sm:$0xff] %vm1523_vm1, %v1374_v12 }
 0x1f3   : > { %v1735_v13 = vpop.f32.mrf.mxu0 }
 0x1f4   : > { %1529 = vst.msk [vmem:[%s2378_s28 + $0x28] sm:$0xff] %vm1523_vm1, %v1735_v13 }
 0x1f5   : > { %v1384_v14 = vpop.f32.mrf.mxu0 }
 0x1f6   : > { %1528 = vst.msk [vmem:[%s2378_s28 + $0x20] sm:$0xff] %vm1523_vm1, %v1384_v14 }
 0x1fb   : > { %v1738_v15 = vpop.f32.mrf.mxu0 }
 0x1fc   : > { %1531 = vst.msk [vmem:[%s2378_s28 + $0x38] sm:$0xff] %vm1523_vm1, %v1738_v15 }
 0x1fd   : > { %v1394_v16 = vpop.f32.mrf.mxu0 }
 0x1fe   : > { %1530 = vst.msk [vmem:[%s2378_s28 + $0x30] sm:$0xff] %vm1523_vm1, %v1394_v16 }
 0x203   : > { %v1741_v17 = vpop.f32.mrf.mxu0 }
 0x204   : > { %1533 = vst.msk [vmem:[%s2378_s28 + $0x48] sm:$0xff] %vm1523_vm1, %v1741_v17 }
 0x205   : > { %v1404_v18 = vpop.f32.mrf.mxu0 }
 0x206   : > { %1532 = vst.msk [vmem:[%s2378_s28 + $0x40] sm:$0xff] %vm1523_vm1, %v1404_v18 }
 0x20b   : > { %v1744_v19 = vpop.f32.mrf.mxu0 }
 0x20c   : > { %1535 = vst.msk [vmem:[%s2378_s28 + $0x58] sm:$0xff] %vm1523_vm1, %v1744_v19 }
 0x20d   : > { %v1414_v20 = vpop.f32.mrf.mxu0 }
 0x20e   : > { %1534 = vst.msk [vmem:[%s2378_s28 + $0x50] sm:$0xff] %vm1523_vm1, %v1414_v20 }
 0x213   : > { %v1747_v21 = vpop.f32.mrf.mxu0 }
 0x214   : > { %1537 = vst.msk [vmem:[%s2378_s28 + $0x68] sm:$0xff] %vm1523_vm1, %v1747_v21 }
 0x215   : > { %v1424_v22 = vpop.f32.mrf.mxu0 }
 0x216   : > { %1536 = vst.msk [vmem:[%s2378_s28 + $0x60] sm:$0xff] %vm1523_vm1, %v1424_v22 }
 0x21b   : > { %v1750_v23 = vpop.f32.mrf.mxu0 }
 0x21c   : > { %1539 = vst.msk [vmem:[%s2378_s28 + $0x78] sm:$0xff] %vm1523_vm1, %v1750_v23 }
 0x21d   : > { %v1434_v24 = vpop.f32.mrf.mxu0 }
 0x21e   : > { %1538 = vst.msk [vmem:[%s2378_s28 + $0x70] sm:$0xff] %vm1523_vm1, %v1434_v24 }
 0x223   : > { %v1753_v26 = vpop.f32.mrf.mxu1 }
 0x224   : > { %1541 = vst.msk [vmem:[%s2378_s28 + $0x88] sm:$0xff] %vm1523_vm1, %v1753_v26 }
 0x225   : > { %v1444_v27 = vpop.f32.mrf.mxu1 }
 0x226   : > { %1540 = vst.msk [vmem:[%s2378_s28 + $0x80] sm:$0xff] %vm1523_vm1, %v1444_v27 }
 0x22b   : > { %v1756_v28 = vpop.f32.mrf.mxu1 }
 0x22c   : > { %1543 = vst.msk [vmem:[%s2378_s28 + $0x98] sm:$0xff] %vm1523_vm1, %v1756_v28 }
 0x22d   : > { %v1454_v29 = vpop.f32.mrf.mxu1 }
 0x22e   : > { %1542 = vst.msk [vmem:[%s2378_s28 + $0x90] sm:$0xff] %vm1523_vm1, %v1454_v29 }
 0x233   : > { %v1759_v30 = vpop.f32.mrf.mxu1 }
 0x234   : > { %1545 = vst.msk [vmem:[%s2378_s28 + $0xa8] sm:$0xff] %vm1523_vm1, %v1759_v30 }
 0x235   : > { %v1464_v31 = vpop.f32.mrf.mxu1 }
 0x236   : > { %1544 = vst.msk [vmem:[%s2378_s28 + $0xa0] sm:$0xff] %vm1523_vm1, %v1464_v31 }
 0x23b   : > { %v1762_v32 = vpop.f32.mrf.mxu1 }
 0x23c   : > { %1547 = vst.msk [vmem:[%s2378_s28 + $0xb8] sm:$0xff] %vm1523_vm1, %v1762_v32 }
 0x23d   : > { %v1474_v33 = vpop.f32.mrf.mxu1 }
 0x23e   : > { %1546 = vst.msk [vmem:[%s2378_s28 + $0xb0] sm:$0xff] %vm1523_vm1, %v1474_v33 }
 0x243   : > { %v1765_v34 = vpop.f32.mrf.mxu1 }
 0x244   : > { %1549 = vst.msk [vmem:[%s2378_s28 + $0xc8] sm:$0xff] %vm1523_vm1, %v1765_v34 }
 0x245   : > { %v1484_v35 = vpop.f32.mrf.mxu1 }
 0x246   : > { %1548 = vst.msk [vmem:[%s2378_s28 + $0xc0] sm:$0xff] %vm1523_vm1, %v1484_v35 }
 0x24b   : > { %v1768_v36 = vpop.f32.mrf.mxu1 }
 0x24c   : > { %1551 = vst.msk [vmem:[%s2378_s28 + $0xd8] sm:$0xff] %vm1523_vm1, %v1768_v36 }
 0x24d   : > { %v1494_v37 = vpop.f32.mrf.mxu1 }
 0x24e   : > { %1550 = vst.msk [vmem:[%s2378_s28 + $0xd0] sm:$0xff] %vm1523_vm1, %v1494_v37 }
 0x253   : > { %v1771_v38 = vpop.f32.mrf.mxu1 }
 0x254   : > { %1553 = vst.msk [vmem:[%s2378_s28 + $0xe8] sm:$0xff] %vm1523_vm1, %v1771_v38 }
 0x255   : > { %v1504_v39 = vpop.f32.mrf.mxu1 }
 0x256   : > { %1552 = vst.msk [vmem:[%s2378_s28 + $0xe0] sm:$0xff] %vm1523_vm1, %v1504_v39 }
 0x25b   : > { %v1774_v40 = vpop.f32.mrf.mxu1 }
 0x25c   : > { %1555 = vst.msk [vmem:[%s2378_s28 + $0xf8] sm:$0xff] %vm1523_vm1, %v1774_v40 }
 0x25d   : > { %v1514_v41 = vpop.f32.mrf.mxu1 }
 0x25e   : > { %1554 = vst.msk [vmem:[%s2378_s28 + $0xf0] sm:$0xff] %vm1523_vm1, %v1514_v41 }
 0x25f PF: > { %s14_s17 = sadd.s32 1, %s1826_s17   ;;  %s2458_s15 = smov %s1822_s16 }
 0x260   : > { %p11_p5 = scmp.ge.s32.totalorder %s14_s17, 4   ;;  %s2459_s16 = smov %s2461_s18 }
 0x262   :  { %13 = sbr.rel (!%p11_p5) target bundleno = 2 (0x2), region = 77 }

// kernel: gcn_forward.7
= control target key start
LH: loop header
LB: loop body
LE: loop exit
PB: predicated region body
PF: predicated region fallthrough
CT: control target
= control target key end

     0   :  { %v376_v30 = vmov 1983009808   ;;  %v92_v32 = vlaneseq  ;;  %s603_s0 = inlined_call_operand.vmem [shape: f32[2,512], index: 0, kind: input, shape index: {}]   ;;  %s604_s1 = inlined_call_operand.vmem [shape: f32[512,4], index: 1, kind: input, shape index: {}]   ;;  %s605_s2 = inlined_call_operand.vmem [shape: f32[1,4], index: 2, kind: input, shape index: {}]   ;;  %s606_s3 = inlined_call_operand.hbm [shape: f32[2,4], index: 3, kind: output, shape index: {}]  }
   0x1   :  { %v54_v0 = vld [vmem:[%s604_s1 + $0xf8] sm:$0xff]  ;;  %v53_v4 = vld [vmem:[%s604_s1 + $0xf0] sm:$0xff]  ;;  %v52_v8 = vld [vmem:[%s604_s1 + $0xe8] sm:$0xff]  ;;  %v90_v31 = vunpack.c.l.s4 %v376_v30 }
   0x2   :  { %v86_v1 = vld [vmem:[%s604_s1 + $0x1f8] sm:$0xff]  ;;  %280 = vmatprep.subr.mxu0 %v54_v0  ;;  %v85_v5 = vld [vmem:[%s604_s1 + $0x1f0] sm:$0xff]  ;;  %v84_v9 = vld [vmem:[%s604_s1 + $0x1e8] sm:$0xff]  ;;  %v93_v42 = vshrl.u32 %v92_v32, 7 }
   0x3   :  { %v38_v2 = vld [vmem:[%s604_s1 + $0x78] sm:$0xff]  ;;  %315 = vmatprep.subr.mxu1 %v86_v1  ;;  %v37_v6 = vld [vmem:[%s604_s1 + $0x70] sm:$0xff]  ;;  %v36_v10 = vld [vmem:[%s604_s1 + $0x68] sm:$0xff]  ;;  %v91_v41 = vunpack.c.0.s8 %v90_v31 }
   0x4   :  { %v70_v3 = vld [vmem:[%s604_s1 + $0x178] sm:$0xff]  ;;  %281 = vmatpush3.msra.mxu0 %v38_v2  ;;  %v69_v7 = vld [vmem:[%s604_s1 + $0x170] sm:$0xff]  ;;  %v68_v11 = vld [vmem:[%s604_s1 + $0x168] sm:$0xff] }
   0x5   :  { %316 = vmatpush3.msra.mxu1 %v70_v3  ;;  %282 = vmatprep.subr.mxu0 %v53_v4  ;;  %v51_v12 = vld [vmem:[%s604_s1 + $0xe0] sm:$0xff]  ;;  %v50_v16 = vld [vmem:[%s604_s1 + $0xd8] sm:$0xff]  ;;  %v49_v20 = vld [vmem:[%s604_s1 + $0xd0] sm:$0xff]  ;;  %v94_v52 = vsub.s32 %v91_v41, %v93_v42 }
   0x6   :  { %317 = vmatprep.subr.mxu1 %v85_v5  ;;  %283 = vmatpush3.msra.mxu0 %v37_v6  ;;  %v83_v13 = vld [vmem:[%s604_s1 + $0x1e0] sm:$0xff]  ;;  %v82_v17 = vld [vmem:[%s604_s1 + $0x1d8] sm:$0xff]  ;;  %v81_v21 = vld [vmem:[%s604_s1 + $0x1d0] sm:$0xff] }
   0x7   :  { %318 = vmatpush3.msra.mxu1 %v69_v7  ;;  %284 = vmatprep.subr.mxu0 %v52_v8  ;;  %v35_v14 = vld [vmem:[%s604_s1 + $0x60] sm:$0xff]  ;;  %v34_v18 = vld [vmem:[%s604_s1 + $0x58] sm:$0xff]  ;;  %v33_v22 = vld [vmem:[%s604_s1 + $0x50] sm:$0xff] }
   0x8   :  { %319 = vmatprep.subr.mxu1 %v84_v9  ;;  %v67_v15 = vld [vmem:[%s604_s1 + $0x160] sm:$0xff]  ;;  %285 = vmatpush3.msra.mxu0 %v36_v10  ;;  %v66_v19 = vld [vmem:[%s604_s1 + $0x158] sm:$0xff]  ;;  %v65_v23 = vld [vmem:[%s604_s1 + $0x150] sm:$0xff] }
   0x9   :  { %320 = vmatpush3.msra.mxu1 %v68_v11  ;;  %286 = vmatprep.subr.mxu0 %v51_v12  ;;  %v48_v24 = vld [vmem:[%s604_s1 + $0xc8] sm:$0xff]  ;;  %v47_v28 = vld [vmem:[%s604_s1 + $0xc0] sm:$0xff]  ;;  %v46_v35 = vld [vmem:[%s604_s1 + $0xb8] sm:$0xff] }
   0xa   :  { %321 = vmatprep.subr.mxu1 %v83_v13  ;;  %287 = vmatpush3.msra.mxu0 %v35_v14  ;;  %v80_v25 = vld [vmem:[%s604_s1 + $0x1c8] sm:$0xff]  ;;  %v79_v29 = vld [vmem:[%s604_s1 + $0x1c0] sm:$0xff]  ;;  %v78_v36 = vld [vmem:[%s604_s1 + $0x1b8] sm:$0xff] }
   0xb   :  { %322 = vmatpush3.msra.mxu1 %v67_v15  ;;  %288 = vmatprep.subr.mxu0 %v50_v16  ;;  %v32_v26 = vld [vmem:[%s604_s1 + $0x48] sm:$0xff]  ;;  %v31_v33 = vld [vmem:[%s604_s1 + $0x40] sm:$0xff]  ;;  %v30_v37 = vld [vmem:[%s604_s1 + $0x38] sm:$0xff] }
   0xc   :  { %323 = vmatprep.subr.mxu1 %v82_v17  ;;  %289 = vmatpush3.msra.mxu0 %v34_v18  ;;  %v64_v27 = vld [vmem:[%s604_s1 + $0x148] sm:$0xff]  ;;  %v63_v34 = vld [vmem:[%s604_s1 + $0x140] sm:$0xff]  ;;  %v62_v38 = vld [vmem:[%s604_s1 + $0x138] sm:$0xff] }
   0xd   :  { %324 = vmatpush3.msra.mxu1 %v66_v19  ;;  %290 = vmatprep.subr.mxu0 %v49_v20  ;;  %v45_v39 = vld [vmem:[%s604_s1 + $0xb0] sm:$0xff]  ;;  %v44_v45 = vld [vmem:[%s604_s1 + $0xa8] sm:$0xff]  ;;  %v43_v49 = vld [vmem:[%s604_s1 + $0xa0] sm:$0xff] }
   0xe   :  { %325 = vmatprep.subr.mxu1 %v81_v21  ;;  %291 = vmatpush3.msra.mxu0 %v33_v22  ;;  %v77_v40 = vld [vmem:[%s604_s1 + $0x1b0] sm:$0xff]  ;;  %v76_v46 = vld [vmem:[%s604_s1 + $0x1a8] sm:$0xff]  ;;  %v75_v50 = vld [vmem:[%s604_s1 + $0x1a0] sm:$0xff] }
   0xf   :  { %326 = vmatpush3.msra.mxu1 %v65_v23  ;;  %292 = vmatprep.subr.mxu0 %v48_v24  ;;  %v29_v43 = vld [vmem:[%s604_s1 + $0x30] sm:$0xff]  ;;  %v28_v47 = vld [vmem:[%s604_s1 + $0x28] sm:$0xff]  ;;  %v27_v51 = vld [vmem:[%s604_s1 + $0x20] sm:$0xff] }
  0x10   :  { %327 = vmatprep.subr.mxu1 %v80_v25  ;;  %293 = vmatpush3.msra.mxu0 %v32_v26  ;;  %v61_v44 = vld [vmem:[%s604_s1 + $0x130] sm:$0xff]  ;;  %v60_v48 = vld [vmem:[%s604_s1 + $0x128] sm:$0xff]  ;;  %v59_v53 = vld [vmem:[%s604_s1 + $0x120] sm:$0xff] }
  0x11   :  { %328 = vmatpush3.msra.mxu1 %v64_v27  ;;  %294 = vmatprep.subr.mxu0 %v47_v28  ;;  %v22_v54 = vld [vmem:[%s603_s0] sm:$0xff] }
  0x12   :  { %329 = vmatprep.subr.mxu1 %v79_v29  ;;  %295 = vmatpush3.msra.mxu0 %v31_v33 }
  0x13   :  { %330 = vmatpush3.msra.mxu1 %v63_v34  ;;  %296 = vmatprep.subr.mxu0 %v46_v35 }
  0x14   :  { %331 = vmatprep.subr.mxu1 %v78_v36  ;;  %297 = vmatpush3.msra.mxu0 %v30_v37 }
  0x15   :  { %332 = vmatpush3.msra.mxu1 %v62_v38  ;;  %298 = vmatprep.subr.mxu0 %v45_v39 }
  0x16   :  { %333 = vmatprep.subr.mxu1 %v77_v40  ;;  %299 = vmatpush3.msra.mxu0 %v29_v43 }
  0x17   :  { %334 = vmatpush3.msra.mxu1 %v61_v44  ;;  %300 = vmatprep.subr.mxu0 %v44_v45 }
  0x18   :  { %335 = vmatprep.subr.mxu1 %v76_v46 }
  0x19   :  { %8 = vsyncpa [#allocation3], 0  ;;  %301 = vmatpush3.msra.mxu0 %v28_v47  ;;  %336 = vmatpush3.msra.mxu1 %v60_v48  ;;  %v42_v55 = vld [vmem:[%s604_s1 + $0x98] sm:$0xff]  ;;  %v88_v57 = vcombine.high %v22_v54, %v22_v54  ;;  %v41_v60 = vld [vmem:[%s604_s1 + $0x90] sm:$0xff]  ;;  %v95_v62 = vrot.slane %v22_v54, %v94_v52  ;;  %vm19_vm0 = vcmask 25600   ;;  %v377_v12 = vmov 0.0  }
  0x1a   :  { %v74_v56 = vld [vmem:[%s604_s1 + $0x198] sm:$0xff]  ;;  %302 = vmatprep.subr.mxu0 %v43_v49  ;;  %337 = vmatprep.subr.mxu1 %v75_v50  ;;  %v73_v61 = vld [vmem:[%s604_s1 + $0x190] sm:$0xff]  ;;  %v40_v2 = vld [vmem:[%s604_s1 + $0x88] sm:$0xff]  ;;  %20 = vst.msk [vmem:[#allocation2] sm:$0x3] %vm19_vm0, %v377_v12  ;;  %s378_s7 = smov [#allocation2]  }
  0x1b   :  { %v26_v58 = vld [vmem:[%s604_s1 + $0x18] sm:$0xff]  ;;  %303 = vmatpush3.msra.mxu0 %v27_v51  ;;  %338 = vmatpush3.msra.mxu1 %v59_v53  ;;  %v25_v63 = vld [vmem:[%s604_s1 + $0x10] sm:$0xff]  ;;  %v102_v1 = vrot.slane %v88_v57, %v94_v52  ;;  %v72_v3 = vld [vmem:[%s604_s1 + $0x188] sm:$0xff]  ;;  %v103_v8 = vcombine.high %v95_v62, %v95_v62  ;;  %s271_s8 = sshll.u32 %s378_s7, 4  ;;  %s272_s8 = int_to_ptr.vmem [resolvable:$true] %s271_s8 }
  0x1c   :  { %v58_v59 = vld [vmem:[%s604_s1 + $0x118] sm:$0xff]  ;;  %304 = vmatprep.subr.mxu0 %v42_v55  ;;  %339 = vmatprep.subr.mxu1 %v74_v56  ;;  %v57_v0 = vld [vmem:[%s604_s1 + $0x110] sm:$0xff]  ;;  %v24_v4 = vld [vmem:[%s604_s1 + $0x8] sm:$0xff]  ;;  %s354_s0 = scalar_lea.vmem %s272_s8, 32  ;;  %p359_p1 = scmp.lt.s32.totalorder %s272_s8, %s272_s8 }
  0x1d   :  { %305 = vmatpush3.msra.mxu0 %v26_v58  ;;  %340 = vmatpush3.msra.mxu1 %v58_v59  ;;  %v56_v5 = vld [vmem:[%s604_s1 + $0x108] sm:$0xff]  ;;  %v39_v6 = vld [vmem:[%s604_s1 + $0x80] sm:$0xff]  ;;  %v104_v10 = vcombine.high %v102_v1, %v102_v1  ;;  %p355_p0 = scmp.ne.s32.totalorder %s272_s8, %s354_s0  ;;  %p360_p2 = scmp.lt.s32.totalorder %s354_s0, %s354_s0 }
  0x1e   :  { %306 = vmatprep.subr.mxu0 %v41_v60  ;;  %341 = vmatprep.subr.mxu1 %v73_v61  ;;  %v71_v7 = vld [vmem:[%s604_s1 + $0x180] sm:$0xff] }
  0x1f   :  { %307 = vmatpush3.msra.mxu0 %v25_v63  ;;  %342 = vmatpush3.msra.mxu1 %v57_v0  ;;  %v23_v9 = vld [vmem:[%s604_s1] sm:$0xff]  ;;  %p361_p3 = por %p360_p2, %p359_p1 }
  0x20   :  { %308 = vmatprep.subr.mxu0 %v40_v2  ;;  %343 = vmatprep.subr.mxu1 %v72_v3  ;;  %v55_v11 = vld [vmem:[%s604_s1 + $0x100] sm:$0xff] }
  0x21   :  { %309 = vmatpush3.msra.mxu0 %v24_v4  ;;  %344 = vmatpush3.msra.mxu1 %v56_v5  ;;  %v21_v19 = vld [vmem:[#allocation2] sm:$0x3]  ;;  %p362_p4 = pnand %p361_p3, %p355_p0 }
  0x22   :  { %310 = vmatprep.subr.mxu0 %v39_v6  ;;  %345 = vmatprep.subr.mxu1 %v71_v7  ;;  %v279_v22 = vld [vmem:[%s605_s2] ss:$0 sm:$0xff] }
  0x23   :  { %311 = vmatpush3.msra.mxu0 %v23_v9  ;;  %173 = vmatprep.mubr.f32.mxu0 %v103_v8 }
  0x24   :  { %346 = vmatpush3.msra.mxu1 %v55_v11  ;;  %243 = vmatprep.mubr.f32.mxu1 %v104_v10 }
  0x25   :  { %174 = vmatmul.mubr.f32.vlgmr.msra.gmra.mxu0 %v95_v62  ;;  %244 = vmatmul.mubr.f32.vlgmr.msra.gmra.mxu1 %v102_v1 }
  0xe5   :  { %v312_v13 = vpop.f32.mrf.mxu0  ;;  %v347_v14 = vpop.f32.mrf.mxu1 }
  0xe7   :  { %v313_v15 = vpop.f32.mrf.mxu0  ;;  %v348_v16 = vpop.f32.mrf.mxu1 }
  0xe8   :  { %v314_v17 = vadd.f32 %v313_v15, %v312_v13  ;;  %v349_v18 = vadd.f32 %v348_v16, %v347_v14 }
  0xea   :  { %v246_v20 = vadd.f32 %v349_v18, %v314_v17 }
  0xec   :  { %v249_v21 = vadd.f32 %v246_v20, %v21_v19 }
  0xee   :  { %251 = vst.msk [vmem:[#allocation2] sm:$0x3] %vm19_vm0, %v249_v21 }
  0xf5   :  { %v255_v23 = vld [vmem:[#allocation2] sm:$0x3] }
  0xf6   :  { %v263_v24 = vadd.f32 %v279_v22, %v255_v23 }
  0xf8   :  { %264 = vst.msk [vmem:[#allocation2] sm:$0x3] %vm19_vm0, %v263_v24 }
  0xf9   :  { %365 = shalt.err (!%p362_p4)
}
  0xfa   :  { %274 = dma.vmem_to_hbm [thread:$0]  %s272_s8, 32, %s606_s3, [#allocation3]  }
  0xfb   :  { %374 = dma.done.wait [#allocation3], 32  }
  0xfc   :  { %375 = vsyncadd [#allocation3], 4294967264 }
  0xfd   :  { %278 = vsyncpa [#allocation3], 1 }

</bundles_post_ra>
